<compile_context>
chip_gen: v7x
topology: tpu7x:2x2x1
jax: 0.10.0
libtpu: 0.0.40
codegen_flags: <defaults>
</compile_context>

<pallas_src>
import functools
import math

import jax
import jax.numpy as jnp
from jax.experimental import pallas as pl
from jax.experimental.pallas import tpu as pltpu

LN_EPS = 1e-12          # BERT LayerNorm epsilon
NEG_INF = -1e30         # attention mask value for padded key positions


def _round_up(x, m):
    return ((x + m - 1) // m) * m


# ----------------------------------------------------------------------------
# In-kernel helpers (pure jnp, traced inside the Pallas kernel)
# ----------------------------------------------------------------------------
def _layer_norm(h, g, b):
    """LayerNorm over the last axis.  h:[S,H]  g,b:[1,H]."""
    mean = jnp.mean(h, axis=-1, keepdims=True)
    var = jnp.mean(jnp.square(h - mean), axis=-1, keepdims=True)
    return (h - mean) * jax.lax.rsqrt(var + LN_EPS) * g + b


def _erf(x):
    """erf via Abramowitz & Stegun 7.1.26 (|err| <= 1.5e-7).

    Avoids relying on an erf primitive lowering in Mosaic while matching BERT's
    exact (erf) GELU to well below bf16 precision; uses only exp / mul / div.
    """
    a1, a2, a3, a4, a5 = 0.254829592, -0.284496736, 1.421413741, -1.453152027, 1.061405429
    p = 0.3275911
    s = jnp.where(x >= 0.0, 1.0, -1.0)
    ax = jnp.abs(x)
    t = 1.0 / (1.0 + p * ax)
    poly = t * (a1 + t * (a2 + t * (a3 + t * (a4 + t * a5))))
    return s * (1.0 - poly * jnp.exp(-ax * ax))


def _gelu_exact(x):
    return 0.5 * x * (1.0 + _erf(x * (1.0 / math.sqrt(2.0))))


# ----------------------------------------------------------------------------
# Fused forward kernel: one grid step == one batch element, full model.
# ----------------------------------------------------------------------------
def _fill_mask_kernel(idx_ref, x_ref,
                      w_in_ref, b_in_ref, pos_ref, tt_ref, eg_ref, eb_ref,
                      wq_ref, bq_ref, wk_ref, bk_ref, wv_ref, bv_ref,
                      wo_ref, bo_ref, ln1g_ref, ln1b_ref,
                      wf1_ref, bf1_ref, wf2_ref, bf2_ref, ln2g_ref, ln2b_ref,
                      w_out_ref, b_out_ref,
                      o_ref,
                      *, num_layers, num_heads, seq_real):
    f32 = jnp.float32
    bf16 = jnp.bfloat16

    x = x_ref[0]                       # (S_pad, RP) f32, zero-padded
    s_pad = x.shape[0]
    hidden = pos_ref.shape[-1]
    dh = hidden // num_heads
    scale = 1.0 / math.sqrt(dh)

    # ---- embeddings: response2embedding + positional + token-type, then LN ----
    emb = jnp.dot(x.astype(bf16), w_in_ref[...],
                  preferred_element_type=f32) + b_in_ref[...]
    idx = idx_ref[0]                   # (S_pad, 1) int32 token-type ids (0/1)
    type_emb = jnp.where(idx == 1, tt_ref[1:2, :], tt_ref[0:1, :])   # (S_pad, H)
    h = _layer_norm(emb + pos_ref[...] + type_emb, eg_ref[...], eb_ref[...])

    # key-validity mask: padded sequence positions must not receive attention
    key_pos = jax.lax.broadcasted_iota(jnp.int32, (s_pad, s_pad), 1)
    key_valid = key_pos < seq_real

    # ---- encoder layers (static, unrolled: tiny model) ----
    for l in range(num_layers):
        wq, wk, wv, wo = wq_ref[l], wk_ref[l], wv_ref[l], wo_ref[l]   # (H,H) bf16
        hb = h.astype(bf16)
        q = jnp.dot(hb, wq, preferred_element_type=f32) + bq_ref[l]
        k = jnp.dot(hb, wk, preferred_element_type=f32) + bk_ref[l]
        v = jnp.dot(hb, wv, preferred_element_type=f32) + bv_ref[l]

        # Accumulate each head's context straight through its slice of W_O rows:
        # avoids a lane-axis concatenate of per-head outputs entirely.
        attn = jnp.zeros((s_pad, hidden), f32)
        for hd in range(num_heads):
            sl = slice(hd * dh, (hd + 1) * dh)
            s = jax.lax.dot_general(
                q[:, sl].astype(bf16), k[:, sl].astype(bf16),
                (((1,), (1,)), ((), ())), preferred_element_type=f32) * scale
            s = jnp.where(key_valid, s, NEG_INF)
            s = s - jnp.max(s, axis=-1, keepdims=True)
            p = jnp.exp(s)
            p = p * pl.reciprocal(jnp.sum(p, axis=-1, keepdims=True), approx=True)
            ctx = jnp.dot(p.astype(bf16), v[:, sl].astype(bf16),
                          preferred_element_type=f32)                 # (S_pad, dh)
            attn = attn + jnp.dot(ctx.astype(bf16), wo[sl, :],
                                  preferred_element_type=f32)
        attn = attn + bo_ref[l]

        h = _layer_norm(attn + h, ln1g_ref[l], ln1b_ref[l])

        ff = jnp.dot(h.astype(bf16), wf1_ref[l],
                     preferred_element_type=f32) + bf1_ref[l]
        ff = _gelu_exact(ff)
        ff = jnp.dot(ff.astype(bf16), wf2_ref[l],
                     preferred_element_type=f32) + bf2_ref[l]
        h = _layer_norm(ff + h, ln2g_ref[l], ln2b_ref[l])

    # ---- vector2response (lane-dense: N padded to 128) ----
    out = jnp.dot(h.astype(bf16), w_out_ref[...],
                  preferred_element_type=f32) + b_out_ref[...]
    o_ref[0] = out.astype(o_ref.dtype)


# ----------------------------------------------------------------------------
# Wrapper: pad/pack once, one pallas_call for the whole forward pass.
# ----------------------------------------------------------------------------
def fill_mask_forward(params, corrupted_responses, indexes, *, num_heads):
    B, S, RESP = corrupted_responses.shape
    H = params["w_in"].shape[1]
    F = params["layers"][0]["w_ff1"].shape[1]
    L = len(params["layers"])

    S_pad = _round_up(S, 16)          # sublane-friendly rows
    RP = _round_up(RESP, 128)         # lane-dense response dim (100 -> 128)
    bf16 = jnp.bfloat16

    # --- pad inputs once (pad rows/cols are zeros; attention masks pad keys) ---
    x = jnp.pad(corrupted_responses.astype(jnp.float32),
                ((0, 0), (0, S_pad - S), (0, RP - RESP)))
    if indexes is not None:
        idx = jnp.pad(indexes.astype(jnp.int32),
                      ((0, 0), (0, S_pad - S)))[:, :, None]            # (B,S_pad,1)
    else:
        idx = jnp.ones((B, S_pad, 1), jnp.int32)   # original module defaults type=1

    # --- pack parameters (matmul weights in bf16 for the MXU) ---
    w_in = jnp.pad(params["w_in"], ((0, RP - RESP), (0, 0))).astype(bf16)
    b_in = params["b_in"].reshape(1, H)
    pos = jnp.pad(params["pos_emb"], ((0, S_pad - S), (0, 0)))
    tt = params["type_table"]
    eg = params["emb_ln_g"].reshape(1, H)
    eb = params["emb_ln_b"].reshape(1, H)

    def stack_w(name):
        return jnp.stack([l[name] for l in params["layers"]]).astype(bf16)

    def stack_v(name):
        return jnp.stack([l[name].reshape(1, -1) for l in params["layers"]])

    wq, wk, wv, wo = stack_w("wq"), stack_w("wk"), stack_w("wv"), stack_w("wo")
    wf1, wf2 = stack_w("w_ff1"), stack_w("w_ff2")
    bq, bk, bv, bo = stack_v("bq"), stack_v("bk"), stack_v("bv"), stack_v("bo")
    ln1g, ln1b = stack_v("ln1_g"), stack_v("ln1_b")
    bf1, bf2 = stack_v("b_ff1"), stack_v("b_ff2")
    ln2g, ln2b = stack_v("ln2_g"), stack_v("ln2_b")

    w_out = jnp.pad(params["w_out"], ((0, 0), (0, RP - RESP))).astype(bf16)
    b_out = jnp.pad(params["b_out"], (0, RP - RESP)).reshape(1, RP)

    per_b = lambda shape: pl.BlockSpec(shape, lambda b: (b, 0, 0))
    full = lambda shape: pl.BlockSpec(shape, lambda b, _n=None, _s=shape: (0,) * len(_s))

    out_padded = pl.pallas_call(
        functools.partial(_fill_mask_kernel,
                          num_layers=L, num_heads=num_heads, seq_real=S),
        out_shape=jax.ShapeDtypeStruct((B, S_pad, RP), jnp.float32),
        grid=(B,),
        in_specs=[
            per_b((1, S_pad, 1)),                 # token-type ids
            per_b((1, S_pad, RP)),                # corrupted responses (padded)
            full((RP, H)), full((1, H)),          # response2embedding
            full((S_pad, H)), full((2, H)),       # positional / token-type tables
            full((1, H)), full((1, H)),           # embedding LayerNorm
            full((L, H, H)), full((L, 1, H)),     # wq, bq
            full((L, H, H)), full((L, 1, H)),     # wk, bk
            full((L, H, H)), full((L, 1, H)),     # wv, bv
            full((L, H, H)), full((L, 1, H)),     # wo, bo
            full((L, 1, H)), full((L, 1, H)),     # ln1 gamma/beta
            full((L, H, F)), full((L, 1, F)),     # ff1
            full((L, F, H)), full((L, 1, H)),     # ff2
            full((L, 1, H)), full((L, 1, H)),     # ln2 gamma/beta
            full((H, RP)), full((1, RP)),         # vector2response (padded N)
        ],
        out_specs=per_b((1, S_pad, RP)),
        compiler_params=pltpu.CompilerParams(
            dimension_semantics=("parallel",)),   # megacore split on v7x
    )(idx, x, w_in, b_in, pos, tt, eg, eb,
      wq, bq, wk, bk, wv, bv, wo, bo, ln1g, ln1b,
      wf1, bf1, wf2, bf2, ln2g, ln2b, w_out, b_out)

    return {"restored_resp": out_padded[:, :S, :RESP]}


# ----------------------------------------------------------------------------
# Synthetic deterministic parameters (scaled-down bert-base encoder).
# ----------------------------------------------------------------------------
def init_params(key, *, seq, resp_dim, hidden, ffn, num_layers):
    def nrm(k, shape):
        return (jax.random.normal(k, shape, jnp.float32) * 0.02).astype(jnp.float32)

    keys = iter(jax.random.split(key, 64))
    p = {
        "w_in": nrm(next(keys), (resp_dim, hidden)),        # response2embedding
        "b_in": jnp.zeros((hidden,), jnp.float32),
        "pos_emb": nrm(next(keys), (seq, hidden)),           # position_embeddings rows 0..seq-1
        "type_table": nrm(next(keys), (2, hidden)),          # token_type_embeddings
        "emb_ln_g": jnp.ones((hidden,), jnp.float32),
        "emb_ln_b": jnp.zeros((hidden,), jnp.float32),
        "w_out": nrm(next(keys), (hidden, resp_dim)),         # vector2response
        "b_out": jnp.zeros((resp_dim,), jnp.float32),
        "layers": [],
    }
    for _ in range(num_layers):
        p["layers"].append({
            "wq": nrm(next(keys), (hidden, hidden)), "bq": jnp.zeros((hidden,), jnp.float32),
            "wk": nrm(next(keys), (hidden, hidden)), "bk": jnp.zeros((hidden,), jnp.float32),
            "wv": nrm(next(keys), (hidden, hidden)), "bv": jnp.zeros((hidden,), jnp.float32),
            "wo": nrm(next(keys), (hidden, hidden)), "bo": jnp.zeros((hidden,), jnp.float32),
            "ln1_g": jnp.ones((hidden,), jnp.float32), "ln1_b": jnp.zeros((hidden,), jnp.float32),
            "w_ff1": nrm(next(keys), (hidden, ffn)), "b_ff1": jnp.zeros((ffn,), jnp.float32),
            "w_ff2": nrm(next(keys), (ffn, hidden)), "b_ff2": jnp.zeros((hidden,), jnp.float32),
            "ln2_g": jnp.ones((hidden,), jnp.float32), "ln2_b": jnp.zeros((hidden,), jnp.float32),
        })
    return p


# ----------------------------------------------------------------------------
if __name__ == "__main__":
    B, S, RESP = 2, 10, 100                       # seq=10, response dim=100 as in the module
    H, NUM_HEADS, FFN, LAYERS = 128, 4, 256, 2    # scaled-down bert-base encoder
    # TODO(synk): full bert-base (12 layers, H=768, FF=3072) would need per-layer
    # weight streaming on v7x (64 MiB VMEM) instead of whole-model residency.

    root = jax.random.PRNGKey(0)
    k_params, k_x, k_idx = jax.random.split(root, 3)

    params = init_params(k_params, seq=S, resp_dim=RESP, hidden=H,
                         ffn=FFN, num_layers=LAYERS)
    corrupted_responses = jax.random.normal(k_x, (B, S, RESP), jnp.float32)
    indexes = jax.random.randint(k_idx, (B, S), 0, 2)

    fwd = jax.jit(functools.partial(fill_mask_forward, num_heads=NUM_HEADS))
    out = fwd(params, corrupted_responses, indexes)
    restored = jax.block_until_ready(out["restored_resp"])

    assert restored.shape == (B, S, RESP)
    assert restored.dtype == jnp.float32
    assert bool(jnp.all(jnp.isfinite(restored)))
    print("KERNEL_OK")
</pallas_src>

<mosaic_0001>
module attributes {stable_mosaic.version = 11 : i64} {
  func.func @_fill_mask_kernel(%arg0: i32, %arg1: memref<1x16x1xi32, #tpu.memory_space<vmem>>, %arg2: memref<1x16x128xf32, #tpu.memory_space<vmem>>, %arg3: memref<128x128xbf16, #tpu.memory_space<vmem>>, %arg4: memref<1x128xf32, #tpu.memory_space<vmem>>, %arg5: memref<16x128xf32, #tpu.memory_space<vmem>>, %arg6: memref<2x128xf32, #tpu.memory_space<vmem>>, %arg7: memref<1x128xf32, #tpu.memory_space<vmem>>, %arg8: memref<1x128xf32, #tpu.memory_space<vmem>>, %arg9: memref<2x128x128xbf16, #tpu.memory_space<vmem>>, %arg10: memref<2x1x128xf32, #tpu.memory_space<vmem>>, %arg11: memref<2x128x128xbf16, #tpu.memory_space<vmem>>, %arg12: memref<2x1x128xf32, #tpu.memory_space<vmem>>, %arg13: memref<2x128x128xbf16, #tpu.memory_space<vmem>>, %arg14: memref<2x1x128xf32, #tpu.memory_space<vmem>>, %arg15: memref<2x128x128xbf16, #tpu.memory_space<vmem>>, %arg16: memref<2x1x128xf32, #tpu.memory_space<vmem>>, %arg17: memref<2x1x128xf32, #tpu.memory_space<vmem>>, %arg18: memref<2x1x128xf32, #tpu.memory_space<vmem>>, %arg19: memref<2x128x256xbf16, #tpu.memory_space<vmem>>, %arg20: memref<2x1x256xf32, #tpu.memory_space<vmem>>, %arg21: memref<2x256x128xbf16, #tpu.memory_space<vmem>>, %arg22: memref<2x1x128xf32, #tpu.memory_space<vmem>>, %arg23: memref<2x1x128xf32, #tpu.memory_space<vmem>>, %arg24: memref<2x1x128xf32, #tpu.memory_space<vmem>>, %arg25: memref<128x128xbf16, #tpu.memory_space<vmem>>, %arg26: memref<1x128xf32, #tpu.memory_space<vmem>>, %arg27: memref<1x16x128xf32, #tpu.memory_space<vmem>>) attributes {dimension_semantics = [#tpu.dimension_semantics<parallel>], iteration_bounds = array<i64: 2>, scalar_prefetch = 0 : i64, scratch_operands = 0 : i64, tpu.core_type = #tpu.core_type<tc>, window_params = [{transform_indices = @transform_0, window_bounds = array<i64: 1, 16, 1>}, {transform_indices = @transform_1, window_bounds = array<i64: 1, 16, 128>}, {pipeline_mode = #tpu.pipeline_mode<synchronous>, transform_indices = @transform_2, window_bounds = array<i64: 128, 128>}, {pipeline_mode = #tpu.pipeline_mode<synchronous>, transform_indices = @transform_3, window_bounds = array<i64: 1, 128>}, {pipeline_mode = #tpu.pipeline_mode<synchronous>, transform_indices = @transform_4, window_bounds = array<i64: 16, 128>}, {pipeline_mode = #tpu.pipeline_mode<synchronous>, transform_indices = @transform_5, window_bounds = array<i64: 2, 128>}, {pipeline_mode = #tpu.pipeline_mode<synchronous>, transform_indices = @transform_6, window_bounds = array<i64: 1, 128>}, {pipeline_mode = #tpu.pipeline_mode<synchronous>, transform_indices = @transform_7, window_bounds = array<i64: 1, 128>}, {pipeline_mode = #tpu.pipeline_mode<synchronous>, transform_indices = @transform_8, window_bounds = array<i64: 2, 128, 128>}, {pipeline_mode = #tpu.pipeline_mode<synchronous>, transform_indices = @transform_9, window_bounds = array<i64: 2, 1, 128>}, {pipeline_mode = #tpu.pipeline_mode<synchronous>, transform_indices = @transform_10, window_bounds = array<i64: 2, 128, 128>}, {pipeline_mode = #tpu.pipeline_mode<synchronous>, transform_indices = @transform_11, window_bounds = array<i64: 2, 1, 128>}, {pipeline_mode = #tpu.pipeline_mode<synchronous>, transform_indices = @transform_12, window_bounds = array<i64: 2, 128, 128>}, {pipeline_mode = #tpu.pipeline_mode<synchronous>, transform_indices = @transform_13, window_bounds = array<i64: 2, 1, 128>}, {pipeline_mode = #tpu.pipeline_mode<synchronous>, transform_indices = @transform_14, window_bounds = array<i64: 2, 128, 128>}, {pipeline_mode = #tpu.pipeline_mode<synchronous>, transform_indices = @transform_15, window_bounds = array<i64: 2, 1, 128>}, {pipeline_mode = #tpu.pipeline_mode<synchronous>, transform_indices = @transform_16, window_bounds = array<i64: 2, 1, 128>}, {pipeline_mode = #tpu.pipeline_mode<synchronous>, transform_indices = @transform_17, window_bounds = array<i64: 2, 1, 128>}, {pipeline_mode = #tpu.pipeline_mode<synchronous>, transform_indices = @transform_18, window_bounds = array<i64: 2, 128, 256>}, {pipeline_mode = #tpu.pipeline_mode<synchronous>, transform_indices = @transform_19, window_bounds = array<i64: 2, 1, 256>}, {pipeline_mode = #tpu.pipeline_mode<synchronous>, transform_indices = @transform_20, window_bounds = array<i64: 2, 256, 128>}, {pipeline_mode = #tpu.pipeline_mode<synchronous>, transform_indices = @transform_21, window_bounds = array<i64: 2, 1, 128>}, {pipeline_mode = #tpu.pipeline_mode<synchronous>, transform_indices = @transform_22, window_bounds = array<i64: 2, 1, 128>}, {pipeline_mode = #tpu.pipeline_mode<synchronous>, transform_indices = @transform_23, window_bounds = array<i64: 2, 1, 128>}, {pipeline_mode = #tpu.pipeline_mode<synchronous>, transform_indices = @transform_24, window_bounds = array<i64: 128, 128>}, {pipeline_mode = #tpu.pipeline_mode<synchronous>, transform_indices = @transform_25, window_bounds = array<i64: 1, 128>}, {transform_indices = @transform_26, window_bounds = array<i64: 1, 16, 128>}]} {
    %c0 = arith.constant 0 : index
    %c0_0 = arith.constant 0 : index
    %c0_1 = arith.constant 0 : index
    %0 = vector.load %arg2[%c0, %c0_0, %c0_1] : memref<1x16x128xf32, #tpu.memory_space<vmem>>, vector<1x16x128xf32>
    %1 = vector.shape_cast %0 : vector<1x16x128xf32> to vector<16x128xf32>
    %2 = arith.truncf %1 : vector<16x128xf32> to vector<16x128xbf16>
    %c0_2 = arith.constant 0 : index
    %c0_3 = arith.constant 0 : index
    %3 = vector.load %arg3[%c0_2, %c0_3] : memref<128x128xbf16, #tpu.memory_space<vmem>>, vector<128x128xbf16>
    %cst = arith.constant dense<0.000000e+00> : vector<16x128xf32>
    %4 = tpu.matmul %2, %3, %cst {dimension_numbers = #tpu.dot_dimension_numbers<[1], [0], [0], [1], [0, 0, 1, 1], [], []>} : vector<16x128xbf16>, vector<128x128xbf16>, vector<16x128xf32> -> vector<16x128xf32>
    %c0_4 = arith.constant 0 : index
    %c0_5 = arith.constant 0 : index
    %5 = vector.load %arg4[%c0_4, %c0_5] : memref<1x128xf32, #tpu.memory_space<vmem>>, vector<1x128xf32>
    %6 = vector.broadcast %5 : vector<1x128xf32> to vector<16x128xf32>
    %7 = arith.addf %4, %6 : vector<16x128xf32>
    %c0_6 = arith.constant 0 : index
    %c0_7 = arith.constant 0 : index
    %c0_8 = arith.constant 0 : index
    %8 = vector.load %arg1[%c0_6, %c0_7, %c0_8] : memref<1x16x1xi32, #tpu.memory_space<vmem>>, vector<1x16x1xi32>
    %9 = vector.shape_cast %8 : vector<1x16x1xi32> to vector<16x1xi32>
    %c1_i32 = arith.constant 1 : i32
    %10 = vector.broadcast %c1_i32 : i32 to vector<16x1xi32>
    %11 = arith.cmpi eq, %9, %10 : vector<16x1xi32>
    %c1 = arith.constant 1 : index
    %c0_9 = arith.constant 0 : index
    %12 = vector.load %arg6[%c1, %c0_9] : memref<2x128xf32, #tpu.memory_space<vmem>>, vector<1x128xf32>
    %c0_10 = arith.constant 0 : index
    %c0_11 = arith.constant 0 : index
    %13 = vector.load %arg6[%c0_10, %c0_11] : memref<2x128xf32, #tpu.memory_space<vmem>>, vector<1x128xf32>
    %14 = vector.shape_cast %11 : vector<16x1xi1> to vector<16x1xi1>
    %15 = vector.broadcast %14 : vector<16x1xi1> to vector<16x128xi1>
    %16 = vector.shape_cast %12 : vector<1x128xf32> to vector<1x128xf32>
    %17 = vector.broadcast %16 : vector<1x128xf32> to vector<16x128xf32>
    %18 = vector.shape_cast %13 : vector<1x128xf32> to vector<1x128xf32>
    %19 = vector.broadcast %18 : vector<1x128xf32> to vector<16x128xf32>
    %20 = arith.select %15, %17, %19 : vector<16x128xi1>, vector<16x128xf32>
    %c0_12 = arith.constant 0 : index
    %c0_13 = arith.constant 0 : index
    %21 = vector.load %arg5[%c0_12, %c0_13] : memref<16x128xf32, #tpu.memory_space<vmem>>, vector<16x128xf32>
    %22 = arith.addf %7, %21 : vector<16x128xf32>
    %23 = arith.addf %22, %20 : vector<16x128xf32>
    %c0_14 = arith.constant 0 : index
    %c0_15 = arith.constant 0 : index
    %24 = vector.load %arg7[%c0_14, %c0_15] : memref<1x128xf32, #tpu.memory_space<vmem>>, vector<1x128xf32>
    %c0_16 = arith.constant 0 : index
    %c0_17 = arith.constant 0 : index
    %25 = vector.load %arg8[%c0_16, %c0_17] : memref<1x128xf32, #tpu.memory_space<vmem>>, vector<1x128xf32>
    %cst_18 = arith.constant dense<0.000000e+00> : vector<16xf32>
    %26 = vector.multi_reduction <add>, %23, %cst_18 [1] : vector<16x128xf32> to vector<16xf32>
    %27 = vector.shape_cast %26 : vector<16xf32> to vector<16x1xf32>
    %cst_19 = arith.constant 1.280000e+02 : f32
    %28 = vector.broadcast %cst_19 : f32 to vector<16x1xf32>
    %29 = arith.divf %27, %28 : vector<16x1xf32>
    %30 = vector.broadcast %29 : vector<16x1xf32> to vector<16x128xf32>
    %31 = arith.subf %23, %30 : vector<16x128xf32>
    %32 = arith.mulf %31, %31 : vector<16x128xf32>
    %cst_20 = arith.constant dense<0.000000e+00> : vector<16xf32>
    %33 = vector.multi_reduction <add>, %32, %cst_20 [1] : vector<16x128xf32> to vector<16xf32>
    %34 = vector.shape_cast %33 : vector<16xf32> to vector<16x1xf32>
    %cst_21 = arith.constant 1.280000e+02 : f32
    %35 = vector.broadcast %cst_21 : f32 to vector<16x1xf32>
    %36 = arith.divf %34, %35 : vector<16x1xf32>
    %37 = vector.broadcast %29 : vector<16x1xf32> to vector<16x128xf32>
    %38 = arith.subf %23, %37 : vector<16x128xf32>
    %cst_22 = arith.constant 9.99999996E-13 : f32
    %39 = vector.broadcast %cst_22 : f32 to vector<16x1xf32>
    %40 = arith.addf %36, %39 : vector<16x1xf32>
    %41 = math.rsqrt %40 : vector<16x1xf32>
    %42 = vector.broadcast %41 : vector<16x1xf32> to vector<16x128xf32>
    %43 = arith.mulf %38, %42 : vector<16x128xf32>
    %44 = vector.broadcast %24 : vector<1x128xf32> to vector<16x128xf32>
    %45 = arith.mulf %43, %44 : vector<16x128xf32>
    %46 = vector.broadcast %25 : vector<1x128xf32> to vector<16x128xf32>
    %47 = arith.addf %45, %46 : vector<16x128xf32>
    %48 = tpu.iota {dimensions = array<i32: 1>} : vector<16x16xi32>
    %c10_i32 = arith.constant 10 : i32
    %49 = vector.broadcast %c10_i32 : i32 to vector<16x16xi32>
    %50 = arith.cmpi slt, %48, %49 : vector<16x16xi32>
    %c0_23 = arith.constant 0 : index
    %c0_24 = arith.constant 0 : index
    %c0_25 = arith.constant 0 : index
    %51 = vector.load %arg9[%c0_23, %c0_24, %c0_25] : memref<2x128x128xbf16, #tpu.memory_space<vmem>>, vector<1x128x128xbf16>
    %52 = vector.shape_cast %51 : vector<1x128x128xbf16> to vector<128x128xbf16>
    %c0_26 = arith.constant 0 : index
    %c0_27 = arith.constant 0 : index
    %c0_28 = arith.constant 0 : index
    %53 = vector.load %arg11[%c0_26, %c0_27, %c0_28] : memref<2x128x128xbf16, #tpu.memory_space<vmem>>, vector<1x128x128xbf16>
    %54 = vector.shape_cast %53 : vector<1x128x128xbf16> to vector<128x128xbf16>
    %c0_29 = arith.constant 0 : index
    %c0_30 = arith.constant 0 : index
    %c0_31 = arith.constant 0 : index
    %55 = vector.load %arg13[%c0_29, %c0_30, %c0_31] : memref<2x128x128xbf16, #tpu.memory_space<vmem>>, vector<1x128x128xbf16>
    %56 = vector.shape_cast %55 : vector<1x128x128xbf16> to vector<128x128xbf16>
    %c0_32 = arith.constant 0 : index
    %c0_33 = arith.constant 0 : index
    %c0_34 = arith.constant 0 : index
    %57 = vector.load %arg15[%c0_32, %c0_33, %c0_34] : memref<2x128x128xbf16, #tpu.memory_space<vmem>>, vector<1x128x128xbf16>
    %58 = vector.shape_cast %57 : vector<1x128x128xbf16> to vector<128x128xbf16>
    %59 = arith.truncf %47 : vector<16x128xf32> to vector<16x128xbf16>
    %cst_35 = arith.constant dense<0.000000e+00> : vector<16x128xf32>
    %60 = tpu.matmul %59, %52, %cst_35 {dimension_numbers = #tpu.dot_dimension_numbers<[1], [0], [0], [1], [0, 0, 1, 1], [], []>} : vector<16x128xbf16>, vector<128x128xbf16>, vector<16x128xf32> -> vector<16x128xf32>
    %c0_36 = arith.constant 0 : index
    %c0_37 = arith.constant 0 : index
    %c0_38 = arith.constant 0 : index
    %61 = vector.load %arg10[%c0_36, %c0_37, %c0_38] : memref<2x1x128xf32, #tpu.memory_space<vmem>>, vector<1x1x128xf32>
    %62 = vector.shape_cast %61 : vector<1x1x128xf32> to vector<1x128xf32>
    %63 = vector.broadcast %62 : vector<1x128xf32> to vector<16x128xf32>
    %64 = arith.addf %60, %63 : vector<16x128xf32>
    %cst_39 = arith.constant dense<0.000000e+00> : vector<16x128xf32>
    %65 = tpu.matmul %59, %54, %cst_39 {dimension_numbers = #tpu.dot_dimension_numbers<[1], [0], [0], [1], [0, 0, 1, 1], [], []>} : vector<16x128xbf16>, vector<128x128xbf16>, vector<16x128xf32> -> vector<16x128xf32>
    %c0_40 = arith.constant 0 : index
    %c0_41 = arith.constant 0 : index
    %c0_42 = arith.constant 0 : index
    %66 = vector.load %arg12[%c0_40, %c0_41, %c0_42] : memref<2x1x128xf32, #tpu.memory_space<vmem>>, vector<1x1x128xf32>
    %67 = vector.shape_cast %66 : vector<1x1x128xf32> to vector<1x128xf32>
    %68 = vector.broadcast %67 : vector<1x128xf32> to vector<16x128xf32>
    %69 = arith.addf %65, %68 : vector<16x128xf32>
    %cst_43 = arith.constant dense<0.000000e+00> : vector<16x128xf32>
    %70 = tpu.matmul %59, %56, %cst_43 {dimension_numbers = #tpu.dot_dimension_numbers<[1], [0], [0], [1], [0, 0, 1, 1], [], []>} : vector<16x128xbf16>, vector<128x128xbf16>, vector<16x128xf32> -> vector<16x128xf32>
    %c0_44 = arith.constant 0 : index
    %c0_45 = arith.constant 0 : index
    %c0_46 = arith.constant 0 : index
    %71 = vector.load %arg14[%c0_44, %c0_45, %c0_46] : memref<2x1x128xf32, #tpu.memory_space<vmem>>, vector<1x1x128xf32>
    %72 = vector.shape_cast %71 : vector<1x1x128xf32> to vector<1x128xf32>
    %73 = vector.broadcast %72 : vector<1x128xf32> to vector<16x128xf32>
    %74 = arith.addf %70, %73 : vector<16x128xf32>
    %cst_47 = arith.constant 0.000000e+00 : f32
    %75 = vector.broadcast %cst_47 : f32 to vector<16x128xf32>
    %76 = vector.extract_strided_slice %64 {offsets = [0, 0], sizes = [16, 32], strides = [1, 1]} : vector<16x128xf32> to vector<16x32xf32>
    %77 = arith.truncf %76 : vector<16x32xf32> to vector<16x32xbf16>
    %78 = vector.extract_strided_slice %69 {offsets = [0, 0], sizes = [16, 32], strides = [1, 1]} : vector<16x128xf32> to vector<16x32xf32>
    %79 = arith.truncf %78 : vector<16x32xf32> to vector<16x32xbf16>
    %cst_48 = arith.constant dense<0.000000e+00> : vector<16x16xf32>
    %80 = tpu.matmul %77, %79, %cst_48 {dimension_numbers = #tpu.dot_dimension_numbers<[1], [1], [0], [0], [0, 0, 1, 0], [], []>} : vector<16x32xbf16>, vector<16x32xbf16>, vector<16x16xf32> -> vector<16x16xf32>
    %cst_49 = arith.constant 0.176776692 : f32
    %81 = vector.broadcast %cst_49 : f32 to vector<16x16xf32>
    %82 = arith.mulf %80, %81 : vector<16x16xf32>
    %cst_50 = arith.constant -1.000000e+30 : f32
    %83 = vector.broadcast %cst_50 : f32 to vector<16x16xf32>
    %84 = arith.select %50, %82, %83 : vector<16x16xi1>, vector<16x16xf32>
    %cst_51 = arith.constant dense<0xFF800000> : vector<16xf32>
    %85 = vector.multi_reduction <maximumf>, %84, %cst_51 [1] : vector<16x16xf32> to vector<16xf32>
    %86 = vector.shape_cast %85 : vector<16xf32> to vector<16x1xf32>
    %87 = vector.broadcast %86 : vector<16x1xf32> to vector<16x16xf32>
    %88 = arith.subf %84, %87 : vector<16x16xf32>
    %89 = math.exp %88 : vector<16x16xf32>
    %cst_52 = arith.constant dense<0.000000e+00> : vector<16xf32>
    %90 = vector.multi_reduction <add>, %89, %cst_52 [1] : vector<16x16xf32> to vector<16xf32>
    %91 = vector.shape_cast %90 : vector<16xf32> to vector<16x1xf32>
    %92 = tpu.reciprocal %91 {approx = true} : vector<16x1xf32> -> vector<16x1xf32>
    %93 = vector.broadcast %92 : vector<16x1xf32> to vector<16x16xf32>
    %94 = arith.mulf %89, %93 : vector<16x16xf32>
    %95 = arith.truncf %94 : vector<16x16xf32> to vector<16x16xbf16>
    %96 = vector.extract_strided_slice %74 {offsets = [0, 0], sizes = [16, 32], strides = [1, 1]} : vector<16x128xf32> to vector<16x32xf32>
    %97 = arith.truncf %96 : vector<16x32xf32> to vector<16x32xbf16>
    %cst_53 = arith.constant dense<0.000000e+00> : vector<16x32xf32>
    %98 = tpu.matmul %95, %97, %cst_53 {dimension_numbers = #tpu.dot_dimension_numbers<[1], [0], [0], [1], [0, 0, 1, 1], [], []>} : vector<16x16xbf16>, vector<16x32xbf16>, vector<16x32xf32> -> vector<16x32xf32>
    %99 = arith.truncf %98 : vector<16x32xf32> to vector<16x32xbf16>
    %100 = vector.extract_strided_slice %58 {offsets = [0, 0], sizes = [32, 128], strides = [1, 1]} : vector<128x128xbf16> to vector<32x128xbf16>
    %cst_54 = arith.constant dense<0.000000e+00> : vector<16x128xf32>
    %101 = tpu.matmul %99, %100, %cst_54 {dimension_numbers = #tpu.dot_dimension_numbers<[1], [0], [0], [1], [0, 0, 1, 1], [], []>} : vector<16x32xbf16>, vector<32x128xbf16>, vector<16x128xf32> -> vector<16x128xf32>
    %102 = arith.addf %75, %101 : vector<16x128xf32>
    %103 = vector.extract_strided_slice %64 {offsets = [0, 32], sizes = [16, 32], strides = [1, 1]} : vector<16x128xf32> to vector<16x32xf32>
    %104 = arith.truncf %103 : vector<16x32xf32> to vector<16x32xbf16>
    %105 = vector.extract_strided_slice %69 {offsets = [0, 32], sizes = [16, 32], strides = [1, 1]} : vector<16x128xf32> to vector<16x32xf32>
    %106 = arith.truncf %105 : vector<16x32xf32> to vector<16x32xbf16>
    %cst_55 = arith.constant dense<0.000000e+00> : vector<16x16xf32>
    %107 = tpu.matmul %104, %106, %cst_55 {dimension_numbers = #tpu.dot_dimension_numbers<[1], [1], [0], [0], [0, 0, 1, 0], [], []>} : vector<16x32xbf16>, vector<16x32xbf16>, vector<16x16xf32> -> vector<16x16xf32>
    %cst_56 = arith.constant 0.176776692 : f32
    %108 = vector.broadcast %cst_56 : f32 to vector<16x16xf32>
    %109 = arith.mulf %107, %108 : vector<16x16xf32>
    %cst_57 = arith.constant -1.000000e+30 : f32
    %110 = vector.broadcast %cst_57 : f32 to vector<16x16xf32>
    %111 = arith.select %50, %109, %110 : vector<16x16xi1>, vector<16x16xf32>
    %cst_58 = arith.constant dense<0xFF800000> : vector<16xf32>
    %112 = vector.multi_reduction <maximumf>, %111, %cst_58 [1] : vector<16x16xf32> to vector<16xf32>
    %113 = vector.shape_cast %112 : vector<16xf32> to vector<16x1xf32>
    %114 = vector.broadcast %113 : vector<16x1xf32> to vector<16x16xf32>
    %115 = arith.subf %111, %114 : vector<16x16xf32>
    %116 = math.exp %115 : vector<16x16xf32>
    %cst_59 = arith.constant dense<0.000000e+00> : vector<16xf32>
    %117 = vector.multi_reduction <add>, %116, %cst_59 [1] : vector<16x16xf32> to vector<16xf32>
    %118 = vector.shape_cast %117 : vector<16xf32> to vector<16x1xf32>
    %119 = tpu.reciprocal %118 {approx = true} : vector<16x1xf32> -> vector<16x1xf32>
    %120 = vector.broadcast %119 : vector<16x1xf32> to vector<16x16xf32>
    %121 = arith.mulf %116, %120 : vector<16x16xf32>
    %122 = arith.truncf %121 : vector<16x16xf32> to vector<16x16xbf16>
    %123 = vector.extract_strided_slice %74 {offsets = [0, 32], sizes = [16, 32], strides = [1, 1]} : vector<16x128xf32> to vector<16x32xf32>
    %124 = arith.truncf %123 : vector<16x32xf32> to vector<16x32xbf16>
    %cst_60 = arith.constant dense<0.000000e+00> : vector<16x32xf32>
    %125 = tpu.matmul %122, %124, %cst_60 {dimension_numbers = #tpu.dot_dimension_numbers<[1], [0], [0], [1], [0, 0, 1, 1], [], []>} : vector<16x16xbf16>, vector<16x32xbf16>, vector<16x32xf32> -> vector<16x32xf32>
    %126 = arith.truncf %125 : vector<16x32xf32> to vector<16x32xbf16>
    %127 = vector.extract_strided_slice %58 {offsets = [32, 0], sizes = [32, 128], strides = [1, 1]} : vector<128x128xbf16> to vector<32x128xbf16>
    %cst_61 = arith.constant dense<0.000000e+00> : vector<16x128xf32>
    %128 = tpu.matmul %126, %127, %cst_61 {dimension_numbers = #tpu.dot_dimension_numbers<[1], [0], [0], [1], [0, 0, 1, 1], [], []>} : vector<16x32xbf16>, vector<32x128xbf16>, vector<16x128xf32> -> vector<16x128xf32>
    %129 = arith.addf %102, %128 : vector<16x128xf32>
    %130 = vector.extract_strided_slice %64 {offsets = [0, 64], sizes = [16, 32], strides = [1, 1]} : vector<16x128xf32> to vector<16x32xf32>
    %131 = arith.truncf %130 : vector<16x32xf32> to vector<16x32xbf16>
    %132 = vector.extract_strided_slice %69 {offsets = [0, 64], sizes = [16, 32], strides = [1, 1]} : vector<16x128xf32> to vector<16x32xf32>
    %133 = arith.truncf %132 : vector<16x32xf32> to vector<16x32xbf16>
    %cst_62 = arith.constant dense<0.000000e+00> : vector<16x16xf32>
    %134 = tpu.matmul %131, %133, %cst_62 {dimension_numbers = #tpu.dot_dimension_numbers<[1], [1], [0], [0], [0, 0, 1, 0], [], []>} : vector<16x32xbf16>, vector<16x32xbf16>, vector<16x16xf32> -> vector<16x16xf32>
    %cst_63 = arith.constant 0.176776692 : f32
    %135 = vector.broadcast %cst_63 : f32 to vector<16x16xf32>
    %136 = arith.mulf %134, %135 : vector<16x16xf32>
    %cst_64 = arith.constant -1.000000e+30 : f32
    %137 = vector.broadcast %cst_64 : f32 to vector<16x16xf32>
    %138 = arith.select %50, %136, %137 : vector<16x16xi1>, vector<16x16xf32>
    %cst_65 = arith.constant dense<0xFF800000> : vector<16xf32>
    %139 = vector.multi_reduction <maximumf>, %138, %cst_65 [1] : vector<16x16xf32> to vector<16xf32>
    %140 = vector.shape_cast %139 : vector<16xf32> to vector<16x1xf32>
    %141 = vector.broadcast %140 : vector<16x1xf32> to vector<16x16xf32>
    %142 = arith.subf %138, %141 : vector<16x16xf32>
    %143 = math.exp %142 : vector<16x16xf32>
    %cst_66 = arith.constant dense<0.000000e+00> : vector<16xf32>
    %144 = vector.multi_reduction <add>, %143, %cst_66 [1] : vector<16x16xf32> to vector<16xf32>
    %145 = vector.shape_cast %144 : vector<16xf32> to vector<16x1xf32>
    %146 = tpu.reciprocal %145 {approx = true} : vector<16x1xf32> -> vector<16x1xf32>
    %147 = vector.broadcast %146 : vector<16x1xf32> to vector<16x16xf32>
    %148 = arith.mulf %143, %147 : vector<16x16xf32>
    %149 = arith.truncf %148 : vector<16x16xf32> to vector<16x16xbf16>
    %150 = vector.extract_strided_slice %74 {offsets = [0, 64], sizes = [16, 32], strides = [1, 1]} : vector<16x128xf32> to vector<16x32xf32>
    %151 = arith.truncf %150 : vector<16x32xf32> to vector<16x32xbf16>
    %cst_67 = arith.constant dense<0.000000e+00> : vector<16x32xf32>
    %152 = tpu.matmul %149, %151, %cst_67 {dimension_numbers = #tpu.dot_dimension_numbers<[1], [0], [0], [1], [0, 0, 1, 1], [], []>} : vector<16x16xbf16>, vector<16x32xbf16>, vector<16x32xf32> -> vector<16x32xf32>
    %153 = arith.truncf %152 : vector<16x32xf32> to vector<16x32xbf16>
    %154 = vector.extract_strided_slice %58 {offsets = [64, 0], sizes = [32, 128], strides = [1, 1]} : vector<128x128xbf16> to vector<32x128xbf16>
    %cst_68 = arith.constant dense<0.000000e+00> : vector<16x128xf32>
    %155 = tpu.matmul %153, %154, %cst_68 {dimension_numbers = #tpu.dot_dimension_numbers<[1], [0], [0], [1], [0, 0, 1, 1], [], []>} : vector<16x32xbf16>, vector<32x128xbf16>, vector<16x128xf32> -> vector<16x128xf32>
    %156 = arith.addf %129, %155 : vector<16x128xf32>
    %157 = vector.extract_strided_slice %64 {offsets = [0, 96], sizes = [16, 32], strides = [1, 1]} : vector<16x128xf32> to vector<16x32xf32>
    %158 = arith.truncf %157 : vector<16x32xf32> to vector<16x32xbf16>
    %159 = vector.extract_strided_slice %69 {offsets = [0, 96], sizes = [16, 32], strides = [1, 1]} : vector<16x128xf32> to vector<16x32xf32>
    %160 = arith.truncf %159 : vector<16x32xf32> to vector<16x32xbf16>
    %cst_69 = arith.constant dense<0.000000e+00> : vector<16x16xf32>
    %161 = tpu.matmul %158, %160, %cst_69 {dimension_numbers = #tpu.dot_dimension_numbers<[1], [1], [0], [0], [0, 0, 1, 0], [], []>} : vector<16x32xbf16>, vector<16x32xbf16>, vector<16x16xf32> -> vector<16x16xf32>
    %cst_70 = arith.constant 0.176776692 : f32
    %162 = vector.broadcast %cst_70 : f32 to vector<16x16xf32>
    %163 = arith.mulf %161, %162 : vector<16x16xf32>
    %cst_71 = arith.constant -1.000000e+30 : f32
    %164 = vector.broadcast %cst_71 : f32 to vector<16x16xf32>
    %165 = arith.select %50, %163, %164 : vector<16x16xi1>, vector<16x16xf32>
    %cst_72 = arith.constant dense<0xFF800000> : vector<16xf32>
    %166 = vector.multi_reduction <maximumf>, %165, %cst_72 [1] : vector<16x16xf32> to vector<16xf32>
    %167 = vector.shape_cast %166 : vector<16xf32> to vector<16x1xf32>
    %168 = vector.broadcast %167 : vector<16x1xf32> to vector<16x16xf32>
    %169 = arith.subf %165, %168 : vector<16x16xf32>
    %170 = math.exp %169 : vector<16x16xf32>
    %cst_73 = arith.constant dense<0.000000e+00> : vector<16xf32>
    %171 = vector.multi_reduction <add>, %170, %cst_73 [1] : vector<16x16xf32> to vector<16xf32>
    %172 = vector.shape_cast %171 : vector<16xf32> to vector<16x1xf32>
    %173 = tpu.reciprocal %172 {approx = true} : vector<16x1xf32> -> vector<16x1xf32>
    %174 = vector.broadcast %173 : vector<16x1xf32> to vector<16x16xf32>
    %175 = arith.mulf %170, %174 : vector<16x16xf32>
    %176 = arith.truncf %175 : vector<16x16xf32> to vector<16x16xbf16>
    %177 = vector.extract_strided_slice %74 {offsets = [0, 96], sizes = [16, 32], strides = [1, 1]} : vector<16x128xf32> to vector<16x32xf32>
    %178 = arith.truncf %177 : vector<16x32xf32> to vector<16x32xbf16>
    %cst_74 = arith.constant dense<0.000000e+00> : vector<16x32xf32>
    %179 = tpu.matmul %176, %178, %cst_74 {dimension_numbers = #tpu.dot_dimension_numbers<[1], [0], [0], [1], [0, 0, 1, 1], [], []>} : vector<16x16xbf16>, vector<16x32xbf16>, vector<16x32xf32> -> vector<16x32xf32>
    %180 = arith.truncf %179 : vector<16x32xf32> to vector<16x32xbf16>
    %181 = vector.extract_strided_slice %58 {offsets = [96, 0], sizes = [32, 128], strides = [1, 1]} : vector<128x128xbf16> to vector<32x128xbf16>
    %cst_75 = arith.constant dense<0.000000e+00> : vector<16x128xf32>
    %182 = tpu.matmul %180, %181, %cst_75 {dimension_numbers = #tpu.dot_dimension_numbers<[1], [0], [0], [1], [0, 0, 1, 1], [], []>} : vector<16x32xbf16>, vector<32x128xbf16>, vector<16x128xf32> -> vector<16x128xf32>
    %183 = arith.addf %156, %182 : vector<16x128xf32>
    %c0_76 = arith.constant 0 : index
    %c0_77 = arith.constant 0 : index
    %c0_78 = arith.constant 0 : index
    %184 = vector.load %arg16[%c0_76, %c0_77, %c0_78] : memref<2x1x128xf32, #tpu.memory_space<vmem>>, vector<1x1x128xf32>
    %185 = vector.shape_cast %184 : vector<1x1x128xf32> to vector<1x128xf32>
    %186 = vector.broadcast %185 : vector<1x128xf32> to vector<16x128xf32>
    %187 = arith.addf %183, %186 : vector<16x128xf32>
    %188 = arith.addf %187, %47 : vector<16x128xf32>
    %c0_79 = arith.constant 0 : index
    %c0_80 = arith.constant 0 : index
    %c0_81 = arith.constant 0 : index
    %189 = vector.load %arg17[%c0_79, %c0_80, %c0_81] : memref<2x1x128xf32, #tpu.memory_space<vmem>>, vector<1x1x128xf32>
    %190 = vector.shape_cast %189 : vector<1x1x128xf32> to vector<1x128xf32>
    %c0_82 = arith.constant 0 : index
    %c0_83 = arith.constant 0 : index
    %c0_84 = arith.constant 0 : index
    %191 = vector.load %arg18[%c0_82, %c0_83, %c0_84] : memref<2x1x128xf32, #tpu.memory_space<vmem>>, vector<1x1x128xf32>
    %192 = vector.shape_cast %191 : vector<1x1x128xf32> to vector<1x128xf32>
    %cst_85 = arith.constant dense<0.000000e+00> : vector<16xf32>
    %193 = vector.multi_reduction <add>, %188, %cst_85 [1] : vector<16x128xf32> to vector<16xf32>
    %194 = vector.shape_cast %193 : vector<16xf32> to vector<16x1xf32>
    %cst_86 = arith.constant 1.280000e+02 : f32
    %195 = vector.broadcast %cst_86 : f32 to vector<16x1xf32>
    %196 = arith.divf %194, %195 : vector<16x1xf32>
    %197 = vector.broadcast %196 : vector<16x1xf32> to vector<16x128xf32>
    %198 = arith.subf %188, %197 : vector<16x128xf32>
    %199 = arith.mulf %198, %198 : vector<16x128xf32>
    %cst_87 = arith.constant dense<0.000000e+00> : vector<16xf32>
    %200 = vector.multi_reduction <add>, %199, %cst_87 [1] : vector<16x128xf32> to vector<16xf32>
    %201 = vector.shape_cast %200 : vector<16xf32> to vector<16x1xf32>
    %cst_88 = arith.constant 1.280000e+02 : f32
    %202 = vector.broadcast %cst_88 : f32 to vector<16x1xf32>
    %203 = arith.divf %201, %202 : vector<16x1xf32>
    %204 = vector.broadcast %196 : vector<16x1xf32> to vector<16x128xf32>
    %205 = arith.subf %188, %204 : vector<16x128xf32>
    %cst_89 = arith.constant 9.99999996E-13 : f32
    %206 = vector.broadcast %cst_89 : f32 to vector<16x1xf32>
    %207 = arith.addf %203, %206 : vector<16x1xf32>
    %208 = math.rsqrt %207 : vector<16x1xf32>
    %209 = vector.broadcast %208 : vector<16x1xf32> to vector<16x128xf32>
    %210 = arith.mulf %205, %209 : vector<16x128xf32>
    %211 = vector.broadcast %190 : vector<1x128xf32> to vector<16x128xf32>
    %212 = arith.mulf %210, %211 : vector<16x128xf32>
    %213 = vector.broadcast %192 : vector<1x128xf32> to vector<16x128xf32>
    %214 = arith.addf %212, %213 : vector<16x128xf32>
    %215 = arith.truncf %214 : vector<16x128xf32> to vector<16x128xbf16>
    %c0_90 = arith.constant 0 : index
    %c0_91 = arith.constant 0 : index
    %c0_92 = arith.constant 0 : index
    %216 = vector.load %arg19[%c0_90, %c0_91, %c0_92] : memref<2x128x256xbf16, #tpu.memory_space<vmem>>, vector<1x128x256xbf16>
    %217 = vector.shape_cast %216 : vector<1x128x256xbf16> to vector<128x256xbf16>
    %cst_93 = arith.constant dense<0.000000e+00> : vector<16x256xf32>
    %218 = tpu.matmul %215, %217, %cst_93 {dimension_numbers = #tpu.dot_dimension_numbers<[1], [0], [0], [1], [0, 0, 1, 1], [], []>} : vector<16x128xbf16>, vector<128x256xbf16>, vector<16x256xf32> -> vector<16x256xf32>
    %c0_94 = arith.constant 0 : index
    %c0_95 = arith.constant 0 : index
    %c0_96 = arith.constant 0 : index
    %219 = vector.load %arg20[%c0_94, %c0_95, %c0_96] : memref<2x1x256xf32, #tpu.memory_space<vmem>>, vector<1x1x256xf32>
    %220 = vector.shape_cast %219 : vector<1x1x256xf32> to vector<1x256xf32>
    %221 = vector.broadcast %220 : vector<1x256xf32> to vector<16x256xf32>
    %222 = arith.addf %218, %221 : vector<16x256xf32>
    %cst_97 = arith.constant 5.000000e-01 : f32
    %223 = vector.broadcast %cst_97 : f32 to vector<16x256xf32>
    %224 = arith.mulf %223, %222 : vector<16x256xf32>
    %cst_98 = arith.constant 0.707106769 : f32
    %225 = vector.broadcast %cst_98 : f32 to vector<16x256xf32>
    %226 = arith.mulf %222, %225 : vector<16x256xf32>
    %cst_99 = arith.constant 0.000000e+00 : f32
    %227 = vector.broadcast %cst_99 : f32 to vector<16x256xf32>
    %228 = arith.cmpf oge, %226, %227 : vector<16x256xf32>
    %cst_100 = arith.constant 1.000000e+00 : f32
    %cst_101 = arith.constant -1.000000e+00 : f32
    %229 = vector.broadcast %cst_100 : f32 to vector<16x256xf32>
    %230 = vector.broadcast %cst_101 : f32 to vector<16x256xf32>
    %231 = arith.select %228, %229, %230 : vector<16x256xi1>, vector<16x256xf32>
    %232 = math.absf %226 : vector<16x256xf32>
    %cst_102 = arith.constant 0.327591091 : f32
    %233 = vector.broadcast %cst_102 : f32 to vector<16x256xf32>
    %234 = arith.mulf %233, %232 : vector<16x256xf32>
    %cst_103 = arith.constant 1.000000e+00 : f32
    %235 = vector.broadcast %cst_103 : f32 to vector<16x256xf32>
    %236 = arith.addf %235, %234 : vector<16x256xf32>
    %cst_104 = arith.constant 1.000000e+00 : f32
    %237 = vector.broadcast %cst_104 : f32 to vector<16x256xf32>
    %238 = arith.divf %237, %236 : vector<16x256xf32>
    %cst_105 = arith.constant 1.06140542 : f32
    %239 = vector.broadcast %cst_105 : f32 to vector<16x256xf32>
    %240 = arith.mulf %238, %239 : vector<16x256xf32>
    %cst_106 = arith.constant -1.45315206 : f32
    %241 = vector.broadcast %cst_106 : f32 to vector<16x256xf32>
    %242 = arith.addf %241, %240 : vector<16x256xf32>
    %243 = arith.mulf %238, %242 : vector<16x256xf32>
    %cst_107 = arith.constant 1.42141378 : f32
    %244 = vector.broadcast %cst_107 : f32 to vector<16x256xf32>
    %245 = arith.addf %244, %243 : vector<16x256xf32>
    %246 = arith.mulf %238, %245 : vector<16x256xf32>
    %cst_108 = arith.constant -0.284496725 : f32
    %247 = vector.broadcast %cst_108 : f32 to vector<16x256xf32>
    %248 = arith.addf %247, %246 : vector<16x256xf32>
    %249 = arith.mulf %238, %248 : vector<16x256xf32>
    %cst_109 = arith.constant 0.254829586 : f32
    %250 = vector.broadcast %cst_109 : f32 to vector<16x256xf32>
    %251 = arith.addf %250, %249 : vector<16x256xf32>
    %252 = arith.mulf %238, %251 : vector<16x256xf32>
    %cst_110 = arith.constant 0.000000e+00 : f32
    %253 = vector.broadcast %cst_110 : f32 to vector<16x256xf32>
    %254 = arith.subf %253, %232 : vector<16x256xf32>
    %255 = arith.mulf %254, %232 : vector<16x256xf32>
    %256 = math.exp %255 : vector<16x256xf32>
    %257 = arith.mulf %252, %256 : vector<16x256xf32>
    %cst_111 = arith.constant 1.000000e+00 : f32
    %258 = vector.broadcast %cst_111 : f32 to vector<16x256xf32>
    %259 = arith.subf %258, %257 : vector<16x256xf32>
    %260 = arith.mulf %231, %259 : vector<16x256xf32>
    %cst_112 = arith.constant 1.000000e+00 : f32
    %261 = vector.broadcast %cst_112 : f32 to vector<16x256xf32>
    %262 = arith.addf %261, %260 : vector<16x256xf32>
    %263 = arith.mulf %224, %262 : vector<16x256xf32>
    %264 = arith.truncf %263 : vector<16x256xf32> to vector<16x256xbf16>
    %c0_113 = arith.constant 0 : index
    %c0_114 = arith.constant 0 : index
    %c0_115 = arith.constant 0 : index
    %265 = vector.load %arg21[%c0_113, %c0_114, %c0_115] : memref<2x256x128xbf16, #tpu.memory_space<vmem>>, vector<1x256x128xbf16>
    %266 = vector.shape_cast %265 : vector<1x256x128xbf16> to vector<256x128xbf16>
    %cst_116 = arith.constant dense<0.000000e+00> : vector<16x128xf32>
    %267 = tpu.matmul %264, %266, %cst_116 {dimension_numbers = #tpu.dot_dimension_numbers<[1], [0], [0], [1], [0, 0, 1, 1], [], []>} : vector<16x256xbf16>, vector<256x128xbf16>, vector<16x128xf32> -> vector<16x128xf32>
    %c0_117 = arith.constant 0 : index
    %c0_118 = arith.constant 0 : index
    %c0_119 = arith.constant 0 : index
    %268 = vector.load %arg22[%c0_117, %c0_118, %c0_119] : memref<2x1x128xf32, #tpu.memory_space<vmem>>, vector<1x1x128xf32>
    %269 = vector.shape_cast %268 : vector<1x1x128xf32> to vector<1x128xf32>
    %270 = vector.broadcast %269 : vector<1x128xf32> to vector<16x128xf32>
    %271 = arith.addf %267, %270 : vector<16x128xf32>
    %272 = arith.addf %271, %214 : vector<16x128xf32>
    %c0_120 = arith.constant 0 : index
    %c0_121 = arith.constant 0 : index
    %c0_122 = arith.constant 0 : index
    %273 = vector.load %arg23[%c0_120, %c0_121, %c0_122] : memref<2x1x128xf32, #tpu.memory_space<vmem>>, vector<1x1x128xf32>
    %274 = vector.shape_cast %273 : vector<1x1x128xf32> to vector<1x128xf32>
    %c0_123 = arith.constant 0 : index
    %c0_124 = arith.constant 0 : index
    %c0_125 = arith.constant 0 : index
    %275 = vector.load %arg24[%c0_123, %c0_124, %c0_125] : memref<2x1x128xf32, #tpu.memory_space<vmem>>, vector<1x1x128xf32>
    %276 = vector.shape_cast %275 : vector<1x1x128xf32> to vector<1x128xf32>
    %cst_126 = arith.constant dense<0.000000e+00> : vector<16xf32>
    %277 = vector.multi_reduction <add>, %272, %cst_126 [1] : vector<16x128xf32> to vector<16xf32>
    %278 = vector.shape_cast %277 : vector<16xf32> to vector<16x1xf32>
    %cst_127 = arith.constant 1.280000e+02 : f32
    %279 = vector.broadcast %cst_127 : f32 to vector<16x1xf32>
    %280 = arith.divf %278, %279 : vector<16x1xf32>
    %281 = vector.broadcast %280 : vector<16x1xf32> to vector<16x128xf32>
    %282 = arith.subf %272, %281 : vector<16x128xf32>
    %283 = arith.mulf %282, %282 : vector<16x128xf32>
    %cst_128 = arith.constant dense<0.000000e+00> : vector<16xf32>
    %284 = vector.multi_reduction <add>, %283, %cst_128 [1] : vector<16x128xf32> to vector<16xf32>
    %285 = vector.shape_cast %284 : vector<16xf32> to vector<16x1xf32>
    %cst_129 = arith.constant 1.280000e+02 : f32
    %286 = vector.broadcast %cst_129 : f32 to vector<16x1xf32>
    %287 = arith.divf %285, %286 : vector<16x1xf32>
    %288 = vector.broadcast %280 : vector<16x1xf32> to vector<16x128xf32>
    %289 = arith.subf %272, %288 : vector<16x128xf32>
    %cst_130 = arith.constant 9.99999996E-13 : f32
    %290 = vector.broadcast %cst_130 : f32 to vector<16x1xf32>
    %291 = arith.addf %287, %290 : vector<16x1xf32>
    %292 = math.rsqrt %291 : vector<16x1xf32>
    %293 = vector.broadcast %292 : vector<16x1xf32> to vector<16x128xf32>
    %294 = arith.mulf %289, %293 : vector<16x128xf32>
    %295 = vector.broadcast %274 : vector<1x128xf32> to vector<16x128xf32>
    %296 = arith.mulf %294, %295 : vector<16x128xf32>
    %297 = vector.broadcast %276 : vector<1x128xf32> to vector<16x128xf32>
    %298 = arith.addf %296, %297 : vector<16x128xf32>
    %c1_131 = arith.constant 1 : index
    %c0_132 = arith.constant 0 : index
    %c0_133 = arith.constant 0 : index
    %299 = vector.load %arg9[%c1_131, %c0_132, %c0_133] : memref<2x128x128xbf16, #tpu.memory_space<vmem>>, vector<1x128x128xbf16>
    %300 = vector.shape_cast %299 : vector<1x128x128xbf16> to vector<128x128xbf16>
    %c1_134 = arith.constant 1 : index
    %c0_135 = arith.constant 0 : index
    %c0_136 = arith.constant 0 : index
    %301 = vector.load %arg11[%c1_134, %c0_135, %c0_136] : memref<2x128x128xbf16, #tpu.memory_space<vmem>>, vector<1x128x128xbf16>
    %302 = vector.shape_cast %301 : vector<1x128x128xbf16> to vector<128x128xbf16>
    %c1_137 = arith.constant 1 : index
    %c0_138 = arith.constant 0 : index
    %c0_139 = arith.constant 0 : index
    %303 = vector.load %arg13[%c1_137, %c0_138, %c0_139] : memref<2x128x128xbf16, #tpu.memory_space<vmem>>, vector<1x128x128xbf16>
    %304 = vector.shape_cast %303 : vector<1x128x128xbf16> to vector<128x128xbf16>
    %c1_140 = arith.constant 1 : index
    %c0_141 = arith.constant 0 : index
    %c0_142 = arith.constant 0 : index
    %305 = vector.load %arg15[%c1_140, %c0_141, %c0_142] : memref<2x128x128xbf16, #tpu.memory_space<vmem>>, vector<1x128x128xbf16>
    %306 = vector.shape_cast %305 : vector<1x128x128xbf16> to vector<128x128xbf16>
    %307 = arith.truncf %298 : vector<16x128xf32> to vector<16x128xbf16>
    %cst_143 = arith.constant dense<0.000000e+00> : vector<16x128xf32>
    %308 = tpu.matmul %307, %300, %cst_143 {dimension_numbers = #tpu.dot_dimension_numbers<[1], [0], [0], [1], [0, 0, 1, 1], [], []>} : vector<16x128xbf16>, vector<128x128xbf16>, vector<16x128xf32> -> vector<16x128xf32>
    %c1_144 = arith.constant 1 : index
    %c0_145 = arith.constant 0 : index
    %c0_146 = arith.constant 0 : index
    %309 = vector.load %arg10[%c1_144, %c0_145, %c0_146] : memref<2x1x128xf32, #tpu.memory_space<vmem>>, vector<1x1x128xf32>
    %310 = vector.shape_cast %309 : vector<1x1x128xf32> to vector<1x128xf32>
    %311 = vector.broadcast %310 : vector<1x128xf32> to vector<16x128xf32>
    %312 = arith.addf %308, %311 : vector<16x128xf32>
    %cst_147 = arith.constant dense<0.000000e+00> : vector<16x128xf32>
    %313 = tpu.matmul %307, %302, %cst_147 {dimension_numbers = #tpu.dot_dimension_numbers<[1], [0], [0], [1], [0, 0, 1, 1], [], []>} : vector<16x128xbf16>, vector<128x128xbf16>, vector<16x128xf32> -> vector<16x128xf32>
    %c1_148 = arith.constant 1 : index
    %c0_149 = arith.constant 0 : index
    %c0_150 = arith.constant 0 : index
    %314 = vector.load %arg12[%c1_148, %c0_149, %c0_150] : memref<2x1x128xf32, #tpu.memory_space<vmem>>, vector<1x1x128xf32>
    %315 = vector.shape_cast %314 : vector<1x1x128xf32> to vector<1x128xf32>
    %316 = vector.broadcast %315 : vector<1x128xf32> to vector<16x128xf32>
    %317 = arith.addf %313, %316 : vector<16x128xf32>
    %cst_151 = arith.constant dense<0.000000e+00> : vector<16x128xf32>
    %318 = tpu.matmul %307, %304, %cst_151 {dimension_numbers = #tpu.dot_dimension_numbers<[1], [0], [0], [1], [0, 0, 1, 1], [], []>} : vector<16x128xbf16>, vector<128x128xbf16>, vector<16x128xf32> -> vector<16x128xf32>
    %c1_152 = arith.constant 1 : index
    %c0_153 = arith.constant 0 : index
    %c0_154 = arith.constant 0 : index
    %319 = vector.load %arg14[%c1_152, %c0_153, %c0_154] : memref<2x1x128xf32, #tpu.memory_space<vmem>>, vector<1x1x128xf32>
    %320 = vector.shape_cast %319 : vector<1x1x128xf32> to vector<1x128xf32>
    %321 = vector.broadcast %320 : vector<1x128xf32> to vector<16x128xf32>
    %322 = arith.addf %318, %321 : vector<16x128xf32>
    %cst_155 = arith.constant 0.000000e+00 : f32
    %323 = vector.broadcast %cst_155 : f32 to vector<16x128xf32>
    %324 = vector.extract_strided_slice %312 {offsets = [0, 0], sizes = [16, 32], strides = [1, 1]} : vector<16x128xf32> to vector<16x32xf32>
    %325 = arith.truncf %324 : vector<16x32xf32> to vector<16x32xbf16>
    %326 = vector.extract_strided_slice %317 {offsets = [0, 0], sizes = [16, 32], strides = [1, 1]} : vector<16x128xf32> to vector<16x32xf32>
    %327 = arith.truncf %326 : vector<16x32xf32> to vector<16x32xbf16>
    %cst_156 = arith.constant dense<0.000000e+00> : vector<16x16xf32>
    %328 = tpu.matmul %325, %327, %cst_156 {dimension_numbers = #tpu.dot_dimension_numbers<[1], [1], [0], [0], [0, 0, 1, 0], [], []>} : vector<16x32xbf16>, vector<16x32xbf16>, vector<16x16xf32> -> vector<16x16xf32>
    %cst_157 = arith.constant 0.176776692 : f32
    %329 = vector.broadcast %cst_157 : f32 to vector<16x16xf32>
    %330 = arith.mulf %328, %329 : vector<16x16xf32>
    %cst_158 = arith.constant -1.000000e+30 : f32
    %331 = vector.broadcast %cst_158 : f32 to vector<16x16xf32>
    %332 = arith.select %50, %330, %331 : vector<16x16xi1>, vector<16x16xf32>
    %cst_159 = arith.constant dense<0xFF800000> : vector<16xf32>
    %333 = vector.multi_reduction <maximumf>, %332, %cst_159 [1] : vector<16x16xf32> to vector<16xf32>
    %334 = vector.shape_cast %333 : vector<16xf32> to vector<16x1xf32>
    %335 = vector.broadcast %334 : vector<16x1xf32> to vector<16x16xf32>
    %336 = arith.subf %332, %335 : vector<16x16xf32>
    %337 = math.exp %336 : vector<16x16xf32>
    %cst_160 = arith.constant dense<0.000000e+00> : vector<16xf32>
    %338 = vector.multi_reduction <add>, %337, %cst_160 [1] : vector<16x16xf32> to vector<16xf32>
    %339 = vector.shape_cast %338 : vector<16xf32> to vector<16x1xf32>
    %340 = tpu.reciprocal %339 {approx = true} : vector<16x1xf32> -> vector<16x1xf32>
    %341 = vector.broadcast %340 : vector<16x1xf32> to vector<16x16xf32>
    %342 = arith.mulf %337, %341 : vector<16x16xf32>
    %343 = arith.truncf %342 : vector<16x16xf32> to vector<16x16xbf16>
    %344 = vector.extract_strided_slice %322 {offsets = [0, 0], sizes = [16, 32], strides = [1, 1]} : vector<16x128xf32> to vector<16x32xf32>
    %345 = arith.truncf %344 : vector<16x32xf32> to vector<16x32xbf16>
    %cst_161 = arith.constant dense<0.000000e+00> : vector<16x32xf32>
    %346 = tpu.matmul %343, %345, %cst_161 {dimension_numbers = #tpu.dot_dimension_numbers<[1], [0], [0], [1], [0, 0, 1, 1], [], []>} : vector<16x16xbf16>, vector<16x32xbf16>, vector<16x32xf32> -> vector<16x32xf32>
    %347 = arith.truncf %346 : vector<16x32xf32> to vector<16x32xbf16>
    %348 = vector.extract_strided_slice %306 {offsets = [0, 0], sizes = [32, 128], strides = [1, 1]} : vector<128x128xbf16> to vector<32x128xbf16>
    %cst_162 = arith.constant dense<0.000000e+00> : vector<16x128xf32>
    %349 = tpu.matmul %347, %348, %cst_162 {dimension_numbers = #tpu.dot_dimension_numbers<[1], [0], [0], [1], [0, 0, 1, 1], [], []>} : vector<16x32xbf16>, vector<32x128xbf16>, vector<16x128xf32> -> vector<16x128xf32>
    %350 = arith.addf %323, %349 : vector<16x128xf32>
    %351 = vector.extract_strided_slice %312 {offsets = [0, 32], sizes = [16, 32], strides = [1, 1]} : vector<16x128xf32> to vector<16x32xf32>
    %352 = arith.truncf %351 : vector<16x32xf32> to vector<16x32xbf16>
    %353 = vector.extract_strided_slice %317 {offsets = [0, 32], sizes = [16, 32], strides = [1, 1]} : vector<16x128xf32> to vector<16x32xf32>
    %354 = arith.truncf %353 : vector<16x32xf32> to vector<16x32xbf16>
    %cst_163 = arith.constant dense<0.000000e+00> : vector<16x16xf32>
    %355 = tpu.matmul %352, %354, %cst_163 {dimension_numbers = #tpu.dot_dimension_numbers<[1], [1], [0], [0], [0, 0, 1, 0], [], []>} : vector<16x32xbf16>, vector<16x32xbf16>, vector<16x16xf32> -> vector<16x16xf32>
    %cst_164 = arith.constant 0.176776692 : f32
    %356 = vector.broadcast %cst_164 : f32 to vector<16x16xf32>
    %357 = arith.mulf %355, %356 : vector<16x16xf32>
    %cst_165 = arith.constant -1.000000e+30 : f32
    %358 = vector.broadcast %cst_165 : f32 to vector<16x16xf32>
    %359 = arith.select %50, %357, %358 : vector<16x16xi1>, vector<16x16xf32>
    %cst_166 = arith.constant dense<0xFF800000> : vector<16xf32>
    %360 = vector.multi_reduction <maximumf>, %359, %cst_166 [1] : vector<16x16xf32> to vector<16xf32>
    %361 = vector.shape_cast %360 : vector<16xf32> to vector<16x1xf32>
    %362 = vector.broadcast %361 : vector<16x1xf32> to vector<16x16xf32>
    %363 = arith.subf %359, %362 : vector<16x16xf32>
    %364 = math.exp %363 : vector<16x16xf32>
    %cst_167 = arith.constant dense<0.000000e+00> : vector<16xf32>
    %365 = vector.multi_reduction <add>, %364, %cst_167 [1] : vector<16x16xf32> to vector<16xf32>
    %366 = vector.shape_cast %365 : vector<16xf32> to vector<16x1xf32>
    %367 = tpu.reciprocal %366 {approx = true} : vector<16x1xf32> -> vector<16x1xf32>
    %368 = vector.broadcast %367 : vector<16x1xf32> to vector<16x16xf32>
    %369 = arith.mulf %364, %368 : vector<16x16xf32>
    %370 = arith.truncf %369 : vector<16x16xf32> to vector<16x16xbf16>
    %371 = vector.extract_strided_slice %322 {offsets = [0, 32], sizes = [16, 32], strides = [1, 1]} : vector<16x128xf32> to vector<16x32xf32>
    %372 = arith.truncf %371 : vector<16x32xf32> to vector<16x32xbf16>
    %cst_168 = arith.constant dense<0.000000e+00> : vector<16x32xf32>
    %373 = tpu.matmul %370, %372, %cst_168 {dimension_numbers = #tpu.dot_dimension_numbers<[1], [0], [0], [1], [0, 0, 1, 1], [], []>} : vector<16x16xbf16>, vector<16x32xbf16>, vector<16x32xf32> -> vector<16x32xf32>
    %374 = arith.truncf %373 : vector<16x32xf32> to vector<16x32xbf16>
    %375 = vector.extract_strided_slice %306 {offsets = [32, 0], sizes = [32, 128], strides = [1, 1]} : vector<128x128xbf16> to vector<32x128xbf16>
    %cst_169 = arith.constant dense<0.000000e+00> : vector<16x128xf32>
    %376 = tpu.matmul %374, %375, %cst_169 {dimension_numbers = #tpu.dot_dimension_numbers<[1], [0], [0], [1], [0, 0, 1, 1], [], []>} : vector<16x32xbf16>, vector<32x128xbf16>, vector<16x128xf32> -> vector<16x128xf32>
    %377 = arith.addf %350, %376 : vector<16x128xf32>
    %378 = vector.extract_strided_slice %312 {offsets = [0, 64], sizes = [16, 32], strides = [1, 1]} : vector<16x128xf32> to vector<16x32xf32>
    %379 = arith.truncf %378 : vector<16x32xf32> to vector<16x32xbf16>
    %380 = vector.extract_strided_slice %317 {offsets = [0, 64], sizes = [16, 32], strides = [1, 1]} : vector<16x128xf32> to vector<16x32xf32>
    %381 = arith.truncf %380 : vector<16x32xf32> to vector<16x32xbf16>
    %cst_170 = arith.constant dense<0.000000e+00> : vector<16x16xf32>
    %382 = tpu.matmul %379, %381, %cst_170 {dimension_numbers = #tpu.dot_dimension_numbers<[1], [1], [0], [0], [0, 0, 1, 0], [], []>} : vector<16x32xbf16>, vector<16x32xbf16>, vector<16x16xf32> -> vector<16x16xf32>
    %cst_171 = arith.constant 0.176776692 : f32
    %383 = vector.broadcast %cst_171 : f32 to vector<16x16xf32>
    %384 = arith.mulf %382, %383 : vector<16x16xf32>
    %cst_172 = arith.constant -1.000000e+30 : f32
    %385 = vector.broadcast %cst_172 : f32 to vector<16x16xf32>
    %386 = arith.select %50, %384, %385 : vector<16x16xi1>, vector<16x16xf32>
    %cst_173 = arith.constant dense<0xFF800000> : vector<16xf32>
    %387 = vector.multi_reduction <maximumf>, %386, %cst_173 [1] : vector<16x16xf32> to vector<16xf32>
    %388 = vector.shape_cast %387 : vector<16xf32> to vector<16x1xf32>
    %389 = vector.broadcast %388 : vector<16x1xf32> to vector<16x16xf32>
    %390 = arith.subf %386, %389 : vector<16x16xf32>
    %391 = math.exp %390 : vector<16x16xf32>
    %cst_174 = arith.constant dense<0.000000e+00> : vector<16xf32>
    %392 = vector.multi_reduction <add>, %391, %cst_174 [1] : vector<16x16xf32> to vector<16xf32>
    %393 = vector.shape_cast %392 : vector<16xf32> to vector<16x1xf32>
    %394 = tpu.reciprocal %393 {approx = true} : vector<16x1xf32> -> vector<16x1xf32>
    %395 = vector.broadcast %394 : vector<16x1xf32> to vector<16x16xf32>
    %396 = arith.mulf %391, %395 : vector<16x16xf32>
    %397 = arith.truncf %396 : vector<16x16xf32> to vector<16x16xbf16>
    %398 = vector.extract_strided_slice %322 {offsets = [0, 64], sizes = [16, 32], strides = [1, 1]} : vector<16x128xf32> to vector<16x32xf32>
    %399 = arith.truncf %398 : vector<16x32xf32> to vector<16x32xbf16>
    %cst_175 = arith.constant dense<0.000000e+00> : vector<16x32xf32>
    %400 = tpu.matmul %397, %399, %cst_175 {dimension_numbers = #tpu.dot_dimension_numbers<[1], [0], [0], [1], [0, 0, 1, 1], [], []>} : vector<16x16xbf16>, vector<16x32xbf16>, vector<16x32xf32> -> vector<16x32xf32>
    %401 = arith.truncf %400 : vector<16x32xf32> to vector<16x32xbf16>
    %402 = vector.extract_strided_slice %306 {offsets = [64, 0], sizes = [32, 128], strides = [1, 1]} : vector<128x128xbf16> to vector<32x128xbf16>
    %cst_176 = arith.constant dense<0.000000e+00> : vector<16x128xf32>
    %403 = tpu.matmul %401, %402, %cst_176 {dimension_numbers = #tpu.dot_dimension_numbers<[1], [0], [0], [1], [0, 0, 1, 1], [], []>} : vector<16x32xbf16>, vector<32x128xbf16>, vector<16x128xf32> -> vector<16x128xf32>
    %404 = arith.addf %377, %403 : vector<16x128xf32>
    %405 = vector.extract_strided_slice %312 {offsets = [0, 96], sizes = [16, 32], strides = [1, 1]} : vector<16x128xf32> to vector<16x32xf32>
    %406 = arith.truncf %405 : vector<16x32xf32> to vector<16x32xbf16>
    %407 = vector.extract_strided_slice %317 {offsets = [0, 96], sizes = [16, 32], strides = [1, 1]} : vector<16x128xf32> to vector<16x32xf32>
    %408 = arith.truncf %407 : vector<16x32xf32> to vector<16x32xbf16>
    %cst_177 = arith.constant dense<0.000000e+00> : vector<16x16xf32>
    %409 = tpu.matmul %406, %408, %cst_177 {dimension_numbers = #tpu.dot_dimension_numbers<[1], [1], [0], [0], [0, 0, 1, 0], [], []>} : vector<16x32xbf16>, vector<16x32xbf16>, vector<16x16xf32> -> vector<16x16xf32>
    %cst_178 = arith.constant 0.176776692 : f32
    %410 = vector.broadcast %cst_178 : f32 to vector<16x16xf32>
    %411 = arith.mulf %409, %410 : vector<16x16xf32>
    %cst_179 = arith.constant -1.000000e+30 : f32
    %412 = vector.broadcast %cst_179 : f32 to vector<16x16xf32>
    %413 = arith.select %50, %411, %412 : vector<16x16xi1>, vector<16x16xf32>
    %cst_180 = arith.constant dense<0xFF800000> : vector<16xf32>
    %414 = vector.multi_reduction <maximumf>, %413, %cst_180 [1] : vector<16x16xf32> to vector<16xf32>
    %415 = vector.shape_cast %414 : vector<16xf32> to vector<16x1xf32>
    %416 = vector.broadcast %415 : vector<16x1xf32> to vector<16x16xf32>
    %417 = arith.subf %413, %416 : vector<16x16xf32>
    %418 = math.exp %417 : vector<16x16xf32>
    %cst_181 = arith.constant dense<0.000000e+00> : vector<16xf32>
    %419 = vector.multi_reduction <add>, %418, %cst_181 [1] : vector<16x16xf32> to vector<16xf32>
    %420 = vector.shape_cast %419 : vector<16xf32> to vector<16x1xf32>
    %421 = tpu.reciprocal %420 {approx = true} : vector<16x1xf32> -> vector<16x1xf32>
    %422 = vector.broadcast %421 : vector<16x1xf32> to vector<16x16xf32>
    %423 = arith.mulf %418, %422 : vector<16x16xf32>
    %424 = arith.truncf %423 : vector<16x16xf32> to vector<16x16xbf16>
    %425 = vector.extract_strided_slice %322 {offsets = [0, 96], sizes = [16, 32], strides = [1, 1]} : vector<16x128xf32> to vector<16x32xf32>
    %426 = arith.truncf %425 : vector<16x32xf32> to vector<16x32xbf16>
    %cst_182 = arith.constant dense<0.000000e+00> : vector<16x32xf32>
    %427 = tpu.matmul %424, %426, %cst_182 {dimension_numbers = #tpu.dot_dimension_numbers<[1], [0], [0], [1], [0, 0, 1, 1], [], []>} : vector<16x16xbf16>, vector<16x32xbf16>, vector<16x32xf32> -> vector<16x32xf32>
    %428 = arith.truncf %427 : vector<16x32xf32> to vector<16x32xbf16>
    %429 = vector.extract_strided_slice %306 {offsets = [96, 0], sizes = [32, 128], strides = [1, 1]} : vector<128x128xbf16> to vector<32x128xbf16>
    %cst_183 = arith.constant dense<0.000000e+00> : vector<16x128xf32>
    %430 = tpu.matmul %428, %429, %cst_183 {dimension_numbers = #tpu.dot_dimension_numbers<[1], [0], [0], [1], [0, 0, 1, 1], [], []>} : vector<16x32xbf16>, vector<32x128xbf16>, vector<16x128xf32> -> vector<16x128xf32>
    %431 = arith.addf %404, %430 : vector<16x128xf32>
    %c1_184 = arith.constant 1 : index
    %c0_185 = arith.constant 0 : index
    %c0_186 = arith.constant 0 : index
    %432 = vector.load %arg16[%c1_184, %c0_185, %c0_186] : memref<2x1x128xf32, #tpu.memory_space<vmem>>, vector<1x1x128xf32>
    %433 = vector.shape_cast %432 : vector<1x1x128xf32> to vector<1x128xf32>
    %434 = vector.broadcast %433 : vector<1x128xf32> to vector<16x128xf32>
    %435 = arith.addf %431, %434 : vector<16x128xf32>
    %436 = arith.addf %435, %298 : vector<16x128xf32>
    %c1_187 = arith.constant 1 : index
    %c0_188 = arith.constant 0 : index
    %c0_189 = arith.constant 0 : index
    %437 = vector.load %arg17[%c1_187, %c0_188, %c0_189] : memref<2x1x128xf32, #tpu.memory_space<vmem>>, vector<1x1x128xf32>
    %438 = vector.shape_cast %437 : vector<1x1x128xf32> to vector<1x128xf32>
    %c1_190 = arith.constant 1 : index
    %c0_191 = arith.constant 0 : index
    %c0_192 = arith.constant 0 : index
    %439 = vector.load %arg18[%c1_190, %c0_191, %c0_192] : memref<2x1x128xf32, #tpu.memory_space<vmem>>, vector<1x1x128xf32>
    %440 = vector.shape_cast %439 : vector<1x1x128xf32> to vector<1x128xf32>
    %cst_193 = arith.constant dense<0.000000e+00> : vector<16xf32>
    %441 = vector.multi_reduction <add>, %436, %cst_193 [1] : vector<16x128xf32> to vector<16xf32>
    %442 = vector.shape_cast %441 : vector<16xf32> to vector<16x1xf32>
    %cst_194 = arith.constant 1.280000e+02 : f32
    %443 = vector.broadcast %cst_194 : f32 to vector<16x1xf32>
    %444 = arith.divf %442, %443 : vector<16x1xf32>
    %445 = vector.broadcast %444 : vector<16x1xf32> to vector<16x128xf32>
    %446 = arith.subf %436, %445 : vector<16x128xf32>
    %447 = arith.mulf %446, %446 : vector<16x128xf32>
    %cst_195 = arith.constant dense<0.000000e+00> : vector<16xf32>
    %448 = vector.multi_reduction <add>, %447, %cst_195 [1] : vector<16x128xf32> to vector<16xf32>
    %449 = vector.shape_cast %448 : vector<16xf32> to vector<16x1xf32>
    %cst_196 = arith.constant 1.280000e+02 : f32
    %450 = vector.broadcast %cst_196 : f32 to vector<16x1xf32>
    %451 = arith.divf %449, %450 : vector<16x1xf32>
    %452 = vector.broadcast %444 : vector<16x1xf32> to vector<16x128xf32>
    %453 = arith.subf %436, %452 : vector<16x128xf32>
    %cst_197 = arith.constant 9.99999996E-13 : f32
    %454 = vector.broadcast %cst_197 : f32 to vector<16x1xf32>
    %455 = arith.addf %451, %454 : vector<16x1xf32>
    %456 = math.rsqrt %455 : vector<16x1xf32>
    %457 = vector.broadcast %456 : vector<16x1xf32> to vector<16x128xf32>
    %458 = arith.mulf %453, %457 : vector<16x128xf32>
    %459 = vector.broadcast %438 : vector<1x128xf32> to vector<16x128xf32>
    %460 = arith.mulf %458, %459 : vector<16x128xf32>
    %461 = vector.broadcast %440 : vector<1x128xf32> to vector<16x128xf32>
    %462 = arith.addf %460, %461 : vector<16x128xf32>
    %463 = arith.truncf %462 : vector<16x128xf32> to vector<16x128xbf16>
    %c1_198 = arith.constant 1 : index
    %c0_199 = arith.constant 0 : index
    %c0_200 = arith.constant 0 : index
    %464 = vector.load %arg19[%c1_198, %c0_199, %c0_200] : memref<2x128x256xbf16, #tpu.memory_space<vmem>>, vector<1x128x256xbf16>
    %465 = vector.shape_cast %464 : vector<1x128x256xbf16> to vector<128x256xbf16>
    %cst_201 = arith.constant dense<0.000000e+00> : vector<16x256xf32>
    %466 = tpu.matmul %463, %465, %cst_201 {dimension_numbers = #tpu.dot_dimension_numbers<[1], [0], [0], [1], [0, 0, 1, 1], [], []>} : vector<16x128xbf16>, vector<128x256xbf16>, vector<16x256xf32> -> vector<16x256xf32>
    %c1_202 = arith.constant 1 : index
    %c0_203 = arith.constant 0 : index
    %c0_204 = arith.constant 0 : index
    %467 = vector.load %arg20[%c1_202, %c0_203, %c0_204] : memref<2x1x256xf32, #tpu.memory_space<vmem>>, vector<1x1x256xf32>
    %468 = vector.shape_cast %467 : vector<1x1x256xf32> to vector<1x256xf32>
    %469 = vector.broadcast %468 : vector<1x256xf32> to vector<16x256xf32>
    %470 = arith.addf %466, %469 : vector<16x256xf32>
    %cst_205 = arith.constant 5.000000e-01 : f32
    %471 = vector.broadcast %cst_205 : f32 to vector<16x256xf32>
    %472 = arith.mulf %471, %470 : vector<16x256xf32>
    %cst_206 = arith.constant 0.707106769 : f32
    %473 = vector.broadcast %cst_206 : f32 to vector<16x256xf32>
    %474 = arith.mulf %470, %473 : vector<16x256xf32>
    %cst_207 = arith.constant 0.000000e+00 : f32
    %475 = vector.broadcast %cst_207 : f32 to vector<16x256xf32>
    %476 = arith.cmpf oge, %474, %475 : vector<16x256xf32>
    %cst_208 = arith.constant 1.000000e+00 : f32
    %cst_209 = arith.constant -1.000000e+00 : f32
    %477 = vector.broadcast %cst_208 : f32 to vector<16x256xf32>
    %478 = vector.broadcast %cst_209 : f32 to vector<16x256xf32>
    %479 = arith.select %476, %477, %478 : vector<16x256xi1>, vector<16x256xf32>
    %480 = math.absf %474 : vector<16x256xf32>
    %cst_210 = arith.constant 0.327591091 : f32
    %481 = vector.broadcast %cst_210 : f32 to vector<16x256xf32>
    %482 = arith.mulf %481, %480 : vector<16x256xf32>
    %cst_211 = arith.constant 1.000000e+00 : f32
    %483 = vector.broadcast %cst_211 : f32 to vector<16x256xf32>
    %484 = arith.addf %483, %482 : vector<16x256xf32>
    %cst_212 = arith.constant 1.000000e+00 : f32
    %485 = vector.broadcast %cst_212 : f32 to vector<16x256xf32>
    %486 = arith.divf %485, %484 : vector<16x256xf32>
    %cst_213 = arith.constant 1.06140542 : f32
    %487 = vector.broadcast %cst_213 : f32 to vector<16x256xf32>
    %488 = arith.mulf %486, %487 : vector<16x256xf32>
    %cst_214 = arith.constant -1.45315206 : f32
    %489 = vector.broadcast %cst_214 : f32 to vector<16x256xf32>
    %490 = arith.addf %489, %488 : vector<16x256xf32>
    %491 = arith.mulf %486, %490 : vector<16x256xf32>
    %cst_215 = arith.constant 1.42141378 : f32
    %492 = vector.broadcast %cst_215 : f32 to vector<16x256xf32>
    %493 = arith.addf %492, %491 : vector<16x256xf32>
    %494 = arith.mulf %486, %493 : vector<16x256xf32>
    %cst_216 = arith.constant -0.284496725 : f32
    %495 = vector.broadcast %cst_216 : f32 to vector<16x256xf32>
    %496 = arith.addf %495, %494 : vector<16x256xf32>
    %497 = arith.mulf %486, %496 : vector<16x256xf32>
    %cst_217 = arith.constant 0.254829586 : f32
    %498 = vector.broadcast %cst_217 : f32 to vector<16x256xf32>
    %499 = arith.addf %498, %497 : vector<16x256xf32>
    %500 = arith.mulf %486, %499 : vector<16x256xf32>
    %cst_218 = arith.constant 0.000000e+00 : f32
    %501 = vector.broadcast %cst_218 : f32 to vector<16x256xf32>
    %502 = arith.subf %501, %480 : vector<16x256xf32>
    %503 = arith.mulf %502, %480 : vector<16x256xf32>
    %504 = math.exp %503 : vector<16x256xf32>
    %505 = arith.mulf %500, %504 : vector<16x256xf32>
    %cst_219 = arith.constant 1.000000e+00 : f32
    %506 = vector.broadcast %cst_219 : f32 to vector<16x256xf32>
    %507 = arith.subf %506, %505 : vector<16x256xf32>
    %508 = arith.mulf %479, %507 : vector<16x256xf32>
    %cst_220 = arith.constant 1.000000e+00 : f32
    %509 = vector.broadcast %cst_220 : f32 to vector<16x256xf32>
    %510 = arith.addf %509, %508 : vector<16x256xf32>
    %511 = arith.mulf %472, %510 : vector<16x256xf32>
    %512 = arith.truncf %511 : vector<16x256xf32> to vector<16x256xbf16>
    %c1_221 = arith.constant 1 : index
    %c0_222 = arith.constant 0 : index
    %c0_223 = arith.constant 0 : index
    %513 = vector.load %arg21[%c1_221, %c0_222, %c0_223] : memref<2x256x128xbf16, #tpu.memory_space<vmem>>, vector<1x256x128xbf16>
    %514 = vector.shape_cast %513 : vector<1x256x128xbf16> to vector<256x128xbf16>
    %cst_224 = arith.constant dense<0.000000e+00> : vector<16x128xf32>
    %515 = tpu.matmul %512, %514, %cst_224 {dimension_numbers = #tpu.dot_dimension_numbers<[1], [0], [0], [1], [0, 0, 1, 1], [], []>} : vector<16x256xbf16>, vector<256x128xbf16>, vector<16x128xf32> -> vector<16x128xf32>
    %c1_225 = arith.constant 1 : index
    %c0_226 = arith.constant 0 : index
    %c0_227 = arith.constant 0 : index
    %516 = vector.load %arg22[%c1_225, %c0_226, %c0_227] : memref<2x1x128xf32, #tpu.memory_space<vmem>>, vector<1x1x128xf32>
    %517 = vector.shape_cast %516 : vector<1x1x128xf32> to vector<1x128xf32>
    %518 = vector.broadcast %517 : vector<1x128xf32> to vector<16x128xf32>
    %519 = arith.addf %515, %518 : vector<16x128xf32>
    %520 = arith.addf %519, %462 : vector<16x128xf32>
    %c1_228 = arith.constant 1 : index
    %c0_229 = arith.constant 0 : index
    %c0_230 = arith.constant 0 : index
    %521 = vector.load %arg23[%c1_228, %c0_229, %c0_230] : memref<2x1x128xf32, #tpu.memory_space<vmem>>, vector<1x1x128xf32>
    %522 = vector.shape_cast %521 : vector<1x1x128xf32> to vector<1x128xf32>
    %c1_231 = arith.constant 1 : index
    %c0_232 = arith.constant 0 : index
    %c0_233 = arith.constant 0 : index
    %523 = vector.load %arg24[%c1_231, %c0_232, %c0_233] : memref<2x1x128xf32, #tpu.memory_space<vmem>>, vector<1x1x128xf32>
    %524 = vector.shape_cast %523 : vector<1x1x128xf32> to vector<1x128xf32>
    %cst_234 = arith.constant dense<0.000000e+00> : vector<16xf32>
    %525 = vector.multi_reduction <add>, %520, %cst_234 [1] : vector<16x128xf32> to vector<16xf32>
    %526 = vector.shape_cast %525 : vector<16xf32> to vector<16x1xf32>
    %cst_235 = arith.constant 1.280000e+02 : f32
    %527 = vector.broadcast %cst_235 : f32 to vector<16x1xf32>
    %528 = arith.divf %526, %527 : vector<16x1xf32>
    %529 = vector.broadcast %528 : vector<16x1xf32> to vector<16x128xf32>
    %530 = arith.subf %520, %529 : vector<16x128xf32>
    %531 = arith.mulf %530, %530 : vector<16x128xf32>
    %cst_236 = arith.constant dense<0.000000e+00> : vector<16xf32>
    %532 = vector.multi_reduction <add>, %531, %cst_236 [1] : vector<16x128xf32> to vector<16xf32>
    %533 = vector.shape_cast %532 : vector<16xf32> to vector<16x1xf32>
    %cst_237 = arith.constant 1.280000e+02 : f32
    %534 = vector.broadcast %cst_237 : f32 to vector<16x1xf32>
    %535 = arith.divf %533, %534 : vector<16x1xf32>
    %536 = vector.broadcast %528 : vector<16x1xf32> to vector<16x128xf32>
    %537 = arith.subf %520, %536 : vector<16x128xf32>
    %cst_238 = arith.constant 9.99999996E-13 : f32
    %538 = vector.broadcast %cst_238 : f32 to vector<16x1xf32>
    %539 = arith.addf %535, %538 : vector<16x1xf32>
    %540 = math.rsqrt %539 : vector<16x1xf32>
    %541 = vector.broadcast %540 : vector<16x1xf32> to vector<16x128xf32>
    %542 = arith.mulf %537, %541 : vector<16x128xf32>
    %543 = vector.broadcast %522 : vector<1x128xf32> to vector<16x128xf32>
    %544 = arith.mulf %542, %543 : vector<16x128xf32>
    %545 = vector.broadcast %524 : vector<1x128xf32> to vector<16x128xf32>
    %546 = arith.addf %544, %545 : vector<16x128xf32>
    %547 = arith.truncf %546 : vector<16x128xf32> to vector<16x128xbf16>
    %c0_239 = arith.constant 0 : index
    %c0_240 = arith.constant 0 : index
    %548 = vector.load %arg25[%c0_239, %c0_240] : memref<128x128xbf16, #tpu.memory_space<vmem>>, vector<128x128xbf16>
    %cst_241 = arith.constant dense<0.000000e+00> : vector<16x128xf32>
    %549 = tpu.matmul %547, %548, %cst_241 {dimension_numbers = #tpu.dot_dimension_numbers<[1], [0], [0], [1], [0, 0, 1, 1], [], []>} : vector<16x128xbf16>, vector<128x128xbf16>, vector<16x128xf32> -> vector<16x128xf32>
    %c0_242 = arith.constant 0 : index
    %c0_243 = arith.constant 0 : index
    %550 = vector.load %arg26[%c0_242, %c0_243] : memref<1x128xf32, #tpu.memory_space<vmem>>, vector<1x128xf32>
    %551 = vector.broadcast %550 : vector<1x128xf32> to vector<16x128xf32>
    %552 = arith.addf %549, %551 : vector<16x128xf32>
    %c0_244 = arith.constant 0 : index
    %c0_245 = arith.constant 0 : index
    %c0_246 = arith.constant 0 : index
    %553 = vector.load %arg27[%c0_244, %c0_245, %c0_246] : memref<1x16x128xf32, #tpu.memory_space<vmem>>, vector<1x16x128xf32>
    %554 = vector.shape_cast %553 : vector<1x16x128xf32> to vector<16x128xf32>
    %555 = vector.shape_cast %552 : vector<16x128xf32> to vector<1x16x128xf32>
    tpu.vector_store %arg27[%c0_244, %c0_245, %c0_246], %555 {strides = array<i32>} : memref<1x16x128xf32, #tpu.memory_space<vmem>>, vector<1x16x128xf32>,
    return
  }
  func.func @transform_0(%arg0: i32) -> (i32, i32, i32) {
    %c0_i32 = arith.constant 0 : i32
    %c0_i32_0 = arith.constant 0 : i32
    %c0_i32_1 = arith.constant 0 : i32
    return %arg0, %c0_i32, %c0_i32_0 : i32, i32, i32
  }
  func.func @transform_1(%arg0: i32) -> (i32, i32, i32) {
    %c0_i32 = arith.constant 0 : i32
    %c0_i32_0 = arith.constant 0 : i32
    %c0_i32_1 = arith.constant 0 : i32
    return %arg0, %c0_i32, %c0_i32_0 : i32, i32, i32
  }
  func.func @transform_2(%arg0: i32) -> (i32, i32) {
    %c0_i32 = arith.constant 0 : i32
    %c0_i32_0 = arith.constant 0 : i32
    %c0_i32_1 = arith.constant 0 : i32
    return %c0_i32, %c0_i32_0 : i32, i32
  }
  func.func @transform_3(%arg0: i32) -> (i32, i32) {
    %c0_i32 = arith.constant 0 : i32
    %c0_i32_0 = arith.constant 0 : i32
    %c0_i32_1 = arith.constant 0 : i32
    return %c0_i32, %c0_i32_0 : i32, i32
  }
  func.func @transform_4(%arg0: i32) -> (i32, i32) {
    %c0_i32 = arith.constant 0 : i32
    %c0_i32_0 = arith.constant 0 : i32
    %c0_i32_1 = arith.constant 0 : i32
    return %c0_i32, %c0_i32_0 : i32, i32
  }
  func.func @transform_5(%arg0: i32) -> (i32, i32) {
    %c0_i32 = arith.constant 0 : i32
    %c0_i32_0 = arith.constant 0 : i32
    %c0_i32_1 = arith.constant 0 : i32
    return %c0_i32, %c0_i32_0 : i32, i32
  }
  func.func @transform_6(%arg0: i32) -> (i32, i32) {
    %c0_i32 = arith.constant 0 : i32
    %c0_i32_0 = arith.constant 0 : i32
    %c0_i32_1 = arith.constant 0 : i32
    return %c0_i32, %c0_i32_0 : i32, i32
  }
  func.func @transform_7(%arg0: i32) -> (i32, i32) {
    %c0_i32 = arith.constant 0 : i32
    %c0_i32_0 = arith.constant 0 : i32
    %c0_i32_1 = arith.constant 0 : i32
    return %c0_i32, %c0_i32_0 : i32, i32
  }
  func.func @transform_8(%arg0: i32) -> (i32, i32, i32) {
    %c0_i32 = arith.constant 0 : i32
    %c0_i32_0 = arith.constant 0 : i32
    %c0_i32_1 = arith.constant 0 : i32
    %c0_i32_2 = arith.constant 0 : i32
    return %c0_i32, %c0_i32_0, %c0_i32_1 : i32, i32, i32
  }
  func.func @transform_9(%arg0: i32) -> (i32, i32, i32) {
    %c0_i32 = arith.constant 0 : i32
    %c0_i32_0 = arith.constant 0 : i32
    %c0_i32_1 = arith.constant 0 : i32
    %c0_i32_2 = arith.constant 0 : i32
    return %c0_i32, %c0_i32_0, %c0_i32_1 : i32, i32, i32
  }
  func.func @transform_10(%arg0: i32) -> (i32, i32, i32) {
    %c0_i32 = arith.constant 0 : i32
    %c0_i32_0 = arith.constant 0 : i32
    %c0_i32_1 = arith.constant 0 : i32
    %c0_i32_2 = arith.constant 0 : i32
    return %c0_i32, %c0_i32_0, %c0_i32_1 : i32, i32, i32
  }
  func.func @transform_11(%arg0: i32) -> (i32, i32, i32) {
    %c0_i32 = arith.constant 0 : i32
    %c0_i32_0 = arith.constant 0 : i32
    %c0_i32_1 = arith.constant 0 : i32
    %c0_i32_2 = arith.constant 0 : i32
    return %c0_i32, %c0_i32_0, %c0_i32_1 : i32, i32, i32
  }
  func.func @transform_12(%arg0: i32) -> (i32, i32, i32) {
    %c0_i32 = arith.constant 0 : i32
    %c0_i32_0 = arith.constant 0 : i32
    %c0_i32_1 = arith.constant 0 : i32
    %c0_i32_2 = arith.constant 0 : i32
    return %c0_i32, %c0_i32_0, %c0_i32_1 : i32, i32, i32
  }
  func.func @transform_13(%arg0: i32) -> (i32, i32, i32) {
    %c0_i32 = arith.constant 0 : i32
    %c0_i32_0 = arith.constant 0 : i32
    %c0_i32_1 = arith.constant 0 : i32
    %c0_i32_2 = arith.constant 0 : i32
    return %c0_i32, %c0_i32_0, %c0_i32_1 : i32, i32, i32
  }
  func.func @transform_14(%arg0: i32) -> (i32, i32, i32) {
    %c0_i32 = arith.constant 0 : i32
    %c0_i32_0 = arith.constant 0 : i32
    %c0_i32_1 = arith.constant 0 : i32
    %c0_i32_2 = arith.constant 0 : i32
    return %c0_i32, %c0_i32_0, %c0_i32_1 : i32, i32, i32
  }
  func.func @transform_15(%arg0: i32) -> (i32, i32, i32) {
    %c0_i32 = arith.constant 0 : i32
    %c0_i32_0 = arith.constant 0 : i32
    %c0_i32_1 = arith.constant 0 : i32
    %c0_i32_2 = arith.constant 0 : i32
    return %c0_i32, %c0_i32_0, %c0_i32_1 : i32, i32, i32
  }
  func.func @transform_16(%arg0: i32) -> (i32, i32, i32) {
    %c0_i32 = arith.constant 0 : i32
    %c0_i32_0 = arith.constant 0 : i32
    %c0_i32_1 = arith.constant 0 : i32
    %c0_i32_2 = arith.constant 0 : i32
    return %c0_i32, %c0_i32_0, %c0_i32_1 : i32, i32, i32
  }
  func.func @transform_17(%arg0: i32) -> (i32, i32, i32) {
    %c0_i32 = arith.constant 0 : i32
    %c0_i32_0 = arith.constant 0 : i32
    %c0_i32_1 = arith.constant 0 : i32
    %c0_i32_2 = arith.constant 0 : i32
    return %c0_i32, %c0_i32_0, %c0_i32_1 : i32, i32, i32
  }
  func.func @transform_18(%arg0: i32) -> (i32, i32, i32) {
    %c0_i32 = arith.constant 0 : i32
    %c0_i32_0 = arith.constant 0 : i32
    %c0_i32_1 = arith.constant 0 : i32
    %c0_i32_2 = arith.constant 0 : i32
    return %c0_i32, %c0_i32_0, %c0_i32_1 : i32, i32, i32
  }
  func.func @transform_19(%arg0: i32) -> (i32, i32, i32) {
    %c0_i32 = arith.constant 0 : i32
    %c0_i32_0 = arith.constant 0 : i32
    %c0_i32_1 = arith.constant 0 : i32
    %c0_i32_2 = arith.constant 0 : i32
    return %c0_i32, %c0_i32_0, %c0_i32_1 : i32, i32, i32
  }
  func.func @transform_20(%arg0: i32) -> (i32, i32, i32) {
    %c0_i32 = arith.constant 0 : i32
    %c0_i32_0 = arith.constant 0 : i32
    %c0_i32_1 = arith.constant 0 : i32
    %c0_i32_2 = arith.constant 0 : i32
    return %c0_i32, %c0_i32_0, %c0_i32_1 : i32, i32, i32
  }
  func.func @transform_21(%arg0: i32) -> (i32, i32, i32) {
    %c0_i32 = arith.constant 0 : i32
    %c0_i32_0 = arith.constant 0 : i32
    %c0_i32_1 = arith.constant 0 : i32
    %c0_i32_2 = arith.constant 0 : i32
    return %c0_i32, %c0_i32_0, %c0_i32_1 : i32, i32, i32
  }
  func.func @transform_22(%arg0: i32) -> (i32, i32, i32) {
    %c0_i32 = arith.constant 0 : i32
    %c0_i32_0 = arith.constant 0 : i32
    %c0_i32_1 = arith.constant 0 : i32
    %c0_i32_2 = arith.constant 0 : i32
    return %c0_i32, %c0_i32_0, %c0_i32_1 : i32, i32, i32
  }
  func.func @transform_23(%arg0: i32) -> (i32, i32, i32) {
    %c0_i32 = arith.constant 0 : i32
    %c0_i32_0 = arith.constant 0 : i32
    %c0_i32_1 = arith.constant 0 : i32
    %c0_i32_2 = arith.constant 0 : i32
    return %c0_i32, %c0_i32_0, %c0_i32_1 : i32, i32, i32
  }
  func.func @transform_24(%arg0: i32) -> (i32, i32) {
    %c0_i32 = arith.constant 0 : i32
    %c0_i32_0 = arith.constant 0 : i32
    %c0_i32_1 = arith.constant 0 : i32
    return %c0_i32, %c0_i32_0 : i32, i32
  }
  func.func @transform_25(%arg0: i32) -> (i32, i32) {
    %c0_i32 = arith.constant 0 : i32
    %c0_i32_0 = arith.constant 0 : i32
    %c0_i32_1 = arith.constant 0 : i32
    return %c0_i32, %c0_i32_0 : i32, i32
  }
  func.func @transform_26(%arg0: i32) -> (i32, i32, i32) {
    %c0_i32 = arith.constant 0 : i32
    %c0_i32_0 = arith.constant 0 : i32
    %c0_i32_1 = arith.constant 0 : i32
    return %arg0, %c0_i32, %c0_i32_0 : i32, i32, i32
  }
}

</mosaic_0001>

<bundles_post_ra>
// kernel: fill_mask_forward.1
= control target key start
LH: loop header
LB: loop body
LE: loop exit
PB: predicated region body
PF: predicated region fallthrough
CT: control target
= control target key end

     0   :  { %s5698_s27 = smov 0   ;;  %s6687_s0 = inlined_call_operand.vmem [shape: s32[2,16,1], index: 0, kind: input, shape index: {}]   ;;  %s6688_s1 = inlined_call_operand.vmem [shape: f32[2,16,128], index: 1, kind: input, shape index: {}]   ;;  %s6689_s2 = inlined_call_operand.vmem [shape: bf16[128,128], index: 2, kind: input, shape index: {}]   ;;  %s6690_s3 = inlined_call_operand.vmem [shape: f32[1,128], index: 3, kind: input, shape index: {}]   ;;  %s6691_s4 = inlined_call_operand.vmem [shape: f32[16,128], index: 4, kind: input, shape index: {}]   ;;  %s6692_s5 = inlined_call_operand.vmem [shape: f32[2,128], index: 5, kind: input, shape index: {}]   ;;  %s6693_s6 = inlined_call_operand.vmem [shape: f32[1,128], index: 6, kind: input, shape index: {}]   ;;  %s6694_s7 = inlined_call_operand.vmem [shape: f32[1,128], index: 7, kind: input, shape index: {}]   ;;  %s6695_s8 = inlined_call_operand.vmem [shape: bf16[2,128,128], index: 8, kind: input, shape index: {}]   ;;  %s6696_s9 = inlined_call_operand.vmem [shape: f32[2,1,128], index: 9, kind: input, shape index: {}]   ;;  %s6697_s10 = inlined_call_operand.vmem [shape: bf16[2,128,128], index: 10, kind: input, shape index: {}]   ;;  %s6698_s11 = inlined_call_operand.vmem [shape: f32[2,1,128], index: 11, kind: input, shape index: {}]   ;;  %s6699_s12 = inlined_call_operand.vmem [shape: bf16[2,128,128], index: 12, kind: input, shape index: {}]   ;;  %s6700_s13 = inlined_call_operand.vmem [shape: f32[2,1,128], index: 13, kind: input, shape index: {}]   ;;  %s6701_s14 = inlined_call_operand.vmem [shape: bf16[2,128,128], index: 14, kind: input, shape index: {}]   ;;  %s6702_s15 = inlined_call_operand.vmem [shape: f32[2,1,128], index: 15, kind: input, shape index: {}]   ;;  %s6703_s16 = inlined_call_operand.vmem [shape: f32[2,1,128], index: 16, kind: input, shape index: {}]   ;;  %s6704_s17 = inlined_call_operand.vmem [shape: f32[2,1,128], index: 17, kind: input, shape index: {}]   ;;  %s6705_s18 = inlined_call_operand.vmem [shape: bf16[2,128,256], index: 18, kind: input, shape index: {}]   ;;  %s6706_s19 = inlined_call_operand.vmem [shape: f32[2,1,256], index: 19, kind: input, shape index: {}]   ;;  %s6707_s20 = inlined_call_operand.vmem [shape: bf16[2,256,128], index: 20, kind: input, shape index: {}]   ;;  %s6708_s21 = inlined_call_operand.vmem [shape: f32[2,1,128], index: 21, kind: input, shape index: {}]   ;;  %s6709_s22 = inlined_call_operand.vmem [shape: f32[2,1,128], index: 22, kind: input, shape index: {}]   ;;  %s6710_s23 = inlined_call_operand.vmem [shape: f32[2,1,128], index: 23, kind: input, shape index: {}]   ;;  %s6711_s24 = inlined_call_operand.vmem [shape: bf16[128,128], index: 24, kind: input, shape index: {}]   ;;  %s6712_s25 = inlined_call_operand.vmem [shape: f32[1,128], index: 25, kind: input, shape index: {}]   ;;  %s6713_s26 = inlined_call_operand.vmem [shape: f32[2,16,128], index: 26, kind: output, shape index: {}]  }
   0x1   :  { %6729 = sst [smem:[#allocation2_spill]] %s6687_s0 }
   0x2   :  { %6730 = sst [smem:[#allocation3_spill]] %s6688_s1 }
   0x3   :  { %6731 = sst [smem:[#allocation4_spill]] %s6689_s2 }
   0x4   :  { %6732 = sst [smem:[#allocation5_spill]] %s6690_s3 }
   0x5   :  { %6733 = sst [smem:[#allocation6_spill]] %s6691_s4 }
   0x6   :  { %6734 = sst [smem:[#allocation7_spill]] %s6692_s5 }
   0x7   :  { %6735 = sst [smem:[#allocation8_spill]] %s6693_s6 }
   0x8   :  { %6736 = sst [smem:[#allocation9_spill]] %s6694_s7 }
   0x9   :  { %6737 = sst [smem:[#allocation10_spill]] %s6695_s8 }
   0xa   :  { %6738 = sst [smem:[#allocation11_spill]] %s6696_s9 }
   0xb   :  { %6739 = sst [smem:[#allocation12_spill]] %s6697_s10 }
   0xc LB: > { %s4434_s3 = sadd.s32 4294967295, %s5554_s27   ;;  %p4438_p0 = scmp.ge.s32.totalorder %s5554_s27, 1  ;;  %s5554_s27 = sphi %s5698_s27, %s36_s27  }
   0xd   : > { %p722_p1 = scmp.lt.s32.totalorder %s5554_s27, 3 }
   0xf   : > { %p723_p2 = pnand %p4438_p0, %p722_p1 }
  0x10   : > { %s6740_s8 = sld [smem:[#allocation4_spill]] (!%p723_p2)  ;;  %v5556_v1 = vmov (!%p723_p2), 0.0   ;;  %vm5557_vm0 = vmmov (!%p723_p2), 0   ;;  %p797_p3 = scmp.lt.s32.totalorder (!%p723_p2), %s4434_s3, 1  ;;  %v5558_v3 = vmov (!%p723_p2), 0   ;;  %vm1359_vm5 = vcmask (!%p723_p2), 261120  }
  0x11   : > { %726 = sbr.rel (%p723_p2) target bundleno = 9122 (0x23a2), region = 124  ;;  %4936 = vmatprep.subr.bf16.mxu0 (!%p723_p2), %v5556_v1  ;;  %4956 = vmatprep.subr.bf16.mxu1 (!%p723_p2), %v5556_v1  ;;  %s6741_s10 = sld [smem:[#allocation2_spill]] (!%p723_p2)  ;;  %vm1411_vm7 = vcmask (!%p723_p2), 130048  }
  0x12   : > { %4952 = vmatprep.mubr.msk.bf16.mxu0 (!%p723_p2), %vm5557_vm0, %v5556_v1  ;;  %4972 = vmatprep.mubr.msk.bf16.mxu1 (!%p723_p2), %vm5557_vm0, %v5556_v1  ;;  %s6743_s4 = sld [smem:[#allocation5_spill]] (!%p723_p2)  ;;  %s6744_s9 = sld [smem:[#allocation7_spill]] (!%p723_p2) }
  0x13   : > { %5271 = vset.pattern.permute.xlu0 (!%p723_p2), %v5558_v3  ;;  %s6745_s1 = sld [smem:[#allocation6_spill]] (!%p723_p2)  ;;  %s6746_s29 = sld [smem:[#allocation10_spill]] (!%p723_p2) }
  0x14   : > { %s6747_s5 = sld [smem:[#allocation12_spill]] (!%p723_p2)  ;;  %s6748_s0 = sld [smem:[#allocation8_spill]] (!%p723_p2) }
  0x15   : > { %s6750_s28 = sld [smem:[#allocation11_spill]] (!%p723_p2)  ;;  %s6724_s2 = smov (!%p723_p2), 96  }
  0x16   : > { %v5272_v0 = vld [vmem:[%s6740_s8] sm:$0xff] (!%p723_p2)   ;;  %v5273_v2 = vld [vmem:[%s6740_s8 + $0x8] sm:$0xff] (!%p723_p2)   ;;  %v5274_v4 = vld [vmem:[%s6740_s8 + $0x10] sm:$0xff] (!%p723_p2)   ;;  %s6722_s7 = smov (!%p723_p2), 64  }
  0x17   : > { %4937 = vmatpush3.bf16.msra.mxu0 (!%p723_p2), %v5272_v0  ;;  %v5275_v5 = vld [vmem:[%s6740_s8 + $0x18] sm:$0xff] (!%p723_p2)   ;;  %v5276_v10 = vld [vmem:[%s6740_s8 + $0x20] sm:$0xff] (!%p723_p2)   ;;  %v5277_v11 = vld [vmem:[%s6740_s8 + $0x28] sm:$0xff] (!%p723_p2)  }
  0x18   : > { %4938 = vmatprep.subr.bf16.mxu0 %v5556_v1  ;;  %s6755_s3 = smov (!%p797_p3, %s4434_s3), 1  ;;  %v5278_v12 = vld [vmem:[%s6740_s8 + $0x30] sm:$0xff]   ;;  %v5279_v13 = vld [vmem:[%s6740_s8 + $0x38] sm:$0xff]   ;;  %v4445_v18 = vld [vmem:[%s6743_s4] ss:$0 sm:$0xff]  ;;  %s6753_s4 = smov 32  }
  0x19   : > { %s5723_s30 = sshll.u32 %s6755_s3, 4  ;;  %v4454_v19 = vld [vmem:[%s6744_s9 + $0x1] ss:$0 sm:$0xff]  ;;  %v4455_v20 = vld [vmem:[%s6744_s9] ss:$0 sm:$0xff]  ;;  %v955_v26 = vld [vmem:[%s6745_s1 + $0x8] sm:$0xff] }
  0x1a   : > { %s801_s6 = scalar_lea.vmem %s6741_s10, %s5723_s30  ;;  %s6742_s10 = sld [smem:[#allocation3_spill]]  ;;  %v954_v22 = vld [vmem:[%s6745_s1] sm:$0xff]  ;;  %v5282_v38 = vld [vmem:[%s6746_s29 + $0x8] sm:$0xff]   ;;  %v5284_v48 = vld [vmem:[%s6746_s29 + $0x10] sm:$0xff]  }
  0x1b   : > { %4939 = vmatpush3.bf16.msra.mxu0 %v5273_v2  ;;  %v928_v6 = vld [vmem:[%s801_s6] sm:$0xff]  ;;  %v929_v7 = vld [vmem:[%s801_s6 + $0x8] sm:$0xff]  ;;  %v5285_v49 = vld [vmem:[%s6747_s5 + $0x10] sm:$0xff]   ;;  %s811_s9 = scalar_lea.vmem %s6713_s26, %s5723_s30 }
  0x1c   : > { %4940 = vmatprep.subr.bf16.mxu0 %v5556_v1  ;;  %vm930_vm1 = vcmp.eq.s32.totalorder %v928_v6, 1  ;;  %vm931_vm2 = vcmp.eq.s32.totalorder %v929_v7, 1  ;;  %v5280_v36 = vld [vmem:[%s6746_s29] sm:$0xff]   ;;  %v5283_v47 = vld [vmem:[%s6747_s5 + $0x8] sm:$0xff]   ;;  %v5286_v50 = vld [vmem:[%s6746_s29 + $0x18] sm:$0xff]  }
  0x1d   : > { %v934_v8 = vsel %vm930_vm1, 1, %v5558_v3  ;;  %v935_v9 = vsel %vm931_vm2, 1, %v5558_v3  ;;  %v5281_v37 = vld [vmem:[%s6747_s5] sm:$0xff]   ;;  %4957 = vmatpush3.bf16.msra.mxu1 %v5280_v36  ;;  %v5287_v51 = vld [vmem:[%s6747_s5 + $0x18] sm:$0xff]   ;;  %v5290_v54 = vld [vmem:[%s6746_s29 + $0x28] sm:$0xff]  }
  0x1e   : > { %937 = vperm.xlu0 %5271, %v934_v8   ;;  %4958 = vmatprep.subr.bf16.mxu1 %v5556_v1  ;;  %v5288_v52 = vld [vmem:[%s6746_s29 + $0x20] sm:$0xff]   ;;  %v5291_v55 = vld [vmem:[%s6747_s5 + $0x28] sm:$0xff]   ;;  %v5292_v56 = vld [vmem:[%s6746_s29 + $0x30] sm:$0xff]  }
  0x1f   : > { %4941 = vmatpush3.bf16.msra.mxu0 %v5274_v4  ;;  %v5289_v53 = vld [vmem:[%s6747_s5 + $0x20] sm:$0xff]   ;;  %v5293_v57 = vld [vmem:[%s6747_s5 + $0x30] sm:$0xff]   ;;  %v5294_v58 = vld [vmem:[%s6746_s29 + $0x38] sm:$0xff]  }
  0x20   : > { %4942 = vmatprep.subr.bf16.mxu0 %v5556_v1  ;;  %s806_s6 = scalar_lea.vmem %s6742_s10, %s5723_s30  ;;  %v5295_v59 = vld [vmem:[%s6747_s5 + $0x38] sm:$0xff]   ;;  %v4456_v6 = vld [vmem:[%s6748_s0] ss:$0 sm:$0xff]  ;;  %s6720_s10 = smov 32  }
  0x21   : > { %v813_v14 = vld [vmem:[%s806_s6] sm:$0xff]  ;;  %v814_v15 = vld [vmem:[%s806_s6 + $0x8] sm:$0xff]  ;;  %4959 = vmatpush3.bf16.msra.mxu1 %v5282_v38  ;;  %s6749_s6 = sld [smem:[#allocation9_spill]]  ;;  %s6752_s0 = smov 64  }
  0x22   : > { %940 = vperm.xlu0 %5271, %v935_v9   ;;  %v815_v16 = vpack.c.bf16 %v814_v15, %v813_v14  ;;  %4960 = vmatprep.subr.bf16.mxu1 %v5556_v1  ;;  %v5296_v14 = vld [vmem:[%s6699_s12] sm:$0xff]  }
  0x23   : > { %4943 = vmatpush3.bf16.msra.mxu0 %v5275_v5 }
  0x24   : > { %4944 = vmatprep.subr.bf16.mxu0 %v5556_v1 }
  0x25   : > { %4961 = vmatpush3.bf16.msra.mxu1 %v5284_v48  ;;  %v1001_v48 = vlaneseq }
  0x26   : > { %4962 = vmatprep.subr.bf16.mxu1 %v5556_v1 }
  0x27   : > { %4945 = vmatpush3.bf16.msra.mxu0 %v5276_v10  ;;  %v4457_v10 = vld [vmem:[%s6749_s6] ss:$0 sm:$0xff] }
  0x28   : > { %4946 = vmatprep.subr.bf16.mxu0 %v5556_v1 }
  0x29   : > { %4963 = vmatpush3.bf16.msra.mxu1 %v5286_v50 }
  0x2a   : > { %4964 = vmatprep.subr.bf16.mxu1 %v5556_v1 }
  0x2b   : > { %4947 = vmatpush3.bf16.msra.mxu0 %v5277_v11 }
  0x2c   : > { %4948 = vmatprep.subr.bf16.mxu0 %v5556_v1 }
  0x2d   : > { %4965 = vmatpush3.bf16.msra.mxu1 %v5288_v52 }
  0x2e   : > { %4966 = vmatprep.subr.bf16.mxu1 %v5556_v1 }
  0x2f   : > { %4949 = vmatpush3.bf16.msra.mxu0 %v5278_v12 }
  0x30   : > { %4950 = vmatprep.subr.bf16.mxu0 %v5556_v1 }
  0x31   : > { %4967 = vmatpush3.bf16.msra.mxu1 %v5290_v54 }
  0x32   : > { %4968 = vmatprep.subr.bf16.mxu1 %v5556_v1 }
  0x33   : > { %4951 = vmatpush3.bf16.msra.mxu0 %v5279_v13 }
  0x34   : > { %4976 = vmatprep.subr.bf16.mxu0 %v5556_v1 }
  0x35   : > { %4969 = vmatpush3.bf16.msra.mxu1 %v5292_v56 }
  0x36   : > { %4953 = vmatmul.mubr.bf16.vlgmr.msra.gmra.mrb[0].mxu0 %v815_v16  ;;  %4970 = vmatprep.subr.bf16.mxu1 %v5556_v1  ;;  %v5297_v16 = vld [vmem:[%s6699_s12 + $0x8] sm:$0xff]  }
  0x37   : > { %4992 = vmatprep.mubr.msk.bf16.mxu0 %vm5557_vm0, %v5556_v1  ;;  %4977 = vmatpush3.bf16.msra.mxu0 %v5281_v37 }
  0x38   : > { %4978 = vmatprep.subr.bf16.mxu0 %v5556_v1 }
  0x39   : > { %4971 = vmatpush3.bf16.msra.mxu1 %v5294_v58 }
  0x3a   : > { %4996 = vmatprep.subr.bf16.mxu1 %v5556_v1 }
  0x3b   : > { %4979 = vmatpush3.bf16.msra.mxu0 %v5283_v47 }
  0x3c   : > { %4980 = vmatprep.subr.bf16.mxu0 %v5556_v1 }
  0x3f   : > { %4981 = vmatpush3.bf16.msra.mxu0 %v5285_v49  ;;  %v5915_v49 = vand.u32 127, %v1001_v48 }
  0x40   : > { %4982 = vmatprep.subr.bf16.mxu0 %v5556_v1 }
  0x41   : > { %vm1003_vm6 = vcmp.lt.s32.totalorder %v5915_v49, 10 }
  0x43   : > { %4983 = vmatpush3.bf16.msra.mxu0 %v5287_v51 }
  0x44   : > { %4984 = vmatprep.subr.bf16.mxu0 %v5556_v1 }
  0x47   : > { %4985 = vmatpush3.bf16.msra.mxu0 %v5289_v53 }
  0x48   : > { %4986 = vmatprep.subr.bf16.mxu0 %v5556_v1 }
  0x4b   : > { %4987 = vmatpush3.bf16.msra.mxu0 %v5291_v55 }
  0x4c   : > { %4988 = vmatprep.subr.bf16.mxu0 %v5556_v1 }
  0x4f   : > { %4989 = vmatpush3.bf16.msra.mxu0 %v5293_v57 }
  0x50   : > { %4990 = vmatprep.subr.bf16.mxu0 %v5556_v1 }
  0x53   : > { %4991 = vmatpush3.bf16.msra.mxu0 %v5295_v59 }
  0x54   : > { %5040 = vmatprep.subr.bf16.mxu0 %v5556_v1 }
  0x9d   : > { %v938_v17 = vpop.permute.xlu0 %937 }
  0x9e   : > { %vm942_vm3 = vcmp.eq.s32.totalorder %v938_v17, 1  ;;  %v5298_v17 = vld [vmem:[%s6699_s12 + $0x10] sm:$0xff]  }
  0x9f   : > { %v952_v28 = vsel %vm942_vm3, %v4454_v19, %v4455_v20 }
  0xa1   : > { %v941_v27 = vpop.permute.xlu0 %940 }
  0xa2   : > { %vm943_vm4 = vcmp.eq.s32.totalorder %v941_v27, 1 }
  0xa3   : > { %v953_v34 = vsel %vm943_vm4, %v4454_v19, %v4455_v20  ;;  %v5300_v19 = vld [vmem:[%s6699_s12 + $0x20] sm:$0xff]   ;;  %v5301_v20 = vld [vmem:[%s6699_s12 + $0x28] sm:$0xff]  }
 0x109   : > { %v921_v21 = vpop.f32.mrb[0].mxu0 }
 0x10a   : > { %v922_v23 = vadd.f32 %v4445_v18, %v921_v21  ;;  %v4954_v24 = vpop.f32.mrb[1].mxu0  ;;  %v5302_v21 = vld [vmem:[%s6699_s12 + $0x30] sm:$0xff]  }
 0x10b   : > { %v924_v25 = vpop.f32.mrb[2].mxu0 }
 0x10c   : > { %v956_v29 = vadd.f32 %v954_v22, %v922_v23  ;;  %v925_v30 = vadd.f32 %v4445_v18, %v924_v25  ;;  %v4955_v31 = vpop.f32.mrb[3].mxu0  ;;  %v5299_v18 = vld [vmem:[%s6699_s12 + $0x18] sm:$0xff]   ;;  %v4458_v23 = vld [vmem:[%s6750_s28] ss:$0 sm:$0xff] }
 0x10d   : > { %v5303_v22 = vld [vmem:[%s6699_s12 + $0x38] sm:$0xff]   ;;  %v4467_v25 = vld [vmem:[%s6698_s11] ss:$0 sm:$0xff] }
 0x10e   : > { %v957_v32 = vadd.f32 %v955_v26, %v925_v30  ;;  %v958_v33 = vadd.f32 %v956_v29, %v952_v28 }
 0x110   : > { %962 = vadd.xlane.f32.xlu1 %v958_v33  ;;  %v959_v35 = vadd.f32 %v957_v32, %v953_v34 }
 0x114   : > { %964 = vadd.xlane.f32.xlu1 %v959_v35 }
 0x19d   : > { %v963_v39 = vpop.xlane.xlu1 %962 }
 0x19e   : > { %v967_v40 = vmul.f32 0.0078125, %v963_v39 }
 0x1a0   : > { %v969_v41 = vsub.f32 %v958_v33, %v967_v40  ;;  %v4476_v40 = vld [vmem:[%s6700_s13] ss:$0 sm:$0xff] }
 0x1a1   : > { %v965_v42 = vpop.xlane.xlu1 %964 }
 0x1a2   : > { %v968_v43 = vmul.f32 0.0078125, %v965_v42  ;;  %v971_v44 = vmul.f32 %v969_v41, %v969_v41 }
 0x1a4   : > { %v970_v45 = vsub.f32 %v959_v35, %v968_v43  ;;  %973 = vadd.xlane.f32.xlu0 %v971_v44 }
 0x1a6   : > { %v972_v46 = vmul.f32 %v970_v45, %v970_v45 }
 0x1a8   : > { %975 = vadd.xlane.f32.xlu1 %v972_v46 }
 0x231   : > { %v974_v60 = vpop.xlane.xlu0 %973 }
 0x232   : > { %v977_v61 = vmul.f32 0.0078125, %v974_v60 }
 0x234   : > { %v979_v62 = vadd.f32 1e-12, %v977_v61 }
 0x235   : > { %v976_v63 = vpop.xlane.xlu1 %975 }
 0x236   : > { %5432 = vrsqrt.f32 %v979_v62  ;;  %v978_v0 = vmul.f32 0.0078125, %v976_v63 }
 0x238   : > { %v980_v2 = vadd.f32 1e-12, %v978_v0 }
 0x23a   : > { %5434 = vrsqrt.f32 %v980_v2 }
 0x240   : > { %v5433_v4 = vpop.eup %5432 }
 0x241   : > { %v983_v5 = vmul.f32 %v5433_v4, %v969_v41 }
 0x243   : > { %v991_v9 = vmul.f32 %v4456_v6, %v983_v5 }
 0x244   : > { %v5435_v7 = vpop.eup %5434 }
 0x245   : > { %v984_v8 = vmul.f32 %v5435_v7, %v970_v45  ;;  %v5844_v12 = vadd.f32 %v4457_v10, %v991_v9 }
 0x247   : > { %v992_v11 = vmul.f32 %v4456_v6, %v984_v8 }
 0x249   : > { %v5846_v13 = vadd.f32 %v4457_v10, %v992_v11 }
 0x24b   : > { %v1068_v15 = vpack.c.bf16 %v5846_v13, %v5844_v12 }
 0x24d   : > { %4973 = vmatmul.mubr.bf16.vlgmr.msra.gmra.mrb[0].mxu1 %v1068_v15  ;;  %4993 = vmatmul.mubr.bf16.vlgmr.msra.gmra.mrb[4].mxu0 %v1068_v15 }
 0x24e   : > { %4997 = vmatpush3.bf16.msra.mxu1 %v5296_v14  ;;  %5012 = vmatprep.mubr.msk.bf16.mxu1 %vm5557_vm0, %v5556_v1 }
 0x24f   : > { %4998 = vmatprep.subr.bf16.mxu1 %v5556_v1  ;;  %5044 = vmatprep.mubr.msk.bf16.mxu0 %vm5557_vm0, %v5556_v1 }
 0x252   : > { %4999 = vmatpush3.bf16.msra.mxu1 %v5297_v16 }
 0x253   : > { %5000 = vmatprep.subr.bf16.mxu1 %v5556_v1 }
 0x256   : > { %5001 = vmatpush3.bf16.msra.mxu1 %v5298_v17 }
 0x257   : > { %5002 = vmatprep.subr.bf16.mxu1 %v5556_v1 }
 0x25a   : > { %5003 = vmatpush3.bf16.msra.mxu1 %v5299_v18 }
 0x25b   : > { %5004 = vmatprep.subr.bf16.mxu1 %v5556_v1 }
 0x25e   : > { %5005 = vmatpush3.bf16.msra.mxu1 %v5300_v19 }
 0x25f   : > { %5006 = vmatprep.subr.bf16.mxu1 %v5556_v1 }
 0x262   : > { %5007 = vmatpush3.bf16.msra.mxu1 %v5301_v20 }
 0x263   : > { %5008 = vmatprep.subr.bf16.mxu1 %v5556_v1 }
 0x266   : > { %5009 = vmatpush3.bf16.msra.mxu1 %v5302_v21 }
 0x267   : > { %5010 = vmatprep.subr.bf16.mxu1 %v5556_v1 }
 0x26a   : > { %5011 = vmatpush3.bf16.msra.mxu1 %v5303_v22 }
 0x26b   : > { %5016 = vmatprep.subr.bf16.mxu1 %v5556_v1 }
 0x26d   : > { %5013 = vmatmul.mubr.bf16.vlgmr.msra.gmra.mrb[4].mxu1 %v1068_v15 }
 0x26e   : > { %5018 = vmatprep.mubr.msk.bf16.mxu1 %vm5557_vm0, %v5556_v1 }
 0x320   : > { %v1158_v24 = vpop.f32.mrb[0].mxu1  ;;  %v1254_v26 = vpop.f32.mrb[4].mxu0 }
 0x321   : > { %v4974_v27 = vpop.f32.mrb[1].mxu1  ;;  %v4994_v28 = vpop.f32.mrb[5].mxu0  ;;  %v1159_v31 = vadd.f32 %v4458_v23, %v1158_v24  ;;  %v1255_v32 = vadd.f32 %v4467_v25, %v1254_v26 }
 0x322   : > { %v1161_v29 = vpop.f32.mrb[2].mxu1  ;;  %v1257_v30 = vpop.f32.mrb[6].mxu0 }
 0x323   : > { %v1162_v33 = vadd.f32 %v4458_v23, %v1161_v29  ;;  %v1258_v34 = vadd.f32 %v4467_v25, %v1257_v30  ;;  %v4975_v35 = vpop.f32.mrb[3].mxu1  ;;  %v4995_v36 = vpop.f32.mrb[7].mxu0 }
 0x325   : > { %v5894_v37 = vpack.c.bf16 %v1162_v33, %v1159_v31  ;;  %v5896_v38 = vpack.c.bf16 %v1258_v34, %v1255_v32 }
 0x327   : > { %1482 = vrot.lane.b32.xlu0 %v5894_v37, %s6724_s2  ;;  %v1364_v39 = vsel %vm1359_vm5, %v5896_v38, 0 }
 0x328   : > { %5017 = vmatpush3.bf16.xpose.msra.mxu1 %v1364_v39 }
 0x329   : > { %5022 = vmatprep.subr.bf16.mxu1 %v5556_v1 }
 0x32f   : > { %5019 = vmatmul.mubr.msk.bf16.vlgmr.msra.gmra.mrb[8].mxu1 %vm1359_vm5, %v5894_v37 }
 0x330   : > { %5024 = vmatprep.mubr.msk.bf16.mxu1 %vm5557_vm0, %v5556_v1 }
 0x340   : > { %v1350_v41 = vpop.f32.mrb[4].mxu1 }
 0x341   : > { %v5014_v42 = vpop.f32.mrb[5].mxu1  ;;  %v1351_v44 = vadd.f32 %v4476_v40, %v1350_v41 }
 0x342   : > { %v1353_v43 = vpop.f32.mrb[6].mxu1 }
 0x343   : > { %v1354_v45 = vadd.f32 %v4476_v40, %v1353_v43  ;;  %v5015_v46 = vpop.f32.mrb[7].mxu1 }
 0x345   : > { %v5910_v47 = vpack.c.bf16 %v1354_v45, %v1351_v44 }
 0x347   : > { %5023 = vmatpush3.bf16.msra.mxu1 %v5910_v47 }
 0x348   : > { %5028 = vmatprep.subr.bf16.mxu1 %v5556_v1 }
 0x399   : > { %v1483_v19 = vpop.permute.xlu0 %1482 }
 0x402   : > { %v1400_v50 = vpop.f32.mrb[8].mxu1 }
 0x403   : > { %v1407_v51 = vmul.f32 0.17677669, %v1400_v50  ;;  %v5020_v52 = vpop.f32.mrb[9].mxu1  ;;  %v5306_v50 = vld [vmem:[%s6701_s14 + $0x10] sm:$0xff]  }
 0x404   : > { %v1403_v53 = vpop.f32.mrb[10].mxu1  ;;  %5041 = vmatpush3.bf16.msra.mxu0 %v5306_v50 }
 0x405   : > { %v1408_v54 = vmul.f32 0.17677669, %v1403_v53  ;;  %v5021_v55 = vpop.f32.mrb[11].mxu1  ;;  %v1409_v56 = vsel %vm1003_vm6, %v1407_v51, -1e+30  ;;  %v5307_v51 = vld [vmem:[%s6701_s14 + $0x18] sm:$0xff]   ;;  %5042 = vmatprep.subr.bf16.mxu0 %v5556_v1 }
 0x406   : > { %v1412_v57 = vsel %vm1411_vm7, %v1409_v56, -inf }
 0x407   : > { %1413 = vmax.xlane.f32.xlu1 %v1412_v57  ;;  %v1410_v58 = vsel %vm1003_vm6, %v1408_v54, -1e+30 }
 0x408   : > { %v1415_v59 = vsel %vm1411_vm7, %v1410_v58, -inf  ;;  %5043 = vmatpush3.bf16.msra.mxu0 %v5307_v51 }
 0x409   : > { %5056 = vmatprep.subr.bf16.mxu0 %v5556_v1 }
 0x40b   : > { %1416 = vmax.xlane.f32.xlu1 %v1415_v59  ;;  %v5304_v59 = vld [vmem:[%s6701_s14] sm:$0xff]  }
 0x494   : > { %v1414_v60 = vpop.xlane.xlu1 %1413 }
 0x495   : > { %v1418_v61 = vsub.f32 %v1409_v56, %v1414_v60 }
 0x497   : > { %v1420_v62 = vmul.f32 1.442695, %v1418_v61  ;;  %v5305_v61 = vld [vmem:[%s6701_s14 + $0x8] sm:$0xff]  }
 0x498   : > { %v1417_v63 = vpop.xlane.xlu1 %1416 }
 0x499   : > { %5436 = vpow2.f32 %v1420_v62  ;;  %v1419_v0 = vsub.f32 %v1410_v58, %v1417_v63 }
 0x49b   : > { %v1422_v2 = vmul.f32 1.442695, %v1419_v0 }
 0x49d   : > { %5438 = vpow2.f32 %v1422_v2 }
 0x4a3   : > { %v5437_v4 = vpop.eup %5436 }
 0x4a4   : > { %v1424_v5 = vsel %vm1411_vm7, %v5437_v4, 0.0 }
 0x4a5   : > { %1425 = vadd.xlane.f32.xlu1 %v1424_v5 }
 0x4a7   : > { %v5439_v6 = vpop.eup %5438 }
 0x4a8   : > { %v1427_v7 = vsel %vm1411_vm7, %v5439_v6, 0.0 }
 0x4a9   : > { %1428 = vadd.xlane.f32.xlu1 %v1427_v7 }
 0x4ba   : > { %1485 = vrot.lane.b32.xlu1 %v5896_v38, %s6724_s2 }
 0x532   : > { %v1426_v8 = vpop.xlane.xlu1 %1425 }
 0x533   : > { %5440 = vrcp.f32 %v1426_v8 }
 0x536   : > { %v1429_v9 = vpop.xlane.xlu1 %1428 }
 0x537   : > { %5442 = vrcp.f32 %v1429_v9 }
 0x53a   : > { %v1486_v16 = vpop.permute.xlu1 %1485 }
 0x53b   : > { %v1491_v18 = vsel %vm1359_vm5, %v1486_v16, 0 }
 0x53d   : > { %v5441_v10 = vpop.eup %5440 }
 0x53e   : > { %v1432_v14 = vmul.f32 %v5441_v10, %v5437_v4 }
 0x541   : > { %v5443_v11 = vpop.eup %5442 }
 0x542   : > { %v1433_v15 = vmul.f32 %v5443_v11, %v5439_v6 }
 0x544   : > { %v1434_v17 = vpack.c.bf16 %v1433_v15, %v1432_v14 }
 0x546   : > { %5025 = vmatmul.mubr.msk.bf16.vlgmr.msra.gmra.mrb[12].mxu1 %vm1411_vm7, %v1434_v17 }
 0x547   : > { %5029 = vmatpush3.bf16.xpose.msra.mxu1 %v1491_v18  ;;  %5030 = vmatprep.mubr.msk.bf16.mxu1 %vm5557_vm0, %v5556_v1 }
 0x548   : > { %5034 = vmatprep.subr.bf16.mxu1 %v5556_v1 }
 0x54e   : > { %5031 = vmatmul.mubr.msk.bf16.vlgmr.msra.gmra.mrb[16].mxu1 %vm1359_vm5, %v1483_v19 }
 0x54f   : > { %5036 = vmatprep.mubr.msk.bf16.mxu1 %vm5557_vm0, %v5556_v1 }
 0x619   : > { %v1473_v20 = vpop.f32.mrb[12].mxu1 }
 0x61a   : > { %v5026_v21 = vpop.f32.mrb[13].mxu1 }
 0x61b   : > { %v1476_v22 = vpop.f32.mrb[14].mxu1 }
 0x61c   : > { %v1480_v23 = vpack.c.bf16 %v1476_v22, %v1473_v20  ;;  %v5027_v24 = vpop.f32.mrb[15].mxu1 }
 0x621   : > { %v1527_v25 = vpop.f32.mrb[16].mxu1 }
 0x622   : > { %v1534_v26 = vmul.f32 0.17677669, %v1527_v25  ;;  %v5032_v27 = vpop.f32.mrb[17].mxu1 }
 0x623   : > { %v1530_v28 = vpop.f32.mrb[18].mxu1 }
 0x624   : > { %v1535_v29 = vmul.f32 0.17677669, %v1530_v28  ;;  %v5033_v30 = vpop.f32.mrb[19].mxu1  ;;  %v1536_v31 = vsel %vm1003_vm6, %v1534_v26, -1e+30 }
 0x625   : > { %v1538_v32 = vsel %vm1411_vm7, %v1536_v31, -inf }
 0x626   : > { %1539 = vmax.xlane.f32.xlu1 %v1538_v32  ;;  %v1537_v33 = vsel %vm1003_vm6, %v1535_v29, -1e+30 }
 0x627   : > { %v1541_v34 = vsel %vm1411_vm7, %v1537_v33, -inf }
 0x628   : > { %1542 = vmax.xlane.f32.xlu0 %v1541_v34 }
 0x63e   : > { %1724 = vrot.lane.b32.xlu0 %v5896_v38, %s6722_s7 }
 0x6b3   : > { %v1540_v35 = vpop.xlane.xlu1 %1539 }
 0x6b4   : > { %v1544_v36 = vsub.f32 %v1536_v31, %v1540_v35 }
 0x6b5   : > { %v1543_v39 = vpop.xlane.xlu0 %1542 }
 0x6b6   : > { %v1546_v40 = vmul.f32 1.442695, %v1544_v36  ;;  %v1545_v41 = vsub.f32 %v1537_v33, %v1543_v39 }
 0x6b8   : > { %5444 = vpow2.f32 %v1546_v40  ;;  %v1548_v42 = vmul.f32 1.442695, %v1545_v41 }
 0x6b9   : > { %v1725_v0 = vpop.permute.xlu0 %1724 }
 0x6ba   : > { %5446 = vpow2.f32 %v1548_v42  ;;  %v1730_v6 = vsel %vm1359_vm5, %v1725_v0, 0  ;;  %v5308_v42 = vld [vmem:[%s6701_s14 + $0x20] sm:$0xff]  }
 0x6c2   : > { %v5445_v43 = vpop.eup %5444 }
 0x6c3   : > { %v1550_v44 = vsel %vm1411_vm7, %v5445_v43, 0.0 }
 0x6c4   : > { %v5447_v45 = vpop.eup %5446  ;;  %1551 = vadd.xlane.f32.xlu1 %v1550_v44 }
 0x6c5   : > { %v1553_v46 = vsel %vm1411_vm7, %v5447_v45, 0.0 }
 0x6c8   : > { %1554 = vadd.xlane.f32.xlu1 %v1553_v46 }
 0x6d9   : > { %1562 = vrot.lane.b32.xlu1 %v5910_v47, %s6724_s2 }
 0x6dd   : > { %1722 = vrot.lane.b32.xlu1 %v5894_v37, %s6722_s7 }
 0x751   : > { %v1552_v52 = vpop.xlane.xlu1 %1551 }
 0x752   : > { %5448 = vrcp.f32 %v1552_v52 }
 0x755   : > { %v1555_v53 = vpop.xlane.xlu1 %1554 }
 0x756   : > { %5450 = vrcp.f32 %v1555_v53 }
 0x759   : > { %v1563_v54 = vpop.permute.xlu1 %1562 }
 0x75a   : > { %5035 = vmatpush3.bf16.msra.mxu1 %v1563_v54 }
 0x75b   : > { %5048 = vmatprep.subr.bf16.mxu1 %v5556_v1 }
 0x75c   : > { %v5449_v55 = vpop.eup %5448 }
 0x75d   : > { %v1558_v57 = vmul.f32 %v5449_v55, %v5445_v43  ;;  %v1723_v11 = vpop.permute.xlu1 %1722  ;;  %v5309_v55 = vld [vmem:[%s6701_s14 + $0x28] sm:$0xff]  }
 0x760   : > { %v5451_v56 = vpop.eup %5450 }
 0x761   : > { %v1559_v58 = vmul.f32 %v5451_v56, %v5447_v45 }
 0x763   : > { %v1560_v60 = vpack.c.bf16 %v1559_v58, %v1558_v57 }
 0x765   : > { %5037 = vmatmul.mubr.msk.bf16.vlgmr.msra.gmra.mrb[20].mxu1 %vm1411_vm7, %v1560_v60 }
 0x766   : > { %5049 = vmatpush3.bf16.msra.mxu1 %v5304_v59  ;;  %5052 = vmatprep.mubr.msk.bf16.mxu1 %vm5557_vm0, %v5556_v1 }
 0x767   : > { %5050 = vmatprep.subr.bf16.mxu1 %v5556_v1 }
 0x76a   : > { %5051 = vmatpush3.bf16.msra.mxu1 %v5305_v61 }
 0x76b   : > { %5062 = vmatprep.subr.bf16.mxu1 %v5556_v1 }
 0x76d   : > { %5053 = vmatmul.mubr.msk.bf16.vlgmr.msra.gmra.mrb[24].mxu1 %vm1359_vm5, %v1480_v23 }
 0x76e   : > { %5064 = vmatprep.mubr.msk.bf16.mxu1 %vm5557_vm0, %v5556_v1 }
 0x838   : > { %v1602_v62 = vpop.f32.mrb[20].mxu1 }
 0x839   : > { %v5038_v63 = vpop.f32.mrb[21].mxu1 }
 0x83a   : > { %v1605_v2 = vpop.f32.mrb[22].mxu1 }
 0x83b   : > { %v1609_v4 = vpack.c.bf16 %v1605_v2, %v1602_v62  ;;  %v5039_v5 = vpop.f32.mrb[23].mxu1 }
 0x83d   : > { %5045 = vmatmul.mubr.msk.bf16.vlgmr.msra.gmra.mrb[8].mxu0 %vm1359_vm5, %v1609_v4 }
 0x83e   : > { %5057 = vmatpush3.bf16.xpose.msra.mxu0 %v1730_v6  ;;  %5058 = vmatprep.mubr.msk.bf16.mxu0 %vm5557_vm0, %v5556_v1 }
 0x83f   : > { %5068 = vmatprep.subr.bf16.mxu0 %v5556_v1 }
 0x840   : > { %v1715_v7 = vpop.f32.mrb[24].mxu1 }
 0x841   : > { %v5054_v8 = vpop.f32.mrb[25].mxu1 }
 0x842   : > { %v1718_v9 = vpop.f32.mrb[26].mxu1 }
 0x843   : > { %v5055_v10 = vpop.f32.mrb[27].mxu1 }
 0x845   : > { %5059 = vmatmul.mubr.msk.bf16.vlgmr.msra.gmra.mrb[12].mxu0 %vm1359_vm5, %v1723_v11 }
 0x846   : > { %5072 = vmatprep.mubr.msk.bf16.mxu0 %vm5557_vm0, %v5556_v1  ;;  %5069 = vmatpush3.bf16.msra.mxu0 %v5308_v42 }
 0x847   : > { %5070 = vmatprep.subr.bf16.mxu0 %v5556_v1 }
 0x84a   : > { %5071 = vmatpush3.bf16.msra.mxu0 %v5309_v55  ;;  %v5312_v55 = vld [vmem:[%s6705_s18] ss:$8 sps:$4 sm:$0xff]  }
 0x84b   : > { %5082 = vmatprep.subr.bf16.mxu0 %v5556_v1 }
 0x910   : > { %v1659_v14 = vpop.f32.mrb[8].mxu0 }
 0x911   : > { %v5981_v15 = vadd.f32 %v1715_v7, %v1659_v14  ;;  %v5046_v16 = vpop.f32.mrb[9].mxu0 }
 0x912   : > { %v1662_v17 = vpop.f32.mrb[10].mxu0 }
 0x913   : > { %v5983_v18 = vadd.f32 %v1718_v9, %v1662_v17  ;;  %v5047_v19 = vpop.f32.mrb[11].mxu0 }
 0x918   : > { %v1766_v20 = vpop.f32.mrb[12].mxu0 }
 0x919   : > { %v1773_v21 = vmul.f32 0.17677669, %v1766_v20  ;;  %v5060_v22 = vpop.f32.mrb[13].mxu0 }
 0x91a   : > { %v1769_v23 = vpop.f32.mrb[14].mxu0 }
 0x91b   : > { %v1774_v24 = vmul.f32 0.17677669, %v1769_v23  ;;  %v5061_v25 = vpop.f32.mrb[15].mxu0  ;;  %v1775_v26 = vsel %vm1003_vm6, %v1773_v21, -1e+30 }
 0x91c   : > { %v1777_v27 = vsel %vm1411_vm7, %v1775_v26, -inf }
 0x91d   : > { %1778 = vmax.xlane.f32.xlu1 %v1777_v27  ;;  %v1776_v28 = vsel %vm1003_vm6, %v1774_v24, -1e+30 }
 0x91e   : > { %v1780_v29 = vsel %vm1411_vm7, %v1776_v28, -inf }
 0x91f   : > { %1781 = vmax.xlane.f32.xlu0 %v1780_v29 }
 0x9aa   : > { %v1779_v30 = vpop.xlane.xlu1 %1778 }
 0x9ab   : > { %v1783_v31 = vsub.f32 %v1775_v26, %v1779_v30 }
 0x9ac   : > { %v1782_v32 = vpop.xlane.xlu0 %1781 }
 0x9ad   : > { %v1785_v33 = vmul.f32 1.442695, %v1783_v31  ;;  %v1784_v34 = vsub.f32 %v1776_v28, %v1782_v32 }
 0x9af   : > { %5452 = vpow2.f32 %v1785_v33  ;;  %v1787_v35 = vmul.f32 1.442695, %v1784_v34 }
 0x9b1   : > { %5454 = vpow2.f32 %v1787_v35 }
 0x9b9   : > { %v5453_v36 = vpop.eup %5452 }
 0x9ba   : > { %v1789_v39 = vsel %vm1411_vm7, %v5453_v36, 0.0 }
 0x9bb   : > { %v5455_v40 = vpop.eup %5454  ;;  %1790 = vadd.xlane.f32.xlu0 %v1789_v39 }
 0x9bc   : > { %v1792_v41 = vsel %vm1411_vm7, %v5455_v40, 0.0 }
 0x9bd   : > { %1793 = vadd.xlane.f32.xlu1 %v1792_v41 }
 0x9ce   : > { %1908 = vrot.lane.b32.xlu1 %v5896_v38, %s6720_s10 }
 0x9d1   : > { %1800 = vrot.lane.b32.xlu0 %v5910_v47, %s6722_s7  ;;  %s6751_s7 = smov 96  }
 0x9d2   : > { %1906 = vrot.lane.b32.xlu1 %v5894_v37, %s6720_s10 }
 0xa48   : > { %v1791_v43 = vpop.xlane.xlu0 %1790 }
 0xa49   : > { %5456 = vrcp.f32 %v1791_v43 }
 0xa4a   : > { %v1794_v44 = vpop.xlane.xlu1 %1793 }
 0xa4b   : > { %5458 = vrcp.f32 %v1794_v44  ;;  %v4505_v44 = vld [vmem:[%s6702_s15] ss:$0 sm:$0xff] }
 0xa4c   : > { %v1801_v45 = vpop.permute.xlu0 %1800 }
 0xa4d   : > { %5063 = vmatpush3.bf16.msra.mxu1 %v1801_v45 }
 0xa4e   : > { %5076 = vmatprep.subr.bf16.mxu1 %v5556_v1  ;;  %v1909_v37 = vpop.permute.xlu1 %1908 }
 0xa4f   : > { %v1914_v53 = vsel %vm1359_vm5, %v1909_v37, 0 }
 0xa52   : > { %v1907_v54 = vpop.permute.xlu1 %1906 }
 0xa53   : > { %v5457_v38 = vpop.eup %5456 }
 0xa54   : > { %v1797_v50 = vmul.f32 %v5457_v38, %v5453_v36 }
 0xa55   : > { %v5459_v46 = vpop.eup %5458 }
 0xa56   : > { %v1798_v51 = vmul.f32 %v5459_v46, %v5455_v40 }
 0xa58   : > { %v1799_v52 = vpack.c.bf16 %v1798_v51, %v1797_v50 }
 0xa5a   : > { %5065 = vmatmul.mubr.msk.bf16.vlgmr.msra.gmra.mrb[28].mxu1 %vm1411_vm7, %v1799_v52 }
 0xa5b   : > { %5077 = vmatpush3.bf16.xpose.msra.mxu1 %v1914_v53  ;;  %5078 = vmatprep.mubr.msk.bf16.mxu1 %vm5557_vm0, %v5556_v1 }
 0xa5c   : > { %5088 = vmatprep.subr.bf16.mxu1 %v5556_v1 }
 0xa62   : > { %5079 = vmatmul.mubr.msk.bf16.vlgmr.msra.gmra.mrb[32].mxu1 %vm1359_vm5, %v1907_v54 }
 0xa63   : > { %5092 = vmatprep.mubr.msk.bf16.mxu1 %vm5557_vm0, %v5556_v1 }
 0xb2d   : > { %v1840_v56 = vpop.f32.mrb[28].mxu1 }
 0xb2e   : > { %v5066_v57 = vpop.f32.mrb[29].mxu1 }
 0xb2f   : > { %v1843_v58 = vpop.f32.mrb[30].mxu1  ;;  %v5317_v57 = vld [vmem:[%s6705_s18 + $0x14] ss:$8 sps:$4 sm:$0xff]  }
 0xb30   : > { %v1847_v59 = vpack.c.bf16 %v1843_v58, %v1840_v56  ;;  %v5067_v60 = vpop.f32.mrb[31].mxu1  ;;  %v5314_v56 = vld [vmem:[%s6705_s18 + $0x4] ss:$8 sps:$4 sm:$0xff]  }
 0xb32   : > { %5073 = vmatmul.mubr.msk.bf16.vlgmr.msra.gmra.mrb[16].mxu0 %vm1359_vm5, %v1847_v59 }
 0xb33   : > { %5084 = vmatprep.mubr.msk.bf16.mxu0 %vm5557_vm0, %v5556_v1 }
 0xb35   : > { %v1950_v61 = vpop.f32.mrb[32].mxu1 }
 0xb36   : > { %v1957_v62 = vmul.f32 0.17677669, %v1950_v61  ;;  %v5080_v63 = vpop.f32.mrb[33].mxu1 }
 0xb37   : > { %v1953_v0 = vpop.f32.mrb[34].mxu1 }
 0xb38   : > { %v1958_v2 = vmul.f32 0.17677669, %v1953_v0  ;;  %v5081_v4 = vpop.f32.mrb[35].mxu1  ;;  %v1959_v5 = vsel %vm1003_vm6, %v1957_v62, -1e+30 }
 0xb39   : > { %v1961_v6 = vsel %vm1411_vm7, %v1959_v5, -inf  ;;  %v5318_v4 = vld [vmem:[%s6705_s18 + $0x20] ss:$8 sps:$4 sm:$0xff]  }
 0xb3a   : > { %1962 = vmax.xlane.f32.xlu0 %v1961_v6  ;;  %v1960_v7 = vsel %vm1003_vm6, %v1958_v2, -1e+30  ;;  %v5320_v2 = vld [vmem:[%s6705_s18 + $0x24] ss:$8 sps:$4 sm:$0xff]   ;;  %v5321_v6 = vld [vmem:[%s6705_s18 + $0x30] ss:$8 sps:$4 sm:$0xff]  }
 0xb3b   : > { %v1964_v8 = vsel %vm1411_vm7, %v1960_v7, -inf }
 0xb3c   : > { %1965 = vmax.xlane.f32.xlu1 %v1964_v8  ;;  %v5324_v8 = vld [vmem:[%s6705_s18 + $0x40] ss:$8 sps:$4 sm:$0xff]  }
 0xb4d   : > { %1984 = vrot.lane.b32.xlu1 %v5910_v47, %s6720_s10  ;;  %v5310_v47 = vld [vmem:[%s6701_s14 + $0x30] sm:$0xff]  }
 0xb4e   : > { %5089 = vmatpush3.bf16.msra.mxu1 %v5310_v47 }
 0xb4f   : > { %5090 = vmatprep.subr.bf16.mxu1 %v5556_v1 }
 0xbc7   : > { %v1963_v9 = vpop.xlane.xlu0 %1962 }
 0xbc8   : > { %v1967_v10 = vsub.f32 %v1959_v5, %v1963_v9  ;;  %v5323_v5 = vld [vmem:[%s6705_s18 + $0x34] ss:$8 sps:$4 sm:$0xff]  }
 0xbc9   : > { %v1966_v11 = vpop.xlane.xlu1 %1965  ;;  %v5329_v9 = vld [vmem:[%s6705_s18 + $0x54] ss:$8 sps:$4 sm:$0xff]  }
 0xbca   : > { %v1969_v14 = vmul.f32 1.442695, %v1967_v10  ;;  %v1968_v16 = vsub.f32 %v1960_v7, %v1966_v11  ;;  %v5326_v7 = vld [vmem:[%s6705_s18 + $0x44] ss:$8 sps:$4 sm:$0xff]   ;;  %v5327_v10 = vld [vmem:[%s6705_s18 + $0x50] ss:$8 sps:$4 sm:$0xff]  }
 0xbcb   : > { %v5332_v11 = vld [vmem:[%s6705_s18 + $0x64] ss:$8 sps:$4 sm:$0xff]  }
 0xbcc   : > { %5460 = vpow2.f32 %v1969_v14  ;;  %v1971_v17 = vmul.f32 1.442695, %v1968_v16  ;;  %v5330_v14 = vld [vmem:[%s6705_s18 + $0x60] ss:$8 sps:$4 sm:$0xff]   ;;  %v5335_v16 = vld [vmem:[%s6705_s18 + $0x74] ss:$8 sps:$4 sm:$0xff]  }
 0xbcd   : > { %v1985_v19 = vpop.permute.xlu1 %1984 }
 0xbce   : > { %5462 = vpow2.f32 %v1971_v17  ;;  %5083 = vmatpush3.bf16.msra.mxu0 %v1985_v19  ;;  %v5333_v17 = vld [vmem:[%s6705_s18 + $0x70] ss:$8 sps:$4 sm:$0xff]  }
 0xbcf   : > { %2250 = vmatprep.subr.bf16.mxu0 %v5314_v56 }
 0xbd6   : > { %v5461_v20 = vpop.eup %5460 }
 0xbd7   : > { %v1973_v21 = vsel %vm1411_vm7, %v5461_v20, 0.0 }
 0xbd8   : > { %v5463_v22 = vpop.eup %5462  ;;  %1974 = vadd.xlane.f32.xlu0 %v1973_v21 }
 0xbd9   : > { %v1976_v23 = vsel %vm1411_vm7, %v5463_v22, 0.0 }
 0xbdc   : > { %1977 = vadd.xlane.f32.xlu0 %v1976_v23 }
 0xc05   : > { %v1897_v24 = vpop.f32.mrb[16].mxu0 }
 0xc06   : > { %v1904_v25 = vadd.f32 %v1897_v24, %v5981_v15  ;;  %v5074_v26 = vpop.f32.mrb[17].mxu0  ;;  %v5311_v15 = vld [vmem:[%s6701_s14 + $0x38] sm:$0xff]  }
 0xc07   : > { %v1900_v27 = vpop.f32.mrb[18].mxu0  ;;  %5091 = vmatpush3.bf16.msra.mxu1 %v5311_v15  ;;  %v4506_v26 = vld [vmem:[%s6703_s16] ss:$0 sm:$0xff]  ;;  %v5338_v15 = vld [vmem:[%s6707_s20 + $0x48] sm:$0xff]  }
 0xc08   : > { %v1905_v28 = vadd.f32 %v1900_v27, %v5983_v18  ;;  %v5075_v29 = vpop.f32.mrb[19].mxu0 }
 0xc65   : > { %v1975_v30 = vpop.xlane.xlu0 %1974 }
 0xc66   : > { %5464 = vrcp.f32 %v1975_v30  ;;  %v4507_v30 = vld [vmem:[%s6704_s17] ss:$0 sm:$0xff] }
 0xc69   : > { %v1978_v31 = vpop.xlane.xlu0 %1977 }
 0xc6a   : > { %5466 = vrcp.f32 %v1978_v31 }
 0xc70   : > { %v5465_v32 = vpop.eup %5464 }
 0xc71   : > { %v1981_v34 = vmul.f32 %v5465_v32, %v5461_v20 }
 0xc74   : > { %v5467_v33 = vpop.eup %5466 }
 0xc75   : > { %v1982_v35 = vmul.f32 %v5467_v33, %v5463_v22 }
 0xc77   : > { %v1983_v36 = vpack.c.bf16 %v1982_v35, %v1981_v34  ;;  %v5336_v35 = vld [vmem:[%s6707_s20 + $0x40] sm:$0xff]  }
 0xc78   : > { %4828 = vmatprep.subr.bf16.mxu1 %v5336_v35 }
 0xc79   : > { %5085 = vmatmul.mubr.msk.bf16.vlgmr.msra.gmra.mrb[20].mxu0 %vm1411_vm7, %v1983_v36  ;;  %v5337_v36 = vld [vmem:[%s6707_s20] sm:$0xff]  }
 0xc7a   : > { %2282 = vmatprep.mubr.bf16.mxu0 %v5558_v3  ;;  %2251 = vmatpush1.bf16.msra.mxu0 %v5312_v55 }
 0xc7b   : > { %2252 = vmatprep.subr.bf16.mxu0 %v5317_v57 }
 0xd4c   : > { %v2024_v18 = vpop.f32.mrb[20].mxu0 }
 0xd4d   : > { %v5086_v39 = vpop.f32.mrb[21].mxu0 }
 0xd4e   : > { %v2027_v40 = vpop.f32.mrb[22].mxu0  ;;  %v5340_v39 = vld [vmem:[%s6707_s20 + $0x50] sm:$0xff]  }
 0xd4f   : > { %v2031_v41 = vpack.c.bf16 %v2027_v40, %v2024_v18  ;;  %v5087_v42 = vpop.f32.mrb[23].mxu0  ;;  %v5339_v18 = vld [vmem:[%s6707_s20 + $0x8] sm:$0xff]   ;;  %v5341_v40 = vld [vmem:[%s6707_s20 + $0x10] sm:$0xff]  }
 0xd50   : > { %v5343_v42 = vld [vmem:[%s6707_s20 + $0x18] sm:$0xff]  }
 0xd51   : > { %5093 = vmatmul.mubr.msk.bf16.vlgmr.msra.gmra.mrb[36].mxu1 %vm1359_vm5, %v2031_v41  ;;  %v5342_v41 = vld [vmem:[%s6707_s20 + $0x58] sm:$0xff]  }
 0xd52   : > { %4829 = vmatpush3.bf16.msra.mxu1 %v5337_v36 }
 0xd53   : > { %4830 = vmatprep.subr.bf16.mxu1 %v5338_v15 }
 0xd56   : > { %4831 = vmatpush3.bf16.msra.mxu1 %v5339_v18 }
 0xd57   : > { %4832 = vmatprep.subr.bf16.mxu1 %v5340_v39 }
 0xd5a   : > { %4833 = vmatpush3.bf16.msra.mxu1 %v5341_v40 }
 0xd5b   : > { %4834 = vmatprep.subr.bf16.mxu1 %v5342_v41 }
 0xd5e   : > { %4835 = vmatpush3.bf16.msra.mxu1 %v5343_v42 }
 0xe24   : > { %v2081_v43 = vpop.f32.mrb[36].mxu1 }
 0xe25   : > { %v2088_v45 = vadd.f32 %v2081_v43, %v1904_v25  ;;  %v5094_v38 = vpop.f32.mrb[37].mxu1  ;;  %v5344_v43 = vld [vmem:[%s6707_s20 + $0x60] sm:$0xff]  }
 0xe26   : > { %v2084_v46 = vpop.f32.mrb[38].mxu1  ;;  %4836 = vmatprep.subr.bf16.mxu1 %v5344_v43  ;;  %v5347_v38 = vld [vmem:[%s6707_s20 + $0x28] sm:$0xff]  }
 0xe27   : > { %v2097_v50 = vadd.f32 %v4505_v44, %v2088_v45  ;;  %v2089_v51 = vadd.f32 %v2084_v46, %v1905_v28  ;;  %v5095_v37 = vpop.f32.mrb[39].mxu1  ;;  %v5346_v45 = vld [vmem:[%s6707_s20 + $0x68] sm:$0xff]   ;;  %v5348_v46 = vld [vmem:[%s6707_s20 + $0x70] sm:$0xff]  }
 0xe28   : > { %v5351_v37 = vld [vmem:[%s6707_s20 + $0x38] sm:$0xff]  }
 0xe29   : > { %v2098_v52 = vadd.f32 %v4505_v44, %v2089_v51  ;;  %v2099_v53 = vadd.f32 %v2097_v50, %v5844_v12  ;;  %v5315_v12 = vld [vmem:[%s6705_s18 + $0x10] ss:$8 sps:$4 sm:$0xff]   ;;  %v5345_v44 = vld [vmem:[%s6707_s20 + $0x20] sm:$0xff]  }
 0xe2a   : > { %2253 = vmatpush1.bf16.msra.mxu0 %v5315_v12  ;;  %4837 = vmatpush3.bf16.msra.mxu1 %v5345_v44  ;;  %v5349_v50 = vld [vmem:[%s6707_s20 + $0x30] sm:$0xff]   ;;  %v5350_v51 = vld [vmem:[%s6707_s20 + $0x78] sm:$0xff]  }
 0xe2b   : > { %2103 = vadd.xlane.f32.xlu0 %v2099_v53  ;;  %v2100_v54 = vadd.f32 %v2098_v52, %v5846_v13  ;;  %2254 = vmatprep.subr.bf16.mxu0 %v5320_v2  ;;  %v6159_v52 = vshrl.u32 %v1001_v48, 7 }
 0xe2c   : > { %4838 = vmatprep.subr.bf16.mxu1 %v5346_v45 }
 0xe2d   : > { %v2166_v55 = vsub.s32 1, %v6159_v52 }
 0xe2e   : > { %2255 = vmatpush1.bf16.msra.mxu0 %v5318_v4  ;;  %4839 = vmatpush3.bf16.msra.mxu1 %v5347_v38 }
 0xe2f   : > { %2105 = vadd.xlane.f32.xlu0 %v2100_v54  ;;  %2256 = vmatprep.subr.bf16.mxu0 %v5323_v5 }
 0xe30   : > { %4840 = vmatprep.subr.bf16.mxu1 %v5348_v46 }
 0xe32   : > { %2257 = vmatpush1.bf16.msra.mxu0 %v5321_v6  ;;  %4841 = vmatpush3.bf16.msra.mxu1 %v5349_v50 }
 0xe33   : > { %2258 = vmatprep.subr.bf16.mxu0 %v5326_v7  ;;  %4842 = vmatprep.subr.bf16.mxu1 %v5350_v51 }
 0xe36   : > { %2259 = vmatpush1.bf16.msra.mxu0 %v5324_v8  ;;  %4843 = vmatpush3.bf16.msra.mxu1 %v5351_v37 }
 0xe37   : > { %2260 = vmatprep.subr.bf16.mxu0 %v5329_v9  ;;  %5116 = vmatprep.subr.bf16.mxu1 %v5556_v1 }
 0xe3a   : > { %2261 = vmatpush1.bf16.msra.mxu0 %v5327_v10 }
 0xe3b   : > { %2262 = vmatprep.subr.bf16.mxu0 %v5332_v11 }
 0xe3e   : > { %2263 = vmatpush1.bf16.msra.mxu0 %v5330_v14 }
 0xe3f   : > { %2264 = vmatprep.subr.bf16.mxu0 %v5335_v16 }
 0xe42   : > { %2265 = vmatpush1.bf16.msra.mxu0 %v5333_v17 }
 0xe43   : > { %5096 = vmatprep.subr.bf16.mxu0 %v5556_v1 }
 0xeb8   : > { %v2104_v13 = vpop.xlane.xlu0 %2103 }
 0xeb9   : > { %v2107_v58 = vmul.f32 0.0078125, %v2104_v13 }
 0xebb   : > { %v2109_v59 = vsub.f32 %v2099_v53, %v2107_v58  ;;  %v2162_v53 = vsub.s32 0, %v6159_v52 }
 0xebc   : > { %v2106_v60 = vpop.xlane.xlu0 %2105 }
 0xebd   : > { %v2108_v61 = vmul.f32 0.0078125, %v2106_v60  ;;  %v2111_v62 = vmul.f32 %v2109_v59, %v2109_v59 }
 0xebf   : > { %v2110_v63 = vsub.f32 %v2100_v54, %v2108_v61  ;;  %2113 = vadd.xlane.f32.xlu0 %v2111_v62  ;;  %v2158_v54 = vld [vmem:[%s6706_s19] sm:$0x3] }
 0xec0   : > { %v2163_v56 = vrot.slane %v2158_v54, %v2162_v53  ;;  %v2167_v57 = vrot.slane %v2158_v54, %v2166_v55 }
 0xec1   : > { %v2112_v0 = vmul.f32 %v2110_v63, %v2110_v63 }
 0xec3   : > { %2115 = vadd.xlane.f32.xlu0 %v2112_v0 }
 0xf4c   : > { %v2114_v19 = vpop.xlane.xlu0 %2113 }
 0xf4d   : > { %v2117_v20 = vmul.f32 0.0078125, %v2114_v19 }
 0xf4f   : > { %v2119_v21 = vadd.f32 1e-12, %v2117_v20 }
 0xf50   : > { %v2116_v22 = vpop.xlane.xlu0 %2115 }
 0xf51   : > { %5468 = vrsqrt.f32 %v2119_v21  ;;  %v2118_v23 = vmul.f32 0.0078125, %v2116_v22 }
 0xf53   : > { %v2120_v47 = vadd.f32 1e-12, %v2118_v23 }
 0xf55   : > { %5470 = vrsqrt.f32 %v2120_v47 }
 0xf5b   : > { %v5469_v24 = vpop.eup %5468 }
 0xf5c   : > { %v2123_v25 = vmul.f32 %v5469_v24, %v2109_v59 }
 0xf5e   : > { %v2131_v29 = vmul.f32 %v4506_v26, %v2123_v25 }
 0xf5f   : > { %v5471_v27 = vpop.eup %5470 }
 0xf60   : > { %v2124_v28 = vmul.f32 %v5471_v27, %v2110_v63  ;;  %v6101_v32 = vadd.f32 %v4507_v30, %v2131_v29 }
 0xf62   : > { %v2132_v31 = vmul.f32 %v4506_v26, %v2124_v28 }
 0xf64   : > { %v6103_v33 = vadd.f32 %v4507_v30, %v2132_v31 }
 0xf66   : > { %v2141_v34 = vpack.c.bf16 %v6103_v33, %v6101_v32 }
 0xf68   : > { %2283 = vmatmul.mubr.bf16.vlgmr.msra.gmra.mrb[24].mxu0 %v2141_v34 }
 0xf69   : > { %5112 = vmatprep.mubr.msk.bf16.mxu0 %vm5557_vm0, %v5556_v1 }
0x103b   : > { %v2284_v12 = vpop.f32.mrb[24].mxu0 }
0x103c   : > { %v6170_v13 = vadd.f32 %v2284_v12, %v2163_v56  ;;  %v2286_v58 = vpop.f32.mrb[25].mxu0 }
0x103d   : > { %v6172_v48 = vadd.f32 %v2286_v58, %v2167_v57  ;;  %v2288_v59 = vpop.f32.mrb[26].mxu0 }
0x103e   : > { %v6175_v60 = vmul.f32 0.70710677, %v6170_v13  ;;  %v6177_v61 = vadd.f32 %v2288_v59, %v2163_v56  ;;  %v2290_v62 = vpop.f32.mrb[27].mxu0 }
0x103f   : > { %v6180_v63 = vmul.f32 0.70710677, %v6172_v48  ;;  %v6186_v4 = vadd.f32 %v2290_v62, %v2167_v57 }
0x1040   : > { %v2309_v0 = vand.u32 2147483647, %v6175_v60  ;;  %v6184_v2 = vmul.f32 0.70710677, %v6177_v61  ;;  %vm2301_vm8 = vcmp.ge.f32.partialorder %v6175_v60, 0.0 }
0x1041   : > { %v2310_v5 = vand.u32 2147483647, %v6180_v63  ;;  %v6191_v10 = vmul.f32 0.70710677, %v6186_v4  ;;  %vm2302_vm9 = vcmp.ge.f32.partialorder %v6180_v63, 0.0 }
0x1042   : > { %v2313_v6 = vmul.f32 0.3275911, %v2309_v0  ;;  %v2311_v8 = vand.u32 2147483647, %v6184_v2  ;;  %v2365_v21 = vsub.f32 0.0, %v2309_v0  ;;  %vm2303_vm10 = vcmp.ge.f32.partialorder %v6184_v2, 0.0 }
0x1043   : > { %v2314_v7 = vmul.f32 0.3275911, %v2310_v5  ;;  %v2312_v16 = vand.u32 2147483647, %v6191_v10  ;;  %v2366_v22 = vsub.f32 0.0, %v2310_v5  ;;  %vm2304_vm11 = vcmp.ge.f32.partialorder %v6191_v10, 0.0 }
0x1044   : > { %v2317_v9 = vadd.f32 1.0, %v2313_v6  ;;  %v2315_v14 = vmul.f32 0.3275911, %v2311_v8  ;;  %v2369_v47 = vmul.f32 %v2365_v21, %v2309_v0  ;;  %v2367_v24 = vsub.f32 0.0, %v2311_v8 }
0x1045   : > { %v2318_v11 = vadd.f32 1.0, %v2314_v7  ;;  %v2316_v19 = vmul.f32 0.3275911, %v2312_v16  ;;  %v2370_v27 = vmul.f32 %v2366_v22, %v2310_v5  ;;  %v2368_v29 = vsub.f32 0.0, %v2312_v16 }
0x1046   : > { %5472 = vrcp.f32 %v2317_v9  ;;  %v2319_v17 = vadd.f32 1.0, %v2315_v14  ;;  %v2373_v34 = vmul.f32 1.442695, %v2369_v47  ;;  %v2371_v36 = vmul.f32 %v2367_v24, %v2311_v8 }
0x1047   : > { %5474 = vrcp.f32 %v2318_v11  ;;  %v2320_v20 = vadd.f32 1.0, %v2316_v19  ;;  %v2375_v18 = vmul.f32 1.442695, %v2370_v27  ;;  %v2372_v42 = vmul.f32 %v2368_v29, %v2312_v16 }
0x1048   : > { %5476 = vrcp.f32 %v2319_v17  ;;  %v2377_v46 = vmul.f32 1.442695, %v2371_v36  ;;  %v2296_v10 = vmul.f32 0.5, %v6186_v4 }
0x1049   : > { %5478 = vrcp.f32 %v2320_v20  ;;  %v2379_v56 = vmul.f32 1.442695, %v2372_v42 }
0x104a   : > { %5480 = vpow2.f32 %v2373_v34  ;;  %v5562_v34 = vmov -1.0  }
0x104b   : > { %5482 = vpow2.f32 %v2375_v18  ;;  %v2306_v18 = vsel %vm2302_vm9, 1.0, %v5562_v34 }
0x104c   : > { %5484 = vpow2.f32 %v2377_v46 }
0x104d   : > { %5486 = vpow2.f32 %v2379_v56 }
0x1050   : > { %v5473_v23 = vpop.eup %5472 }
0x1051   : > { %v5475_v25 = vpop.eup %5474  ;;  %v2329_v26 = vmul.f32 1.0614054, %v5473_v23 }
0x1052   : > { %v2330_v28 = vmul.f32 1.0614054, %v5475_v25  ;;  %v5477_v31 = vpop.eup %5476 }
0x1053   : > { %v2333_v30 = vadd.f32 -1.4531521, %v2329_v26  ;;  %v2331_v39 = vmul.f32 1.0614054, %v5477_v31  ;;  %v5479_v40 = vpop.eup %5478 }
0x1054   : > { %v2334_v35 = vadd.f32 -1.4531521, %v2330_v28  ;;  %v2332_v45 = vmul.f32 1.0614054, %v5479_v40  ;;  %v5481_v19 = vpop.eup %5480 }
0x1055   : > { %v2337_v15 = vmul.f32 %v5473_v23, %v2333_v30  ;;  %v2335_v44 = vadd.f32 -1.4531521, %v2331_v39  ;;  %v5483_v21 = vpop.eup %5482 }
0x1056   : > { %v2338_v41 = vmul.f32 %v5475_v25, %v2334_v35  ;;  %v2336_v37 = vadd.f32 -1.4531521, %v2332_v45  ;;  %v5485_v30 = vpop.eup %5484  ;;  %v2293_v45 = vmul.f32 0.5, %v6170_v13 }
0x1057   : > { %v2341_v43 = vadd.f32 1.4214138, %v2337_v15  ;;  %v2339_v51 = vmul.f32 %v5477_v31, %v2335_v44  ;;  %v5487_v60 = vpop.eup %5486 }
0x1058   : > { %v2342_v38 = vadd.f32 1.4214138, %v2338_v41  ;;  %v2340_v58 = vmul.f32 %v5479_v40, %v2336_v37 }
0x1059   : > { %v2345_v50 = vmul.f32 %v5473_v23, %v2341_v43  ;;  %v2343_v12 = vadd.f32 1.4214138, %v2339_v51  ;;  %v2294_v51 = vmul.f32 0.5, %v6172_v48 }
0x105a   : > { %v2346_v54 = vmul.f32 %v5475_v25, %v2342_v38  ;;  %v2344_v5 = vadd.f32 1.4214138, %v2340_v58  ;;  %v2308_v38 = vsel %vm2304_vm11, 1.0, %v5562_v34 }
0x105b   : > { %v2349_v57 = vadd.f32 -0.28449672, %v2345_v50  ;;  %v2347_v0 = vmul.f32 %v5477_v31, %v2343_v12 }
0x105c   : > { %v2350_v59 = vadd.f32 -0.28449672, %v2346_v54  ;;  %v2348_v9 = vmul.f32 %v5479_v40, %v2344_v5 }
0x105d   : > { %v2353_v62 = vmul.f32 %v5473_v23, %v2349_v57  ;;  %v2351_v8 = vadd.f32 -0.28449672, %v2347_v0 }
0x105e   : > { %v2354_v6 = vmul.f32 %v5475_v25, %v2350_v59  ;;  %v2352_v17 = vadd.f32 -0.28449672, %v2348_v9 }
0x105f   : > { %v2357_v7 = vadd.f32 0.2548296, %v2353_v62  ;;  %v2355_v16 = vmul.f32 %v5477_v31, %v2351_v8 }
0x1060   : > { %v2358_v11 = vadd.f32 0.2548296, %v2354_v6  ;;  %v2356_v24 = vmul.f32 %v5479_v40, %v2352_v17 }
0x1061   : > { %v2361_v14 = vmul.f32 %v5473_v23, %v2357_v7  ;;  %v2359_v47 = vadd.f32 0.2548296, %v2355_v16  ;;  %v2305_v23 = vsel %vm2301_vm8, 1.0, %v5562_v34  ;;  %v5354_v16 = vld [vmem:[%s6746_s29 + $0x48] sm:$0xff]  }
0x1062   : > { %v2362_v20 = vmul.f32 %v5475_v25, %v2358_v11  ;;  %v2360_v29 = vadd.f32 0.2548296, %v2356_v24  ;;  %v5352_v11 = vld [vmem:[%s6746_s29 + $0x40] sm:$0xff]   ;;  %v5355_v24 = vld [vmem:[%s6747_s5 + $0x48] sm:$0xff]  }
0x1063   : > { %v2381_v22 = vmul.f32 %v5481_v19, %v2361_v14  ;;  %v2363_v28 = vmul.f32 %v5477_v31, %v2359_v47  ;;  %v2307_v31 = vsel %vm2303_vm10, 1.0, %v5562_v34  ;;  %v5353_v14 = vld [vmem:[%s6747_s5 + $0x40] sm:$0xff]   ;;  %5097 = vmatpush3.bf16.msra.mxu0 %v5352_v11 }
0x1064   : > { %v2382_v26 = vmul.f32 %v5483_v21, %v2362_v20  ;;  %v2364_v15 = vmul.f32 %v5479_v40, %v2360_v29  ;;  %v2295_v40 = vmul.f32 0.5, %v6177_v61  ;;  %v4524_v61 = vld [vmem:[%s6708_s21] ss:$0 sm:$0xff]  ;;  %5098 = vmatprep.subr.bf16.mxu0 %v5556_v1  ;;  %v5359_v29 = vld [vmem:[%s6747_s5 + $0x58] sm:$0xff]  }
0x1065   : > { %v2385_v27 = vsub.f32 1.0, %v2381_v22  ;;  %v2383_v25 = vmul.f32 %v5485_v30, %v2363_v28  ;;  %v5358_v28 = vld [vmem:[%s6746_s29 + $0x58] sm:$0xff]   ;;  %v5360_v30 = vld [vmem:[%s6746_s29 + $0x60] sm:$0xff]  }
0x1066   : > { %v2386_v35 = vsub.f32 1.0, %v2382_v26  ;;  %v2384_v63 = vmul.f32 %v5487_v60, %v2364_v15  ;;  %v5356_v26 = vld [vmem:[%s6746_s29 + $0x50] sm:$0xff]   ;;  %v5366_v60 = vld [vmem:[%s6746_s29 + $0x78] sm:$0xff]  }
0x1067   : > { %v2389_v36 = vmul.f32 %v2385_v27, %v2305_v23  ;;  %v2387_v41 = vsub.f32 1.0, %v2383_v25  ;;  %5099 = vmatpush3.bf16.msra.mxu0 %v5354_v16  ;;  %v5357_v27 = vld [vmem:[%s6747_s5 + $0x50] sm:$0xff]   ;;  %v5361_v23 = vld [vmem:[%s6747_s5 + $0x60] sm:$0xff]  }
0x1068   : > { %v2390_v39 = vmul.f32 %v2386_v35, %v2306_v18  ;;  %v2388_v44 = vsub.f32 1.0, %v2384_v63  ;;  %5100 = vmatprep.subr.bf16.mxu0 %v5556_v1  ;;  %v5362_v35 = vld [vmem:[%s6746_s29 + $0x68] sm:$0xff]   ;;  %v5364_v25 = vld [vmem:[%s6746_s29 + $0x70] sm:$0xff]   ;;  %v5367_v18 = vld [vmem:[%s6747_s5 + $0x78] sm:$0xff]  }
0x1069   : > { %v2393_v42 = vadd.f32 1.0, %v2389_v36  ;;  %v2391_v43 = vmul.f32 %v2387_v41, %v2307_v31  ;;  %v5363_v36 = vld [vmem:[%s6747_s5 + $0x68] sm:$0xff]   ;;  %v5365_v15 = vld [vmem:[%s6747_s5 + $0x70] sm:$0xff]  }
0x106a   : > { %v2394_v2 = vadd.f32 1.0, %v2390_v39  ;;  %v2392_v50 = vmul.f32 %v2388_v44, %v2308_v38  ;;  %v4541_v38 = vld [vmem:[%s6709_s22] ss:$0 sm:$0xff] }
0x106b   : > { %v2395_v46 = vadd.f32 1.0, %v2391_v43  ;;  %v2397_v37 = vmul.f32 %v2393_v42, %v2293_v45  ;;  %5101 = vmatpush3.bf16.msra.mxu0 %v5356_v26 }
0x106c   : > { %v2396_v56 = vadd.f32 1.0, %v2392_v50  ;;  %v2398_v57 = vmul.f32 %v2394_v2, %v2294_v51  ;;  %5102 = vmatprep.subr.bf16.mxu0 %v5556_v1  ;;  %v4542_v50 = vld [vmem:[%s6710_s23] ss:$0 sm:$0xff] }
0x106d   : > { %v2399_v54 = vmul.f32 %v2395_v46, %v2295_v40 }
0x106e   : > { %v2400_v58 = vmul.f32 %v2396_v56, %v2296_v10  ;;  %v5368_v10 = vld [vmem:[%s6699_s12 + $0x40] sm:$0xff]  }
0x106f   : > { %v2401_v12 = vpack.c.bf16 %v2399_v54, %v2397_v37  ;;  %5103 = vmatpush3.bf16.msra.mxu0 %v5358_v28 }
0x1070   : > { %v2402_v59 = vpack.c.bf16 %v2400_v58, %v2398_v57  ;;  %5104 = vmatprep.subr.bf16.mxu0 %v5556_v1  ;;  %v5369_v57 = vld [vmem:[%s6699_s12 + $0x48] sm:$0xff]   ;;  %v5371_v58 = vld [vmem:[%s6699_s12 + $0x58] sm:$0xff]  }
0x1072   : > { %2570 = vmatprep.mubr.bf16.mxu1 %v2402_v59  ;;  %v5372_v59 = vld [vmem:[%s6699_s12 + $0x60] sm:$0xff]  }
0x1073   : > { %2571 = vmatmul.mubr.bf16.vlgmr.msra.gmra.mrb[40].mxu1 %v2401_v12  ;;  %5105 = vmatpush3.bf16.msra.mxu0 %v5360_v30  ;;  %v5370_v12 = vld [vmem:[%s6699_s12 + $0x50] sm:$0xff]  }
0x1074   : > { %5132 = vmatprep.mubr.msk.bf16.mxu1 %vm5557_vm0, %v5556_v1  ;;  %5117 = vmatpush3.bf16.msra.mxu1 %v5353_v14 }
0x1075   : > { %5118 = vmatprep.subr.bf16.mxu1 %v5556_v1  ;;  %5106 = vmatprep.subr.bf16.mxu0 %v5556_v1 }
0x1077   : > { %5107 = vmatpush3.bf16.msra.mxu0 %v5362_v35 }
0x1078   : > { %5119 = vmatpush3.bf16.msra.mxu1 %v5355_v24  ;;  %5108 = vmatprep.subr.bf16.mxu0 %v5556_v1 }
0x1079   : > { %5120 = vmatprep.subr.bf16.mxu1 %v5556_v1 }
0x107b   : > { %5109 = vmatpush3.bf16.msra.mxu0 %v5364_v25 }
0x107c   : > { %5121 = vmatpush3.bf16.msra.mxu1 %v5357_v27  ;;  %5110 = vmatprep.subr.bf16.mxu0 %v5556_v1 }
0x107d   : > { %5122 = vmatprep.subr.bf16.mxu1 %v5556_v1 }
0x107f   : > { %5111 = vmatpush3.bf16.msra.mxu0 %v5366_v60 }
0x1080   : > { %5123 = vmatpush3.bf16.msra.mxu1 %v5359_v29  ;;  %5136 = vmatprep.subr.bf16.mxu0 %v5556_v1 }
0x1081   : > { %5124 = vmatprep.subr.bf16.mxu1 %v5556_v1 }
0x1084   : > { %5125 = vmatpush3.bf16.msra.mxu1 %v5361_v23 }
0x1085   : > { %5126 = vmatprep.subr.bf16.mxu1 %v5556_v1 }
0x1088   : > { %5127 = vmatpush3.bf16.msra.mxu1 %v5363_v36 }
0x1089   : > { %5128 = vmatprep.subr.bf16.mxu1 %v5556_v1 }
0x108c   : > { %5129 = vmatpush3.bf16.msra.mxu1 %v5365_v15 }
0x108d   : > { %5130 = vmatprep.subr.bf16.mxu1 %v5556_v1 }
0x1090   : > { %5131 = vmatpush3.bf16.msra.mxu1 %v5367_v18 }
0x1091   : > { %5156 = vmatprep.subr.bf16.mxu1 %v5556_v1 }
0x1146   : > { %v4844_v13 = vpop.f32.mrb[40].mxu1 }
0x1147   : > { %v4845_v48 = vpop.f32.mrb[41].mxu1 }
0x1148   : > { %v4846_v62 = vadd.f32 %v4845_v48, %v4844_v13  ;;  %v4847_v0 = vpop.f32.mrb[42].mxu1  ;;  %v5373_v13 = vld [vmem:[%s6699_s12 + $0x68] sm:$0xff]   ;;  %v5375_v48 = vld [vmem:[%s6699_s12 + $0x78] sm:$0xff]  }
0x1149   : > { %v4848_v5 = vpop.f32.mrb[43].mxu1 }
0x114a   : > { %v2573_v4 = vadd.f32 %v4846_v62, %v4524_v61  ;;  %v4849_v6 = vadd.f32 %v4848_v5, %v4847_v0  ;;  %v4608_v62 = vld [vmem:[%s6750_s28 + $0x1] ss:$0 sm:$0xff] }
0x114b   : > { %v4618_v5 = vld [vmem:[%s6698_s11 + $0x1] ss:$0 sm:$0xff] }
0x114c   : > { %v2576_v7 = vadd.f32 %v4849_v6, %v4524_v61  ;;  %v2579_v8 = vadd.f32 %v2573_v4, %v6101_v32  ;;  %v5374_v61 = vld [vmem:[%s6699_s12 + $0x70] sm:$0xff]  }
0x114e   : > { %2583 = vadd.xlane.f32.xlu1 %v2579_v8  ;;  %v2580_v9 = vadd.f32 %v2576_v7, %v6103_v33 }
0x1150   : > { %2585 = vadd.xlane.f32.xlu0 %v2580_v9 }
0x11db   : > { %v2584_v32 = vpop.xlane.xlu1 %2583 }
0x11dc   : > { %v2587_v33 = vmul.f32 0.0078125, %v2584_v32 }
0x11dd   : > { %v2586_v17 = vpop.xlane.xlu0 %2585 }
0x11de   : > { %v2589_v19 = vsub.f32 %v2579_v8, %v2587_v33  ;;  %v2588_v20 = vmul.f32 0.0078125, %v2586_v17 }
0x11e0   : > { %v2590_v21 = vsub.f32 %v2580_v9, %v2588_v20  ;;  %v2591_v22 = vmul.f32 %v2589_v19, %v2589_v19 }
0x11e2   : > { %2593 = vadd.xlane.f32.xlu0 %v2591_v22  ;;  %v2592_v47 = vmul.f32 %v2590_v21, %v2590_v21  ;;  %v4628_v22 = vld [vmem:[%s6700_s13 + $0x1] ss:$0 sm:$0xff] }
0x11e6   : > { %2595 = vadd.xlane.f32.xlu0 %v2592_v47 }
0x126f   : > { %v2594_v39 = vpop.xlane.xlu0 %2593 }
0x1270   : > { %v2597_v41 = vmul.f32 0.0078125, %v2594_v39 }
0x1272   : > { %v2599_v63 = vadd.f32 1e-12, %v2597_v41 }
0x1273   : > { %v2596_v31 = vpop.xlane.xlu0 %2595 }
0x1274   : > { %5488 = vrsqrt.f32 %v2599_v63  ;;  %v2598_v42 = vmul.f32 0.0078125, %v2596_v31 }
0x1276   : > { %v2600_v43 = vadd.f32 1e-12, %v2598_v42 }
0x1278   : > { %5490 = vrsqrt.f32 %v2600_v43 }
0x127e   : > { %v5489_v44 = vpop.eup %5488 }
0x127f   : > { %v2603_v45 = vmul.f32 %v5489_v44, %v2589_v19 }
0x1281   : > { %v2611_v46 = vmul.f32 %v4541_v38, %v2603_v45 }
0x1282   : > { %v5491_v2 = vpop.eup %5490 }
0x1283   : > { %v2604_v40 = vmul.f32 %v5491_v2, %v2590_v21  ;;  %v6283_v37 = vadd.f32 %v4542_v50, %v2611_v46 }
0x1285   : > { %v2612_v51 = vmul.f32 %v4541_v38, %v2604_v40 }
0x1287   : > { %v6285_v54 = vadd.f32 %v4542_v50, %v2612_v51 }
0x1289   : > { %v2689_v56 = vpack.c.bf16 %v6285_v54, %v6283_v37 }
0x128b   : > { %5113 = vmatmul.mubr.bf16.vlgmr.msra.gmra.mrb[28].mxu0 %v2689_v56  ;;  %5133 = vmatmul.mubr.bf16.vlgmr.msra.gmra.mrb[44].mxu1 %v2689_v56 }
0x128c   : > { %5137 = vmatpush3.bf16.msra.mxu0 %v5368_v10  ;;  %5152 = vmatprep.mubr.msk.bf16.mxu0 %vm5557_vm0, %v5556_v1 }
0x128d   : > { %5138 = vmatprep.subr.bf16.mxu0 %v5556_v1  ;;  %5158 = vmatprep.mubr.msk.bf16.mxu1 %vm5557_vm0, %v5556_v1 }
0x1290   : > { %5139 = vmatpush3.bf16.msra.mxu0 %v5369_v57 }
0x1291   : > { %5140 = vmatprep.subr.bf16.mxu0 %v5556_v1 }
0x1294   : > { %5141 = vmatpush3.bf16.msra.mxu0 %v5370_v12 }
0x1295   : > { %5142 = vmatprep.subr.bf16.mxu0 %v5556_v1 }
0x1298   : > { %5143 = vmatpush3.bf16.msra.mxu0 %v5371_v58 }
0x1299   : > { %5144 = vmatprep.subr.bf16.mxu0 %v5556_v1 }
0x129c   : > { %5145 = vmatpush3.bf16.msra.mxu0 %v5372_v59 }
0x129d   : > { %5146 = vmatprep.subr.bf16.mxu0 %v5556_v1 }
0x12a0   : > { %5147 = vmatpush3.bf16.msra.mxu0 %v5373_v13 }
0x12a1   : > { %5148 = vmatprep.subr.bf16.mxu0 %v5556_v1 }
0x12a4   : > { %5149 = vmatpush3.bf16.msra.mxu0 %v5374_v61 }
0x12a5   : > { %5150 = vmatprep.subr.bf16.mxu0 %v5556_v1 }
0x12a8   : > { %5151 = vmatpush3.bf16.msra.mxu0 %v5375_v48 }
0x12a9   : > { %5180 = vmatprep.subr.bf16.mxu0 %v5556_v1 }
0x12ab   : > { %5153 = vmatmul.mubr.bf16.vlgmr.msra.gmra.mrb[32].mxu0 %v2689_v56 }
0x12ac   : > { %5184 = vmatprep.mubr.msk.bf16.mxu0 %vm5557_vm0, %v5556_v1 }
0x135e   : > { %v2780_v0 = vpop.f32.mrb[28].mxu0  ;;  %v2877_v4 = vpop.f32.mrb[44].mxu1 }
0x135f   : > { %v5114_v6 = vpop.f32.mrb[29].mxu0  ;;  %v5134_v7 = vpop.f32.mrb[45].mxu1  ;;  %v2781_v11 = vadd.f32 %v4608_v62, %v2780_v0  ;;  %v2878_v14 = vadd.f32 %v4618_v5, %v2877_v4 }
0x1360   : > { %v2783_v8 = vpop.f32.mrb[30].mxu0  ;;  %v2880_v9 = vpop.f32.mrb[46].mxu1 }
0x1361   : > { %v2784_v16 = vadd.f32 %v4608_v62, %v2783_v8  ;;  %v2881_v32 = vadd.f32 %v4618_v5, %v2880_v9  ;;  %v5115_v33 = vpop.f32.mrb[31].mxu0  ;;  %v5135_v17 = vpop.f32.mrb[47].mxu1 }
0x1363   : > { %v6333_v19 = vpack.c.bf16 %v2784_v16, %v2781_v11  ;;  %v6335_v20 = vpack.c.bf16 %v2881_v32, %v2878_v14 }
0x1365   : > { %3104 = vrot.lane.b32.xlu1 %v6333_v19, %s6751_s7  ;;  %v2987_v21 = vsel %vm1359_vm5, %v6335_v20, 0 }
0x1366   : > { %5157 = vmatpush3.bf16.xpose.msra.mxu1 %v2987_v21 }
0x1367   : > { %5162 = vmatprep.subr.bf16.mxu1 %v5556_v1 }
0x136d   : > { %5159 = vmatmul.mubr.msk.bf16.vlgmr.msra.gmra.mrb[48].mxu1 %vm1359_vm5, %v6333_v19 }
0x136e   : > { %5164 = vmatprep.mubr.msk.bf16.mxu1 %vm5557_vm0, %v5556_v1 }
0x137e   : > { %v2974_v47 = vpop.f32.mrb[32].mxu0 }
0x137f   : > { %v5154_v24 = vpop.f32.mrb[33].mxu0  ;;  %v2975_v27 = vadd.f32 %v4628_v22, %v2974_v47 }
0x1380   : > { %v2977_v26 = vpop.f32.mrb[34].mxu0 }
0x1381   : > { %v2978_v28 = vadd.f32 %v4628_v22, %v2977_v26  ;;  %v5155_v29 = vpop.f32.mrb[35].mxu0 }
0x1383   : > { %v6349_v30 = vpack.c.bf16 %v2978_v28, %v2975_v27 }
0x1385   : > { %5163 = vmatpush3.bf16.msra.mxu1 %v6349_v30 }
0x1386   : > { %5168 = vmatprep.subr.bf16.mxu1 %v5556_v1 }
0x13d7   : > { %v3105_v48 = vpop.permute.xlu1 %3104 }
0x1440   : > { %v3023_v23 = vpop.f32.mrb[48].mxu1 }
0x1441   : > { %v3030_v35 = vmul.f32 0.17677669, %v3023_v23  ;;  %v5160_v36 = vpop.f32.mrb[49].mxu1 }
0x1442   : > { %v3026_v25 = vpop.f32.mrb[50].mxu1 }
0x1443   : > { %v3031_v15 = vmul.f32 0.17677669, %v3026_v25  ;;  %v5161_v60 = vpop.f32.mrb[51].mxu1  ;;  %v3032_v18 = vsel %vm1003_vm6, %v3030_v35, -1e+30 }
0x1444   : > { %v3034_v39 = vsel %vm1411_vm7, %v3032_v18, -inf  ;;  %v5379_v60 = vld [vmem:[%s6701_s14 + $0x58] sm:$0xff]  }
0x1445   : > { %3035 = vmax.xlane.f32.xlu0 %v3034_v39  ;;  %v3033_v41 = vsel %vm1003_vm6, %v3031_v15, -1e+30  ;;  %v5378_v15 = vld [vmem:[%s6701_s14 + $0x50] sm:$0xff]  }
0x1446   : > { %v3037_v63 = vsel %vm1411_vm7, %v3033_v41, -inf  ;;  %5181 = vmatpush3.bf16.msra.mxu0 %v5378_v15 }
0x1447   : > { %5182 = vmatprep.subr.bf16.mxu0 %v5556_v1 }
0x1449   : > { %3038 = vmax.xlane.f32.xlu0 %v3037_v63 }
0x144a   : > { %5183 = vmatpush3.bf16.msra.mxu0 %v5379_v60 }
0x144b   : > { %5196 = vmatprep.subr.bf16.mxu0 %v5556_v1 }
0x14d2   : > { %v3036_v31 = vpop.xlane.xlu0 %3035 }
0x14d3   : > { %v3040_v42 = vsub.f32 %v3032_v18, %v3036_v31 }
0x14d5   : > { %v3042_v43 = vmul.f32 1.442695, %v3040_v42 }
0x14d6   : > { %v3039_v44 = vpop.xlane.xlu0 %3038 }
0x14d7   : > { %5492 = vpow2.f32 %v3042_v43  ;;  %v3041_v45 = vsub.f32 %v3033_v41, %v3039_v44  ;;  %v5376_v43 = vld [vmem:[%s6701_s14 + $0x40] sm:$0xff]  }
0x14d9   : > { %v3044_v38 = vmul.f32 1.442695, %v3041_v45  ;;  %v5377_v45 = vld [vmem:[%s6701_s14 + $0x48] sm:$0xff]  }
0x14db   : > { %5494 = vpow2.f32 %v3044_v38 }
0x14e1   : > { %v5493_v2 = vpop.eup %5492 }
0x14e2   : > { %v3046_v40 = vsel %vm1411_vm7, %v5493_v2, 0.0 }
0x14e3   : > { %3047 = vadd.xlane.f32.xlu0 %v3046_v40 }
0x14e5   : > { %v5495_v46 = vpop.eup %5494 }
0x14e6   : > { %v3049_v50 = vsel %vm1411_vm7, %v5495_v46, 0.0 }
0x14e7   : > { %3050 = vadd.xlane.f32.xlu0 %v3049_v50 }
0x14fd   : > { %3107 = vrot.lane.b32.xlu0 %v6335_v20, %s6751_s7 }
0x1570   : > { %v3048_v51 = vpop.xlane.xlu0 %3047 }
0x1571   : > { %5496 = vrcp.f32 %v3048_v51 }
0x1574   : > { %v3051_v10 = vpop.xlane.xlu0 %3050 }
0x1575   : > { %5498 = vrcp.f32 %v3051_v10 }
0x1578   : > { %v3108_v59 = vpop.permute.xlu0 %3107 }
0x1579   : > { %v3113_v61 = vsel %vm1359_vm5, %v3108_v59, 0 }
0x157b   : > { %v5497_v56 = vpop.eup %5496 }
0x157c   : > { %v3054_v12 = vmul.f32 %v5497_v56, %v5493_v2 }
0x157f   : > { %v5499_v57 = vpop.eup %5498 }
0x1580   : > { %v3055_v58 = vmul.f32 %v5499_v57, %v5495_v46 }
0x1582   : > { %v3056_v13 = vpack.c.bf16 %v3055_v58, %v3054_v12 }
0x1584   : > { %5165 = vmatmul.mubr.msk.bf16.vlgmr.msra.gmra.mrb[52].mxu1 %vm1411_vm7, %v3056_v13 }
0x1585   : > { %5169 = vmatpush3.bf16.xpose.msra.mxu1 %v3113_v61  ;;  %5170 = vmatprep.mubr.msk.bf16.mxu1 %vm5557_vm0, %v5556_v1 }
0x1586   : > { %5174 = vmatprep.subr.bf16.mxu1 %v5556_v1 }
0x158c   : > { %5171 = vmatmul.mubr.msk.bf16.vlgmr.msra.gmra.mrb[56].mxu1 %vm1359_vm5, %v3105_v48 }
0x158d   : > { %5176 = vmatprep.mubr.msk.bf16.mxu1 %vm5557_vm0, %v5556_v1 }
0x1657   : > { %v3095_v62 = vpop.f32.mrb[52].mxu1 }
0x1658   : > { %v5166_v0 = vpop.f32.mrb[53].mxu1 }
0x1659   : > { %v3098_v5 = vpop.f32.mrb[54].mxu1 }
0x165a   : > { %v3102_v4 = vpack.c.bf16 %v3098_v5, %v3095_v62  ;;  %v5167_v6 = vpop.f32.mrb[55].mxu1 }
0x165f   : > { %v3149_v7 = vpop.f32.mrb[56].mxu1 }
0x1660   : > { %v3156_v8 = vmul.f32 0.17677669, %v3149_v7  ;;  %v5172_v9 = vpop.f32.mrb[57].mxu1 }
0x1661   : > { %v3152_v11 = vpop.f32.mrb[58].mxu1 }
0x1662   : > { %v3157_v14 = vmul.f32 0.17677669, %v3152_v11  ;;  %v5173_v16 = vpop.f32.mrb[59].mxu1  ;;  %v3158_v32 = vsel %vm1003_vm6, %v3156_v8, -1e+30 }
0x1663   : > { %v3160_v33 = vsel %vm1411_vm7, %v3158_v32, -inf }
0x1664   : > { %3161 = vmax.xlane.f32.xlu0 %v3160_v33  ;;  %v3159_v17 = vsel %vm1003_vm6, %v3157_v14, -1e+30 }
0x1665   : > { %v3163_v21 = vsel %vm1411_vm7, %v3159_v17, -inf }
0x1666   : > { %3164 = vmax.xlane.f32.xlu1 %v3163_v21 }
0x1677   : > { %3184 = vrot.lane.b32.xlu1 %v6349_v30, %s6751_s7 }
0x167b   : > { %3344 = vrot.lane.b32.xlu1 %v6333_v19, %s6752_s0 }
0x16f1   : > { %v3162_v22 = vpop.xlane.xlu0 %3161 }
0x16f2   : > { %v3166_v47 = vsub.f32 %v3158_v32, %v3162_v22 }
0x16f3   : > { %v3165_v24 = vpop.xlane.xlu1 %3164 }
0x16f4   : > { %v3168_v26 = vmul.f32 1.442695, %v3166_v47  ;;  %v3167_v27 = vsub.f32 %v3159_v17, %v3165_v24 }
0x16f6   : > { %5500 = vpow2.f32 %v3168_v26  ;;  %v3170_v28 = vmul.f32 1.442695, %v3167_v27 }
0x16f7   : > { %v3185_v29 = vpop.permute.xlu1 %3184 }
0x16f8   : > { %5502 = vpow2.f32 %v3170_v28  ;;  %5175 = vmatpush3.bf16.msra.mxu1 %v3185_v29 }
0x16f9   : > { %5188 = vmatprep.subr.bf16.mxu1 %v5556_v1 }
0x16fb   : > { %v3345_v59 = vpop.permute.xlu1 %3344 }
0x1700   : > { %v5501_v23 = vpop.eup %5500 }
0x1701   : > { %v3172_v35 = vsel %vm1411_vm7, %v5501_v23, 0.0 }
0x1702   : > { %v5503_v36 = vpop.eup %5502  ;;  %3173 = vadd.xlane.f32.xlu0 %v3172_v35  ;;  %v5380_v35 = vld [vmem:[%s6701_s14 + $0x60] sm:$0xff]  }
0x1703   : > { %v3175_v25 = vsel %vm1411_vm7, %v5503_v36, 0.0 }
0x1706   : > { %3176 = vadd.xlane.f32.xlu0 %v3175_v25 }
0x171c   : > { %3346 = vrot.lane.b32.xlu0 %v6335_v20, %s6752_s0 }
0x178f   : > { %v3174_v18 = vpop.xlane.xlu0 %3173 }
0x1790   : > { %5504 = vrcp.f32 %v3174_v18 }
0x1793   : > { %v3177_v39 = vpop.xlane.xlu0 %3176 }
0x1794   : > { %5506 = vrcp.f32 %v3177_v39 }
0x1797   : > { %v3347_v40 = vpop.permute.xlu0 %3346 }
0x1798   : > { %v3352_v10 = vsel %vm1359_vm5, %v3347_v40, 0 }
0x179a   : > { %v5505_v41 = vpop.eup %5504 }
0x179b   : > { %v3180_v31 = vmul.f32 %v5505_v41, %v5501_v23 }
0x179e   : > { %v5507_v63 = vpop.eup %5506 }
0x179f   : > { %v3181_v42 = vmul.f32 %v5507_v63, %v5503_v36 }
0x17a1   : > { %v3182_v44 = vpack.c.bf16 %v3181_v42, %v3180_v31  ;;  %v5381_v42 = vld [vmem:[%s6701_s14 + $0x68] sm:$0xff]  }
0x17a3   : > { %5177 = vmatmul.mubr.msk.bf16.vlgmr.msra.gmra.mrb[60].mxu1 %vm1411_vm7, %v3182_v44 }
0x17a4   : > { %5189 = vmatpush3.bf16.msra.mxu1 %v5376_v43  ;;  %5192 = vmatprep.mubr.msk.bf16.mxu1 %vm5557_vm0, %v5556_v1 }
0x17a5   : > { %5190 = vmatprep.subr.bf16.mxu1 %v5556_v1 }
0x17a8   : > { %5191 = vmatpush3.bf16.msra.mxu1 %v5377_v45 }
0x17a9   : > { %5202 = vmatprep.subr.bf16.mxu1 %v5556_v1 }
0x17ab   : > { %5193 = vmatmul.mubr.msk.bf16.vlgmr.msra.gmra.mrb[64].mxu1 %vm1359_vm5, %v3102_v4 }
0x17ac   : > { %5204 = vmatprep.mubr.msk.bf16.mxu1 %vm5557_vm0, %v5556_v1 }
0x1876   : > { %v3224_v38 = vpop.f32.mrb[60].mxu1 }
0x1877   : > { %v5178_v2 = vpop.f32.mrb[61].mxu1 }
0x1878   : > { %v3227_v46 = vpop.f32.mrb[62].mxu1 }
0x1879   : > { %v3231_v50 = vpack.c.bf16 %v3227_v46, %v3224_v38  ;;  %v5179_v51 = vpop.f32.mrb[63].mxu1 }
0x187b   : > { %5185 = vmatmul.mubr.msk.bf16.vlgmr.msra.gmra.mrb[36].mxu0 %vm1359_vm5, %v3231_v50 }
0x187c   : > { %5197 = vmatpush3.bf16.xpose.msra.mxu0 %v3352_v10  ;;  %5198 = vmatprep.mubr.msk.bf16.mxu0 %vm5557_vm0, %v5556_v1 }
0x187d   : > { %5208 = vmatprep.subr.bf16.mxu0 %v5556_v1 }
0x187e   : > { %v3337_v56 = vpop.f32.mrb[64].mxu1 }
0x187f   : > { %v5194_v57 = vpop.f32.mrb[65].mxu1 }
0x1880   : > { %v3340_v12 = vpop.f32.mrb[66].mxu1 }
0x1881   : > { %v5195_v58 = vpop.f32.mrb[67].mxu1 }
0x1883   : > { %5199 = vmatmul.mubr.msk.bf16.vlgmr.msra.gmra.mrb[40].mxu0 %vm1359_vm5, %v3345_v59 }
0x1884   : > { %5212 = vmatprep.mubr.msk.bf16.mxu0 %vm5557_vm0, %v5556_v1  ;;  %5209 = vmatpush3.bf16.msra.mxu0 %v5380_v35 }
0x1885   : > { %5210 = vmatprep.subr.bf16.mxu0 %v5556_v1 }
0x1888   : > { %5211 = vmatpush3.bf16.msra.mxu0 %v5381_v42 }
0x1889   : > { %5222 = vmatprep.subr.bf16.mxu0 %v5556_v1 }
0x194e   : > { %v3281_v13 = vpop.f32.mrb[36].mxu0 }
0x194f   : > { %v6416_v61 = vadd.f32 %v3337_v56, %v3281_v13  ;;  %v5186_v48 = vpop.f32.mrb[37].mxu0 }
0x1950   : > { %v3284_v62 = vpop.f32.mrb[38].mxu0 }
0x1951   : > { %v6418_v0 = vadd.f32 %v3340_v12, %v3284_v62  ;;  %v5187_v5 = vpop.f32.mrb[39].mxu0 }
0x1956   : > { %v3388_v4 = vpop.f32.mrb[40].mxu0 }
0x1957   : > { %v3395_v6 = vmul.f32 0.17677669, %v3388_v4  ;;  %v5200_v7 = vpop.f32.mrb[41].mxu0 }
0x1958   : > { %v3391_v8 = vpop.f32.mrb[42].mxu0 }
0x1959   : > { %v3396_v9 = vmul.f32 0.17677669, %v3391_v8  ;;  %v5201_v11 = vpop.f32.mrb[43].mxu0  ;;  %v3397_v14 = vsel %vm1003_vm6, %v3395_v6, -1e+30 }
0x195a   : > { %v3399_v16 = vsel %vm1411_vm7, %v3397_v14, -inf }
0x195b   : > { %3400 = vmax.xlane.f32.xlu1 %v3399_v16  ;;  %v3398_v32 = vsel %vm1003_vm6, %v3396_v9, -1e+30 }
0x195c   : > { %v3402_v33 = vsel %vm1411_vm7, %v3398_v32, -inf }
0x195d   : > { %3403 = vmax.xlane.f32.xlu0 %v3402_v33 }
0x19e8   : > { %v3401_v17 = vpop.xlane.xlu1 %3400 }
0x19e9   : > { %v3405_v21 = vsub.f32 %v3397_v14, %v3401_v17 }
0x19ea   : > { %v3404_v22 = vpop.xlane.xlu0 %3403 }
0x19eb   : > { %v3407_v47 = vmul.f32 1.442695, %v3405_v21  ;;  %v3406_v24 = vsub.f32 %v3398_v32, %v3404_v22 }
0x19ed   : > { %5508 = vpow2.f32 %v3407_v47  ;;  %v3409_v26 = vmul.f32 1.442695, %v3406_v24 }
0x19ef   : > { %5510 = vpow2.f32 %v3409_v26 }
0x19f7   : > { %v5509_v27 = vpop.eup %5508 }
0x19f8   : > { %v3411_v28 = vsel %vm1411_vm7, %v5509_v27, 0.0 }
0x19f9   : > { %v5511_v29 = vpop.eup %5510  ;;  %3412 = vadd.xlane.f32.xlu0 %v3411_v28 }
0x19fa   : > { %v3414_v23 = vsel %vm1411_vm7, %v5511_v29, 0.0 }
0x19fb   : > { %3415 = vadd.xlane.f32.xlu1 %v3414_v23 }
0x1a0c   : > { %3530 = vrot.lane.b32.xlu1 %v6335_v20, %s6753_s4 }
0x1a0f   : > { %3422 = vrot.lane.b32.xlu0 %v6349_v30, %s6752_s0 }
0x1a10   : > { %3528 = vrot.lane.b32.xlu1 %v6333_v19, %s6753_s4 }
0x1a86   : > { %v3413_v36 = vpop.xlane.xlu0 %3412 }
0x1a87   : > { %5512 = vrcp.f32 %v3413_v36 }
0x1a88   : > { %v3416_v25 = vpop.xlane.xlu1 %3415 }
0x1a89   : > { %5514 = vrcp.f32 %v3416_v25 }
0x1a8a   : > { %v3423_v15 = vpop.permute.xlu0 %3422 }
0x1a8b   : > { %5203 = vmatpush3.bf16.msra.mxu1 %v3423_v15 }
0x1a8c   : > { %5216 = vmatprep.subr.bf16.mxu1 %v5556_v1  ;;  %v3531_v19 = vpop.permute.xlu1 %3530 }
0x1a8d   : > { %v3536_v63 = vsel %vm1359_vm5, %v3531_v19, 0 }
0x1a90   : > { %v3529_v31 = vpop.permute.xlu1 %3528 }
0x1a91   : > { %v5513_v20 = vpop.eup %5512 }
0x1a92   : > { %v3419_v18 = vmul.f32 %v5513_v20, %v5509_v27  ;;  %v4658_v20 = vld [vmem:[%s6702_s15 + $0x1] ss:$0 sm:$0xff] }
0x1a93   : > { %v5515_v60 = vpop.eup %5514 }
0x1a94   : > { %v3420_v39 = vmul.f32 %v5515_v60, %v5511_v29 }
0x1a96   : > { %v3421_v41 = vpack.c.bf16 %v3420_v39, %v3419_v18 }
0x1a98   : > { %5205 = vmatmul.mubr.msk.bf16.vlgmr.msra.gmra.mrb[68].mxu1 %vm1411_vm7, %v3421_v41 }
0x1a99   : > { %5217 = vmatpush3.bf16.xpose.msra.mxu1 %v3536_v63  ;;  %5218 = vmatprep.mubr.msk.bf16.mxu1 %vm5557_vm0, %v5556_v1 }
0x1a9a   : > { %5228 = vmatprep.subr.bf16.mxu1 %v5556_v1 }
0x1aa0   : > { %5219 = vmatmul.mubr.msk.bf16.vlgmr.msra.gmra.mrb[72].mxu1 %vm1359_vm5, %v3529_v31 }
0x1aa1   : > { %5232 = vmatprep.mubr.msk.bf16.mxu1 %vm5557_vm0, %v5556_v1 }
0x1b6b   : > { %v3462_v43 = vpop.f32.mrb[68].mxu1 }
0x1b6c   : > { %v5206_v44 = vpop.f32.mrb[69].mxu1 }
0x1b6d   : > { %v3465_v45 = vpop.f32.mrb[70].mxu1  ;;  %v5386_v44 = vld [vmem:[%s6705_s18 + $0x84] ss:$8 sps:$4 sm:$0xff]  }
0x1b6e   : > { %v3469_v38 = vpack.c.bf16 %v3465_v45, %v3462_v43  ;;  %v5207_v2 = vpop.f32.mrb[71].mxu1  ;;  %v5384_v43 = vld [vmem:[%s6705_s18 + $0x80] ss:$8 sps:$4 sm:$0xff]   ;;  %v5389_v45 = vld [vmem:[%s6705_s18 + $0x94] ss:$8 sps:$4 sm:$0xff]  }
0x1b70   : > { %5213 = vmatmul.mubr.msk.bf16.vlgmr.msra.gmra.mrb[44].mxu0 %vm1359_vm5, %v3469_v38 }
0x1b71   : > { %5224 = vmatprep.mubr.msk.bf16.mxu0 %vm5557_vm0, %v5556_v1 }
0x1b73   : > { %v3572_v40 = vpop.f32.mrb[72].mxu1 }
0x1b74   : > { %v3579_v46 = vmul.f32 0.17677669, %v3572_v40  ;;  %v5220_v50 = vpop.f32.mrb[73].mxu1 }
0x1b75   : > { %v3575_v51 = vpop.f32.mrb[74].mxu1 }
0x1b76   : > { %v3580_v10 = vmul.f32 0.17677669, %v3575_v51  ;;  %v5221_v56 = vpop.f32.mrb[75].mxu1  ;;  %v3581_v57 = vsel %vm1003_vm6, %v3579_v46, -1e+30 }
0x1b77   : > { %v3583_v12 = vsel %vm1411_vm7, %v3581_v57, -inf  ;;  %v5392_v56 = vld [vmem:[%s6705_s18 + $0xa4] ss:$8 sps:$4 sm:$0xff]  }
0x1b78   : > { %3584 = vmax.xlane.f32.xlu0 %v3583_v12  ;;  %v3582_v58 = vsel %vm1003_vm6, %v3580_v10, -1e+30  ;;  %v5395_v12 = vld [vmem:[%s6705_s18 + $0xb4] ss:$8 sps:$4 sm:$0xff]  }
0x1b79   : > { %v3586_v59 = vsel %vm1411_vm7, %v3582_v58, -inf }
0x1b7a   : > { %3587 = vmax.xlane.f32.xlu1 %v3586_v59  ;;  %v5398_v59 = vld [vmem:[%s6705_s18 + $0xc4] ss:$8 sps:$4 sm:$0xff]  }
0x1b8b   : > { %3606 = vrot.lane.b32.xlu1 %v6349_v30, %s6753_s4  ;;  %v5382_v30 = vld [vmem:[%s6701_s14 + $0x70] sm:$0xff]  }
0x1b8c   : > { %5229 = vmatpush3.bf16.msra.mxu1 %v5382_v30 }
0x1b8d   : > { %5230 = vmatprep.subr.bf16.mxu1 %v5556_v1 }
0x1c05   : > { %v3585_v13 = vpop.xlane.xlu0 %3584 }
0x1c06   : > { %v3589_v48 = vsub.f32 %v3581_v57, %v3585_v13  ;;  %v5390_v57 = vld [vmem:[%s6705_s18 + $0xa0] ss:$8 sps:$4 sm:$0xff]  }
0x1c07   : > { %v3588_v62 = vpop.xlane.xlu1 %3587  ;;  %v5396_v13 = vld [vmem:[%s6705_s18 + $0xc0] ss:$8 sps:$4 sm:$0xff]  }
0x1c08   : > { %v3591_v5 = vmul.f32 1.442695, %v3589_v48  ;;  %v3590_v4 = vsub.f32 %v3582_v58, %v3588_v62  ;;  %v5393_v58 = vld [vmem:[%s6705_s18 + $0xb0] ss:$8 sps:$4 sm:$0xff]   ;;  %v5401_v48 = vld [vmem:[%s6705_s18 + $0xd4] ss:$8 sps:$4 sm:$0xff]  }
0x1c09   : > { %v5399_v62 = vld [vmem:[%s6705_s18 + $0xd0] ss:$8 sps:$4 sm:$0xff]  }
0x1c0a   : > { %5516 = vpow2.f32 %v3591_v5  ;;  %v3593_v6 = vmul.f32 1.442695, %v3590_v4  ;;  %v5404_v5 = vld [vmem:[%s6705_s18 + $0xe4] ss:$8 sps:$4 sm:$0xff]   ;;  %v5402_v4 = vld [vmem:[%s6705_s18 + $0xe0] ss:$8 sps:$4 sm:$0xff]  }
0x1c0b   : > { %v3607_v7 = vpop.permute.xlu1 %3606 }
0x1c0c   : > { %5518 = vpow2.f32 %v3593_v6  ;;  %5223 = vmatpush3.bf16.msra.mxu0 %v3607_v7  ;;  %v5407_v6 = vld [vmem:[%s6705_s18 + $0xf4] ss:$8 sps:$4 sm:$0xff]   ;;  %v5405_v7 = vld [vmem:[%s6705_s18 + $0xf0] ss:$8 sps:$4 sm:$0xff]  }
0x1c0d   : > { %3877 = vmatprep.subr.bf16.mxu0 %v5386_v44 }
0x1c14   : > { %v5517_v8 = vpop.eup %5516 }
0x1c15   : > { %v3595_v49 = vsel %vm1411_vm7, %v5517_v8, 0.0 }
0x1c16   : > { %v5519_v9 = vpop.eup %5518  ;;  %3596 = vadd.xlane.f32.xlu0 %v3595_v49 }
0x1c17   : > { %v3598_v11 = vsel %vm1411_vm7, %v5519_v9, 0.0 }
0x1c1a   : > { %3599 = vadd.xlane.f32.xlu0 %v3598_v11 }
0x1c43   : > { %v3519_v14 = vpop.f32.mrb[44].mxu0 }
0x1c44   : > { %v3526_v16 = vadd.f32 %v3519_v14, %v6416_v61  ;;  %v5214_v32 = vpop.f32.mrb[45].mxu0  ;;  %v5383_v61 = vld [vmem:[%s6701_s14 + $0x78] sm:$0xff]  }
0x1c45   : > { %v3522_v33 = vpop.f32.mrb[46].mxu0  ;;  %5231 = vmatpush3.bf16.msra.mxu1 %v5383_v61  ;;  %v5409_v61 = vld [vmem:[%s6707_s20 + $0x80] sm:$0xff]  }
0x1c46   : > { %v3527_v17 = vadd.f32 %v3522_v33, %v6418_v0  ;;  %v5215_v21 = vpop.f32.mrb[47].mxu0  ;;  %v4661_v33 = vld [vmem:[%s6703_s16 + $0x1] ss:$0 sm:$0xff] }
0x1ca3   : > { %v3597_v22 = vpop.xlane.xlu0 %3596 }
0x1ca4   : > { %5520 = vrcp.f32 %v3597_v22 }
0x1ca7   : > { %v3600_v47 = vpop.xlane.xlu0 %3599 }
0x1ca8   : > { %5522 = vrcp.f32 %v3600_v47  ;;  %v4662_v47 = vld [vmem:[%s6704_s17 + $0x1] ss:$0 sm:$0xff] }
0x1cae   : > { %v5521_v24 = vpop.eup %5520 }
0x1caf   : > { %v3603_v27 = vmul.f32 %v5521_v24, %v5517_v8 }
0x1cb2   : > { %v5523_v26 = vpop.eup %5522 }
0x1cb3   : > { %v3604_v28 = vmul.f32 %v5523_v26, %v5519_v9 }
0x1cb5   : > { %v3605_v29 = vpack.c.bf16 %v3604_v28, %v3603_v27 }
0x1cb7   : > { %5225 = vmatmul.mubr.msk.bf16.vlgmr.msra.gmra.mrb[48].mxu0 %vm1411_vm7, %v3605_v29  ;;  %v5408_v29 = vld [vmem:[%s6707_s20 + $0xc0] sm:$0xff]  }
0x1cb8   : > { %3909 = vmatprep.mubr.bf16.mxu0 %v5558_v3  ;;  %3878 = vmatpush1.bf16.msra.mxu0 %v5384_v43 }
0x1cb9   : > { %3879 = vmatprep.subr.bf16.mxu0 %v5389_v45  ;;  %4905 = vmatprep.subr.bf16.mxu1 %v5408_v29 }
0x1d8a   : > { %v3646_v0 = vpop.f32.mrb[48].mxu0 }
0x1d8b   : > { %v5226_v23 = vpop.f32.mrb[49].mxu0 }
0x1d8c   : > { %v3649_v35 = vpop.f32.mrb[50].mxu0  ;;  %v5411_v23 = vld [vmem:[%s6707_s20 + $0x88] sm:$0xff]  }
0x1d8d   : > { %v3653_v36 = vpack.c.bf16 %v3649_v35, %v3646_v0  ;;  %v5227_v25 = vpop.f32.mrb[51].mxu0  ;;  %v5410_v0 = vld [vmem:[%s6707_s20 + $0xc8] sm:$0xff]   ;;  %v5412_v35 = vld [vmem:[%s6707_s20 + $0xd0] sm:$0xff]  }
0x1d8e   : > { %v5414_v25 = vld [vmem:[%s6707_s20 + $0xd8] sm:$0xff]  }
0x1d8f   : > { %5233 = vmatmul.mubr.msk.bf16.vlgmr.msra.gmra.mrb[76].mxu1 %vm1359_vm5, %v3653_v36  ;;  %v5413_v36 = vld [vmem:[%s6707_s20 + $0x90] sm:$0xff]  }
0x1d90   : > { %4906 = vmatpush3.bf16.msra.mxu1 %v5409_v61 }
0x1d91   : > { %4907 = vmatprep.subr.bf16.mxu1 %v5410_v0 }
0x1d94   : > { %4908 = vmatpush3.bf16.msra.mxu1 %v5411_v23 }
0x1d95   : > { %4909 = vmatprep.subr.bf16.mxu1 %v5412_v35 }
0x1d98   : > { %4910 = vmatpush3.bf16.msra.mxu1 %v5413_v36 }
0x1d99   : > { %4911 = vmatprep.subr.bf16.mxu1 %v5414_v25 }
0x1e62   : > { %v3703_v15 = vpop.f32.mrb[76].mxu1 }
0x1e63   : > { %v3710_v60 = vadd.f32 %v3703_v15, %v3526_v16  ;;  %v5234_v18 = vpop.f32.mrb[77].mxu1  ;;  %v5415_v15 = vld [vmem:[%s6707_s20 + $0x98] sm:$0xff]  }
0x1e64   : > { %v3706_v3 = vpop.f32.mrb[78].mxu1  ;;  %4912 = vmatpush3.bf16.msra.mxu1 %v5415_v15  ;;  %v5418_v18 = vld [vmem:[%s6707_s20 + $0xe8] sm:$0xff]  }
0x1e65   : > { %v3720_v39 = vadd.f32 %v4658_v20, %v3710_v60  ;;  %v3711_v19 = vadd.f32 %v3706_v3, %v3527_v17  ;;  %v5235_v41 = vpop.f32.mrb[79].mxu1  ;;  %v5417_v60 = vld [vmem:[%s6707_s20 + $0xa0] sm:$0xff]   ;;  %v5419_v3 = vld [vmem:[%s6707_s20 + $0xa8] sm:$0xff]  }
0x1e66   : > { %v5422_v41 = vld [vmem:[%s6707_s20 + $0xf8] sm:$0xff]  }
0x1e67   : > { %v3721_v63 = vadd.f32 %v4658_v20, %v3711_v19  ;;  %v3722_v31 = vadd.f32 %v3720_v39, %v6283_v37  ;;  %v5387_v37 = vld [vmem:[%s6705_s18 + $0x90] ss:$8 sps:$4 sm:$0xff]   ;;  %v5416_v20 = vld [vmem:[%s6707_s20 + $0xe0] sm:$0xff]  }
0x1e68   : > { %3880 = vmatpush1.bf16.msra.mxu0 %v5387_v37  ;;  %4913 = vmatprep.subr.bf16.mxu1 %v5416_v20  ;;  %v5420_v39 = vld [vmem:[%s6707_s20 + $0xf0] sm:$0xff]  }
0x1e69   : > { %3728 = vadd.xlane.f32.xlu0 %v3722_v31  ;;  %v3723_v42 = vadd.f32 %v3721_v63, %v6285_v54  ;;  %3881 = vmatprep.subr.bf16.mxu0 %v5392_v56  ;;  %v5421_v19 = vld [vmem:[%s6707_s20 + $0xb0] sm:$0xff]   ;;  %v5423_v63 = vld [vmem:[%s6707_s20 + $0xb8] sm:$0xff]  }
0x1e6a   : > { %4914 = vmatpush3.bf16.msra.mxu1 %v5417_v60 }
0x1e6b   : > { %4915 = vmatprep.subr.bf16.mxu1 %v5418_v18 }
0x1e6c   : > { %3882 = vmatpush1.bf16.msra.mxu0 %v5390_v57 }
0x1e6d   : > { %3730 = vadd.xlane.f32.xlu0 %v3723_v42  ;;  %3883 = vmatprep.subr.bf16.mxu0 %v5395_v12 }
0x1e6e   : > { %4916 = vmatpush3.bf16.msra.mxu1 %v5419_v3 }
0x1e6f   : > { %4917 = vmatprep.subr.bf16.mxu1 %v5420_v39 }
0x1e70   : > { %3884 = vmatpush1.bf16.msra.mxu0 %v5393_v58 }
0x1e71   : > { %3885 = vmatprep.subr.bf16.mxu0 %v5398_v59 }
0x1e72   : > { %4918 = vmatpush3.bf16.msra.mxu1 %v5421_v19 }
0x1e73   : > { %4919 = vmatprep.subr.bf16.mxu1 %v5422_v41 }
0x1e74   : > { %3886 = vmatpush1.bf16.msra.mxu0 %v5396_v13 }
0x1e75   : > { %3887 = vmatprep.subr.bf16.mxu0 %v5401_v48 }
0x1e76   : > { %4920 = vmatpush3.bf16.msra.mxu1 %v5423_v63 }
0x1e78   : > { %3888 = vmatpush1.bf16.msra.mxu0 %v5399_v62 }
0x1e79   : > { %3889 = vmatprep.subr.bf16.mxu0 %v5404_v5 }
0x1e7c   : > { %3890 = vmatpush1.bf16.msra.mxu0 %v5402_v4 }
0x1e7d   : > { %3891 = vmatprep.subr.bf16.mxu0 %v5407_v6 }
0x1e80   : > { %3892 = vmatpush1.bf16.msra.mxu0 %v5405_v7 }
0x1e81   : > { %5236 = vmatprep.subr.bf16.mxu0 %v5556_v1 }
0x1ef6   : > { %v3729_v54 = vpop.xlane.xlu0 %3728 }
0x1ef7   : > { %v3732_v38 = vmul.f32 0.0078125, %v3729_v54 }
0x1ef9   : > { %v3734_v2 = vsub.f32 %v3722_v31, %v3732_v38  ;;  %v4679_v31 = vld [vmem:[%s6706_s19 + $0x2] sm:$0x3] }
0x1efa   : > { %v3731_v40 = vpop.xlane.xlu0 %3730  ;;  %v3794_v43 = vrot.slane %v4679_v31, %v2166_v55 }
0x1efb   : > { %v3733_v46 = vmul.f32 0.0078125, %v3731_v40  ;;  %v3736_v50 = vmul.f32 %v3734_v2, %v3734_v2 }
0x1efd   : > { %v3735_v51 = vsub.f32 %v3723_v42, %v3733_v46  ;;  %3738 = vadd.xlane.f32.xlu0 %v3736_v50  ;;  %v3790_v42 = vrot.slane %v4679_v31, %v2162_v53 }
0x1eff   : > { %v3737_v10 = vmul.f32 %v3735_v51, %v3735_v51 }
0x1f01   : > { %3740 = vadd.xlane.f32.xlu0 %v3737_v10 }
0x1f8a   : > { %v3739_v8 = vpop.xlane.xlu0 %3738 }
0x1f8b   : > { %v3742_v49 = vmul.f32 0.0078125, %v3739_v8 }
0x1f8d   : > { %v3744_v9 = vadd.f32 1e-12, %v3742_v49 }
0x1f8e   : > { %v3741_v11 = vpop.xlane.xlu0 %3740 }
0x1f8f   : > { %5524 = vrsqrt.f32 %v3744_v9  ;;  %v3743_v30 = vmul.f32 0.0078125, %v3741_v11 }
0x1f91   : > { %v3745_v14 = vadd.f32 1e-12, %v3743_v30 }
0x1f93   : > { %5526 = vrsqrt.f32 %v3745_v14 }
0x1f99   : > { %v5525_v16 = vpop.eup %5524 }
0x1f9a   : > { %v3748_v32 = vmul.f32 %v5525_v16, %v3734_v2 }
0x1f9c   : > { %v3756_v22 = vmul.f32 %v4661_v33, %v3748_v32 }
0x1f9d   : > { %v5527_v17 = vpop.eup %5526 }
0x1f9e   : > { %v3749_v21 = vmul.f32 %v5527_v17, %v3735_v51  ;;  %v6536_v26 = vadd.f32 %v4662_v47, %v3756_v22 }
0x1fa0   : > { %v3757_v24 = vmul.f32 %v4661_v33, %v3749_v21 }
0x1fa2   : > { %v6538_v27 = vadd.f32 %v4662_v47, %v3757_v24 }
0x1fa4   : > { %v3766_v28 = vpack.c.bf16 %v6538_v27, %v6536_v26 }
0x1fa6   : > { %3910 = vmatmul.mubr.bf16.vlgmr.msra.gmra.mrb[52].mxu0 %v3766_v28 }
0x1fa7   : > { %5252 = vmatprep.mubr.msk.bf16.mxu0 %vm5557_vm0, %v5556_v1 }
0x2079   : > { %v3911_v44 = vpop.f32.mrb[52].mxu0 }
0x207a   : > { %v6599_v45 = vadd.f32 %v3911_v44, %v3790_v42  ;;  %v3913_v37 = vpop.f32.mrb[53].mxu0 }
0x207b   : > { %v6601_v54 = vadd.f32 %v3913_v37, %v3794_v43  ;;  %v3915_v38 = vpop.f32.mrb[54].mxu0 }
0x207c   : > { %v6604_v2 = vmul.f32 0.70710677, %v6599_v45  ;;  %v6606_v40 = vadd.f32 %v3915_v38, %v3790_v42  ;;  %v3917_v46 = vpop.f32.mrb[55].mxu0 }
0x207d   : > { %v6609_v50 = vmul.f32 0.70710677, %v6601_v54  ;;  %v6615_v55 = vadd.f32 %v3917_v46, %v3794_v43 }
0x207e   : > { %v3936_v53 = vand.u32 2147483647, %v6604_v2  ;;  %v6613_v52 = vmul.f32 0.70710677, %v6606_v40  ;;  %vm3928_vm12 = vcmp.ge.f32.partialorder %v6604_v2, 0.0 }
0x207f   : > { %v3937_v51 = vand.u32 2147483647, %v6609_v50  ;;  %v6620_v58 = vmul.f32 0.70710677, %v6615_v55  ;;  %vm3929_vm13 = vcmp.ge.f32.partialorder %v6609_v50, 0.0 }
0x2080   : > { %v3940_v10 = vmul.f32 0.3275911, %v3936_v53  ;;  %v3938_v57 = vand.u32 2147483647, %v6613_v52  ;;  %v3992_v6 = vsub.f32 0.0, %v3936_v53  ;;  %vm3930_vm14 = vcmp.ge.f32.partialorder %v6613_v52, 0.0 }
0x2081   : > { %v3941_v56 = vmul.f32 0.3275911, %v3937_v51  ;;  %v3939_v48 = vand.u32 2147483647, %v6620_v58  ;;  %v3993_v7 = vsub.f32 0.0, %v3937_v51  ;;  %v3933_v2 = vsel %vm3929_vm13, 1.0, %v5562_v34 }
0x2082   : > { %v3944_v12 = vadd.f32 1.0, %v3940_v10  ;;  %v3942_v13 = vmul.f32 0.3275911, %v3938_v57  ;;  %v3996_v49 = vmul.f32 %v3992_v6, %v3936_v53  ;;  %v3994_v9 = vsub.f32 0.0, %v3938_v57 }
0x2083   : > { %v3945_v59 = vadd.f32 1.0, %v3941_v56  ;;  %v3943_v5 = vmul.f32 0.3275911, %v3939_v48  ;;  %v3997_v14 = vmul.f32 %v3993_v7, %v3937_v51  ;;  %v3995_v32 = vsub.f32 0.0, %v3939_v48 }
0x2084   : > { %5528 = vrcp.f32 %v3944_v12  ;;  %v3946_v62 = vadd.f32 1.0, %v3942_v13  ;;  %v4000_v21 = vmul.f32 1.442695, %v3996_v49  ;;  %v3998_v47 = vmul.f32 %v3994_v9, %v3938_v57 }
0x2085   : > { %5530 = vrcp.f32 %v3945_v59  ;;  %v3947_v4 = vadd.f32 1.0, %v3943_v5  ;;  %v4002_v28 = vmul.f32 1.442695, %v3997_v14  ;;  %v3999_v23 = vmul.f32 %v3995_v32, %v3939_v48 }
0x2086   : > { %5532 = vrcp.f32 %v3946_v62  ;;  %v4004_v20 = vmul.f32 1.442695, %v3998_v47  ;;  %v3932_v14 = vsel %vm3928_vm12, 1.0, %v5562_v34  ;;  %vm3931_vm15 = vcmp.ge.f32.partialorder %v6620_v58, 0.0 }
0x2087   : > { %5534 = vrcp.f32 %v3947_v4  ;;  %v4006_v19 = vmul.f32 1.442695, %v3999_v23  ;;  %v3934_v50 = vsel %vm3930_vm14, 1.0, %v5562_v34  ;;  %v3923_v58 = vmul.f32 0.5, %v6615_v55 }
0x2088   : > { %5536 = vpow2.f32 %v4000_v21 }
0x2089   : > { %5538 = vpow2.f32 %v4002_v28 }
0x208a   : > { %5540 = vpow2.f32 %v4004_v20 }
0x208b   : > { %5542 = vpow2.f32 %v4006_v19 }
0x208e   : > { %v5529_v8 = vpop.eup %5528 }
0x208f   : > { %v5531_v11 = vpop.eup %5530  ;;  %v3956_v30 = vmul.f32 1.0614054, %v5529_v8 }
0x2090   : > { %v3957_v16 = vmul.f32 1.0614054, %v5531_v11  ;;  %v5533_v17 = vpop.eup %5532 }
0x2091   : > { %v3960_v33 = vadd.f32 -1.4531521, %v3956_v30  ;;  %v3958_v29 = vmul.f32 1.0614054, %v5533_v17  ;;  %v5535_v61 = vpop.eup %5534 }
0x2092   : > { %v3961_v22 = vadd.f32 -1.4531521, %v3957_v16  ;;  %v3959_v25 = vmul.f32 1.0614054, %v5535_v61  ;;  %v5537_v59 = vpop.eup %5536 }
0x2093   : > { %v3964_v24 = vmul.f32 %v5529_v8, %v3960_v33  ;;  %v3962_v36 = vadd.f32 -1.4531521, %v3958_v29  ;;  %v5539_v48 = vpop.eup %5538  ;;  %v3920_v29 = vmul.f32 0.5, %v6599_v45 }
0x2094   : > { %v3965_v0 = vmul.f32 %v5531_v11, %v3961_v22  ;;  %v3963_v3 = vadd.f32 -1.4531521, %v3959_v25  ;;  %v5541_v30 = vpop.eup %5540 }
0x2095   : > { %v3968_v35 = vadd.f32 1.4214138, %v3964_v24  ;;  %v3966_v18 = vmul.f32 %v5533_v17, %v3962_v36  ;;  %v5543_v33 = vpop.eup %5542  ;;  %v3921_v36 = vmul.f32 0.5, %v6601_v54 }
0x2096   : > { %v3969_v15 = vadd.f32 1.4214138, %v3965_v0  ;;  %v3967_v31 = vmul.f32 %v5535_v61, %v3963_v3  ;;  %v3935_v0 = vsel %vm3931_vm15, 1.0, %v5562_v34  ;;  %v4729_v34 = vld [vmem:[%s6708_s21 + $0x1] ss:$0 sm:$0xff] }
0x2097   : > { %v3972_v60 = vmul.f32 %v5529_v8, %v3968_v35  ;;  %v3970_v63 = vadd.f32 1.4214138, %v3966_v18 }
0x2098   : > { %v3973_v39 = vmul.f32 %v5531_v11, %v3969_v15  ;;  %v3971_v37 = vadd.f32 1.4214138, %v3967_v31 }
0x2099   : > { %v3976_v41 = vadd.f32 -0.28449672, %v3972_v60  ;;  %v3974_v44 = vmul.f32 %v5533_v17, %v3970_v63 }
0x209a   : > { %v3977_v42 = vadd.f32 -0.28449672, %v3973_v39  ;;  %v3975_v51 = vmul.f32 %v5535_v61, %v3971_v37 }
0x209b   : > { %v3980_v43 = vmul.f32 %v5529_v8, %v3976_v41  ;;  %v3978_v53 = vadd.f32 -0.28449672, %v3974_v44  ;;  %v5424_v44 = vld [vmem:[%s6711_s24] sm:$0xff]  }
0x209c   : > { %v3981_v38 = vmul.f32 %v5531_v11, %v3977_v42  ;;  %v3979_v12 = vadd.f32 -0.28449672, %v3975_v51  ;;  %5237 = vmatpush3.bf16.msra.mxu0 %v5424_v44 }
0x209d   : > { %v3984_v46 = vadd.f32 0.2548296, %v3980_v43  ;;  %v3982_v57 = vmul.f32 %v5533_v17, %v3978_v53  ;;  %5238 = vmatprep.subr.bf16.mxu0 %v5556_v1 }
0x209e   : > { %v3985_v10 = vadd.f32 0.2548296, %v3981_v38  ;;  %v3983_v4 = vmul.f32 %v5535_v61, %v3979_v12  ;;  %v5427_v12 = vld [vmem:[%s6711_s24 + $0x18] sm:$0xff]  }
0x209f   : > { %v3988_v56 = vmul.f32 %v5529_v8, %v3984_v46  ;;  %v3986_v5 = vadd.f32 0.2548296, %v3982_v57  ;;  %v5426_v57 = vld [vmem:[%s6711_s24 + $0x10] sm:$0xff]  }
0x20a0   : > { %v3989_v13 = vmul.f32 %v5531_v11, %v3985_v10  ;;  %v3987_v9 = vadd.f32 0.2548296, %v3983_v4 }
0x20a1   : > { %v4008_v62 = vmul.f32 %v5537_v59, %v3988_v56  ;;  %v3990_v49 = vmul.f32 %v5533_v17, %v3986_v5  ;;  %v5428_v59 = vld [vmem:[%s6711_s24 + $0x20] sm:$0xff]  }
0x20a2   : > { %v4009_v6 = vmul.f32 %v5539_v48, %v3989_v13  ;;  %v3991_v32 = vmul.f32 %v5535_v61, %v3987_v9  ;;  %v3922_v61 = vmul.f32 0.5, %v6606_v40  ;;  %v5429_v13 = vld [vmem:[%s6711_s24 + $0x28] sm:$0xff]   ;;  %v5430_v48 = vld [vmem:[%s6711_s24 + $0x30] sm:$0xff]  }
0x20a3   : > { %v4012_v7 = vsub.f32 1.0, %v4008_v62  ;;  %v4010_v11 = vmul.f32 %v5541_v30, %v3990_v49  ;;  %v5431_v62 = vld [vmem:[%s6711_s24 + $0x38] sm:$0xff]  }
0x20a4   : > { %v4013_v8 = vsub.f32 1.0, %v4009_v6  ;;  %v4011_v47 = vmul.f32 %v5543_v33, %v3991_v32 }
0x20a5   : > { %v4016_v16 = vmul.f32 %v4012_v7, %v3932_v14  ;;  %v4014_v22 = vsub.f32 1.0, %v4010_v11 }
0x20a6   : > { %v4017_v21 = vmul.f32 %v4013_v8, %v3933_v2  ;;  %v4015_v28 = vsub.f32 1.0, %v4011_v47  ;;  %v4748_v8 = vld [vmem:[%s6709_s22 + $0x1] ss:$0 sm:$0xff]  ;;  %v4750_v47 = vld [vmem:[%s6712_s25] ss:$0 sm:$0xff] }
0x20a7   : > { %v4020_v17 = vadd.f32 1.0, %v4016_v16  ;;  %v4018_v24 = vmul.f32 %v4014_v22, %v3934_v50 }
0x20a8   : > { %v4021_v52 = vadd.f32 1.0, %v4017_v21  ;;  %v4019_v35 = vmul.f32 %v4015_v28, %v3935_v0 }
0x20a9   : > { %v4022_v23 = vadd.f32 1.0, %v4018_v24  ;;  %v4024_v25 = vmul.f32 %v4020_v17, %v3920_v29 }
0x20aa   : > { %v4023_v20 = vadd.f32 1.0, %v4019_v35  ;;  %v4025_v60 = vmul.f32 %v4021_v52, %v3921_v36 }
0x20ab   : > { %v4026_v15 = vmul.f32 %v4022_v23, %v3922_v61 }
0x20ac   : > { %v4027_v3 = vmul.f32 %v4023_v20, %v3923_v58 }
0x20ad   : > { %v4028_v18 = vpack.c.bf16 %v4026_v15, %v4024_v25 }
0x20ae   : > { %v4029_v39 = vpack.c.bf16 %v4027_v3, %v4025_v60 }
0x20b0   : > { %4199 = vmatprep.mubr.bf16.mxu1 %v4029_v39 }
0x20b1   : > { %4200 = vmatmul.mubr.bf16.vlgmr.msra.gmra.mrb[80].mxu1 %v4028_v18 }
0x2184   : > { %v4921_v45 = vpop.f32.mrb[80].mxu1 }
0x2185   : > { %v4922_v40 = vpop.f32.mrb[81].mxu1 }
0x2186   : > { %v4923_v19 = vadd.f32 %v4922_v40, %v4921_v45  ;;  %v4924_v41 = vpop.f32.mrb[82].mxu1 }
0x2187   : > { %v4925_v54 = vpop.f32.mrb[83].mxu1 }
0x2188   : > { %v4202_v63 = vadd.f32 %v4923_v19, %v4729_v34  ;;  %v4926_v31 = vadd.f32 %v4925_v54, %v4924_v41 }
0x218a   : > { %v4205_v42 = vadd.f32 %v4926_v31, %v4729_v34  ;;  %v4208_v55 = vadd.f32 %v4202_v63, %v6536_v26 }
0x218c   : > { %4214 = vadd.xlane.f32.xlu1 %v4208_v55  ;;  %v4209_v43 = vadd.f32 %v4205_v42, %v6538_v27  ;;  %v5425_v27 = vld [vmem:[%s6711_s24 + $0x8] sm:$0xff]  }
0x218d   : > { %5239 = vmatpush3.bf16.msra.mxu0 %v5425_v27 }
0x218e   : > { %4216 = vadd.xlane.f32.xlu0 %v4209_v43  ;;  %5240 = vmatprep.subr.bf16.mxu0 %v5556_v1 }
0x2191   : > { %5241 = vmatpush3.bf16.msra.mxu0 %v5426_v57 }
0x2192   : > { %5242 = vmatprep.subr.bf16.mxu0 %v5556_v1 }
0x2195   : > { %5243 = vmatpush3.bf16.msra.mxu0 %v5427_v12 }
0x2196   : > { %5244 = vmatprep.subr.bf16.mxu0 %v5556_v1 }
0x2199   : > { %5245 = vmatpush3.bf16.msra.mxu0 %v5428_v59 }
0x219a   : > { %5246 = vmatprep.subr.bf16.mxu0 %v5556_v1 }
0x219d   : > { %5247 = vmatpush3.bf16.msra.mxu0 %v5429_v13 }
0x219e   : > { %5248 = vmatprep.subr.bf16.mxu0 %v5556_v1 }
0x21a1   : > { %5249 = vmatpush3.bf16.msra.mxu0 %v5430_v48 }
0x21a2   : > { %5250 = vmatprep.subr.bf16.mxu0 %v5556_v1  ;;  %v4749_v1 = vld [vmem:[%s6710_s23 + $0x1] ss:$0 sm:$0xff] }
0x21a5   : > { %5251 = vmatpush3.bf16.msra.mxu0 %v5431_v62 }
0x2219   : > { %v4215_v37 = vpop.xlane.xlu1 %4214 }
0x221a   : > { %v4218_v38 = vmul.f32 0.0078125, %v4215_v37 }
0x221b   : > { %v4217_v46 = vpop.xlane.xlu0 %4216 }
0x221c   : > { %v4220_v53 = vsub.f32 %v4208_v55, %v4218_v38  ;;  %v4219_v51 = vmul.f32 0.0078125, %v4217_v46 }
0x221e   : > { %v4221_v10 = vsub.f32 %v4209_v43, %v4219_v51  ;;  %v4222_v56 = vmul.f32 %v4220_v53, %v4220_v53 }
0x2220   : > { %4224 = vadd.xlane.f32.xlu0 %v4222_v56  ;;  %v4223_v26 = vmul.f32 %v4221_v10, %v4221_v10 }
0x2224   : > { %4226 = vadd.xlane.f32.xlu0 %v4223_v26 }
0x22ad   : > { %v4225_v5 = vpop.xlane.xlu0 %4224 }
0x22ae   : > { %v4228_v4 = vmul.f32 0.0078125, %v4225_v5 }
0x22b0   : > { %v4230_v6 = vadd.f32 1e-12, %v4228_v4 }
0x22b1   : > { %v4227_v7 = vpop.xlane.xlu0 %4226 }
0x22b2   : > { %5544 = vrsqrt.f32 %v4230_v6  ;;  %v4229_v49 = vmul.f32 0.0078125, %v4227_v7 }
0x22b4   : > { %v4231_v9 = vadd.f32 1e-12, %v4229_v49 }
0x22b6   : > { %5546 = vrsqrt.f32 %v4231_v9 }
0x22bc   : > { %v5545_v30 = vpop.eup %5544 }
0x22bd   : > { %v4234_v14 = vmul.f32 %v5545_v30, %v4220_v53 }
0x22bf   : > { %v4242_v32 = vmul.f32 %v4748_v8, %v4234_v14 }
0x22c0   : > { %v5547_v16 = vpop.eup %5546 }
0x22c1   : > { %v4235_v11 = vmul.f32 %v5547_v16, %v4221_v10  ;;  %v4250_v2 = vadd.f32 %v4749_v1, %v4242_v32 }
0x22c3   : > { %v4243_v33 = vmul.f32 %v4748_v8, %v4235_v11 }
0x22c5   : > { %v4251_v21 = vadd.f32 %v4749_v1, %v4243_v33 }
0x22c7   : > { %v4252_v22 = vpack.c.bf16 %v4251_v21, %v4250_v2 }
0x22c9   : > { %5253 = vmatmul.mubr.bf16.vlgmr.msra.gmra.mrb[56].mxu0 %v4252_v22 }
0x239c   : > { %v4358_v50 = vpop.f32.mrb[56].mxu0 }
0x239d   : > { %v4359_v17 = vadd.f32 %v4750_v47, %v4358_v50  ;;  %v5254_v24 = vpop.f32.mrb[57].mxu0 }
0x239e   : > { %v4361_v28 = vpop.f32.mrb[58].mxu0 }
0x239f   : > { %4365 = vst [vmem:[%s811_s9] sm:$0xff] %v4359_v17  ;;  %v4362_v29 = vadd.f32 %v4750_v47, %v4361_v28  ;;  %v5255_v0 = vpop.f32.mrb[59].mxu0 }
0x23a1   : > { %4366 = vst [vmem:[%s811_s9 + $0x8] sm:$0xff] %v4362_v29 }
0x23a2 PF: > { %s36_s27 = sadd.s32 1, %s5554_s27  }
0x23a3   : > { %p33_p4 = scmp.ge.s32.totalorder %s36_s27, 4  }
0x23a5   :  { %35 = sbr.rel (!%p33_p4) target bundleno = 12 (0xc), region = 173 }

</bundles_post_ra>
